<compile_context>
chip_gen: v6e
topology: v6e:2x2x1
jax: 0.10.0
libtpu: 0.0.40
codegen_flags: <defaults>
</compile_context>

<pallas_src>
import functools

import jax
import jax.numpy as jnp
from jax.experimental import pallas as pl
from jax.experimental.pallas import tpu as pltpu

SIGMA_DATA = 0.5
DATA_MEAN = 0.5
DATA_STD = 0.5


# ----------------------------- Pallas kernels -------------------------------

def _decoder_chain_kernel(x_ref, w0_ref, w1a_ref, w1b_ref, w2a_ref, w2b_ref,
                          o_ref, *, n_batch):
    """Fused decoded_sample: 1x1 conv (no bias) + 2 residual DecoderCells.

    x_ref:  (N, Cp, PH*PW) bf16   (NCHW column layout)
    w*_ref: (Cp, Cp)        bf16  (conv weights, [out_c, in_c])
    o_ref:  (N, Cp, PH*PW)  f32
    """
    w0 = w0_ref[...]
    w1a = w1a_ref[...]
    w1b = w1b_ref[...]
    w2a = w2a_ref[...]
    w2b = w2b_ref[...]
    for n in range(n_batch):                      # static unroll over the small batch
        x = x_ref[n]                              # (Cp, PH*PW) bf16
        d = jnp.dot(w0, x, preferred_element_type=jnp.float32)
        # DecoderCell 1 (TODO(synk): surrogate residual 1x1-conv MLP + SiLU)
        h = jnp.dot(w1a, d.astype(jnp.bfloat16), preferred_element_type=jnp.float32)
        h = h * jax.nn.sigmoid(h)
        d = d + jnp.dot(w1b, h.astype(jnp.bfloat16), preferred_element_type=jnp.float32)
        # DecoderCell 2
        h = jnp.dot(w2a, d.astype(jnp.bfloat16), preferred_element_type=jnp.float32)
        h = h * jax.nn.sigmoid(h)
        d = d + jnp.dot(w2b, h.astype(jnp.bfloat16), preferred_element_type=jnp.float32)
        o_ref[n] = d


def pallas_decoder_chain(feat, w0, w1a, w1b, w2a, w2b):
    N, Cp, PHW = feat.shape
    kernel = functools.partial(_decoder_chain_kernel, n_batch=N)
    full3 = pl.BlockSpec((N, Cp, PHW), lambda i: (0, 0, 0))
    wspec = pl.BlockSpec((Cp, Cp), lambda i: (0, 0))
    return pl.pallas_call(
        kernel,
        out_shape=jax.ShapeDtypeStruct((N, Cp, PHW), jnp.float32),
        grid=(1,),
        in_specs=[full3, wspec, wspec, wspec, wspec, wspec],
        out_specs=full3,
        compiler_params=pltpu.CompilerParams(dimension_semantics=("arbitrary",)),
    )(feat, w0, w1a, w1b, w2a, w2b)


def _fused_network_kernel(c_in_ref, c_skip_ref, c_out_ref,          # SMEM (N,)
                          xs_ref, unet_ref, scale_ref, shift_ref,   # VMEM
                          wx_ref, wu_ref, wo_ref,                   # VMEM weights
                          o_ref, *, n_batch):
    """Fused: c_in scale -> input proj -> FiLM+SiLU -> output proj -> EDM combine -> decode.

    xs_ref:    (N, C, HW)   f32   encoded diffused images (NCHW column layout)
    unet_ref:  (N, Cp, HW)  bf16  nearest-upsampled variational features
    scale/shift_ref: (N, HID, 1) f32  FiLM params (already include c_noise term)
    wx_ref: (HID, C) bf16,  wu_ref: (HID, Cp) bf16,  wo_ref: (C, HID) bf16
    o_ref:  (N, C, HW) f32  lane-dense output (HW is a multiple of 128)
    """
    wx = wx_ref[...]
    wu = wu_ref[...]
    wo = wo_ref[...]
    for n in range(n_batch):                      # static unroll over the small batch
        xs_n = xs_ref[n]                          # (C, HW) f32
        unet_n = unet_ref[n]                      # (Cp, HW) bf16
        c_in = c_in_ref[n]
        x_in = (xs_n * c_in).astype(jnp.bfloat16)
        # split input projection (avoids the K=67 channel concat)
        h = (jnp.dot(wx, x_in, preferred_element_type=jnp.float32)
             + jnp.dot(wu, unet_n, preferred_element_type=jnp.float32))   # (HID, HW) f32
        # FiLM(mapping_cond, c_noise) + SiLU, f32 on VPU/EUP
        h = h * (1.0 + scale_ref[n]) + shift_ref[n]     # (HID,1) broadcast over lanes
        h = h * jax.nn.sigmoid(h)
        proj = jnp.dot(wo, h.astype(jnp.bfloat16),
                       preferred_element_type=jnp.float32)                # (C, HW) f32
        # EDM combine + standardize.decode, single lane-dense store per sample
        o_ref[n] = (c_skip_ref[n] * xs_n + c_out_ref[n] * proj) * DATA_STD + DATA_MEAN


def pallas_fused_network(xs_cols, unet_cols, scale, shift, c_in, c_skip, c_out,
                         w_x_in, w_u_in, w_out):
    N, C, HW = xs_cols.shape
    _, Cp, _ = unet_cols.shape
    HID = w_x_in.shape[0]
    kernel = functools.partial(_fused_network_kernel, n_batch=N)
    smem = pl.BlockSpec(memory_space=pltpu.MemorySpace.SMEM)
    flops = 2 * N * HW * HID * (2 * C + Cp)
    bytes_accessed = int(4 * N * HW * (2 * C) + 2 * N * HW * Cp
                         + 2 * HID * (2 * C + Cp) + 8 * N * HID)
    cost = pl.CostEstimate(flops=flops, transcendentals=N * HID * HW,
                           bytes_accessed=bytes_accessed)
    return pl.pallas_call(
        kernel,
        out_shape=jax.ShapeDtypeStruct((N, C, HW), jnp.float32),
        grid=(1,),
        in_specs=[smem, smem, smem,
                  pl.BlockSpec((N, C, HW), lambda i: (0, 0, 0)),
                  pl.BlockSpec((N, Cp, HW), lambda i: (0, 0, 0)),
                  pl.BlockSpec((N, HID, 1), lambda i: (0, 0, 0)),
                  pl.BlockSpec((N, HID, 1), lambda i: (0, 0, 0)),
                  pl.BlockSpec((HID, C), lambda i: (0, 0)),
                  pl.BlockSpec((HID, Cp), lambda i: (0, 0)),
                  pl.BlockSpec((C, HID), lambda i: (0, 0))],
        out_specs=pl.BlockSpec((N, C, HW), lambda i: (0, 0, 0)),
        compiler_params=pltpu.CompilerParams(dimension_semantics=("arbitrary",)),
        cost_estimate=cost,
    )(c_in.astype(jnp.float32), c_skip.astype(jnp.float32), c_out.astype(jnp.float32),
      xs_cols, unet_cols, scale, shift, w_x_in, w_u_in, w_out)


# ------------------------------ parameters -----------------------------------

def init_params(key, prior_shape, img_channels=3, hidden=128):
    """hidden=128 keeps the dominant matmul's output width at the MXU lane width."""
    prior_c, ph, pw = prior_shape
    mapping_cond_dim = prior_c * ph * pw + 9
    ks = jax.random.split(key, 9)

    def w(k, shape, scale=0.05, dtype=jnp.bfloat16):
        return (scale * jax.random.normal(k, shape, jnp.float32)).astype(dtype)

    return {
        # decoded_sample: Conv2d(64->64, 1x1, bias=False) + 2 x DecoderCell(64)
        "w_ds0": w(ks[0], (prior_c, prior_c)),
        "w_dc1a": w(ks[1], (prior_c, prior_c)),
        "w_dc1b": w(ks[2], (prior_c, prior_c), scale=0.02),
        "w_dc2a": w(ks[3], (prior_c, prior_c)),
        "w_dc2b": w(ks[4], (prior_c, prior_c), scale=0.02),
        # surrogate k_diffusion network (split input projection, [out, in] weights)
        "w_x_in": w(ks[5], (hidden, img_channels)),
        "w_u_in": w(ks[6], (hidden, prior_c)),
        "w_out": w(ks[7], (img_channels, hidden)),
        "w_map": w(ks[8], (mapping_cond_dim, 2 * hidden), dtype=jnp.float32),
        "w_noise": 0.05 * jnp.ones((2 * hidden,), dtype=jnp.float32),
    }


# ------------------------------ model forward --------------------------------

def model_forward(params, diffused_images, ts, nonleaky_augmentations, features):
    """Returns denoised images (the payload of PredictionBatch), shape NCHW."""
    N, C, H, W = diffused_images.shape
    HW = H * W
    _, Cp, PH, PW = features.shape
    PHW = PH * PW
    HID = params["w_x_in"].shape[0]

    # standardize.encode
    xs = (diffused_images - DATA_MEAN) / DATA_STD
    xs_cols = xs.reshape(N, C, HW).astype(jnp.float32)          # free NCHW view

    # EDM preconditioning scalars (sigmas(ts) = ts, sigma_data = 0.5)
    sig = ts.astype(jnp.float32)
    c_skip = SIGMA_DATA ** 2 / (SIGMA_DATA ** 2 + sig ** 2)
    c_out = sig * SIGMA_DATA / jnp.sqrt(SIGMA_DATA ** 2 + sig ** 2)
    c_in = 1.0 / jnp.sqrt(SIGMA_DATA ** 2 + sig ** 2)
    c_noise = 0.25 * jnp.log(sig)

    feats_bf16 = features.astype(jnp.bfloat16)                  # single cast

    # decoded_sample(variational_features.features): fully fused Pallas kernel
    decoded = pallas_decoder_chain(
        feats_bf16.reshape(N, Cp, PHW),
        params["w_ds0"], params["w_dc1a"], params["w_dc1b"],
        params["w_dc2a"], params["w_dc2b"])                     # (N, Cp, PHW) f32
    decoded_flat = decoded.reshape(N, Cp * PHW)                 # CHW flatten (free)
    mapping_cond = jnp.concatenate(
        [nonleaky_augmentations.astype(jnp.float32), decoded_flat], axis=1)

    # mapping embedding: (N, 1033) @ (1033, 2*HID) — tiny, left to XLA
    emb = mapping_cond @ params["w_map"] + c_noise[:, None] * params["w_noise"][None, :]
    scale = emb[:, :HID].reshape(N, HID, 1)
    shift = emb[:, HID:].reshape(N, HID, 1)

    # unet_cond = F.interpolate(features, size=(H, W), mode='nearest')
    ih = (jnp.arange(H) * PH) // H
    iw = (jnp.arange(W) * PW) // W
    unet_cols = feats_bf16[:, :, ih][:, :, :, iw].reshape(N, Cp, HW)

    # fused: c_in*xs -> network -> c_skip*xs + c_out*out -> standardize.decode
    out_cols = pallas_fused_network(xs_cols, unet_cols, scale, shift,
                                    c_in, c_skip, c_out,
                                    params["w_x_in"], params["w_u_in"], params["w_out"])
    return out_cols.reshape(N, C, H, W)                         # free NCHW view


# ----------------------------------- main ------------------------------------

if __name__ == "__main__":
    key = jax.random.PRNGKey(0)
    N = 2
    INPUT_SHAPE = (3, 16, 16)          # small stand-in for settings.INPUT_SHAPE
    PRIOR_SHAPE = (64, 4, 4)           # small stand-in for settings.PRIOR_SHAPE

    k_img, k_ts, k_feat, k_param = jax.random.split(key, 4)
    diffused_images = jax.random.normal(k_img, (N,) + INPUT_SHAPE, jnp.float32)
    # training_ts-style positive timesteps: exp(P_mean + randn * P_std)
    ts = jnp.exp(-1.2 + 1.2 * jax.random.normal(k_ts, (N,), jnp.float32))
    nonleaky_augmentations = jnp.zeros((N, 9), jnp.float32)
    features = jax.random.normal(k_feat, (N,) + PRIOR_SHAPE, jnp.float32)

    params = init_params(k_param, PRIOR_SHAPE, img_channels=INPUT_SHAPE[0], hidden=128)

    fwd = jax.jit(functools.partial(model_forward, params))
    denoised = fwd(diffused_images, ts, nonleaky_augmentations, features)
    jax.block_until_ready(denoised)
    assert denoised.shape == (N,) + INPUT_SHAPE
    assert bool(jnp.all(jnp.isfinite(denoised)))
    print("KERNEL_OK")
</pallas_src>

<mosaic_0001>
module attributes {stable_mosaic.version = 11 : i64} {
  func.func @_decoder_chain_kernel(%arg0: i32, %arg1: memref<2x64x16xbf16, #tpu.memory_space<vmem>>, %arg2: memref<64x64xbf16, #tpu.memory_space<vmem>>, %arg3: memref<64x64xbf16, #tpu.memory_space<vmem>>, %arg4: memref<64x64xbf16, #tpu.memory_space<vmem>>, %arg5: memref<64x64xbf16, #tpu.memory_space<vmem>>, %arg6: memref<64x64xbf16, #tpu.memory_space<vmem>>, %arg7: memref<2x64x16xf32, #tpu.memory_space<vmem>>) attributes {dimension_semantics = [#tpu.dimension_semantics<arbitrary>], iteration_bounds = array<i64: 1>, scalar_prefetch = 0 : i64, scratch_operands = 0 : i64, tpu.core_type = #tpu.core_type<tc>, window_params = [{pipeline_mode = #tpu.pipeline_mode<synchronous>, transform_indices = @transform_0, window_bounds = array<i64: 2, 64, 16>}, {pipeline_mode = #tpu.pipeline_mode<synchronous>, transform_indices = @transform_1, window_bounds = array<i64: 64, 64>}, {pipeline_mode = #tpu.pipeline_mode<synchronous>, transform_indices = @transform_2, window_bounds = array<i64: 64, 64>}, {pipeline_mode = #tpu.pipeline_mode<synchronous>, transform_indices = @transform_3, window_bounds = array<i64: 64, 64>}, {pipeline_mode = #tpu.pipeline_mode<synchronous>, transform_indices = @transform_4, window_bounds = array<i64: 64, 64>}, {pipeline_mode = #tpu.pipeline_mode<synchronous>, transform_indices = @transform_5, window_bounds = array<i64: 64, 64>}, {pipeline_mode = #tpu.pipeline_mode<synchronous>, transform_indices = @transform_6, window_bounds = array<i64: 2, 64, 16>}]} {
    %c0 = arith.constant 0 : index
    %c0_0 = arith.constant 0 : index
    %0 = vector.load %arg2[%c0, %c0_0] : memref<64x64xbf16, #tpu.memory_space<vmem>>, vector<64x64xbf16>
    %c0_1 = arith.constant 0 : index
    %c0_2 = arith.constant 0 : index
    %1 = vector.load %arg3[%c0_1, %c0_2] : memref<64x64xbf16, #tpu.memory_space<vmem>>, vector<64x64xbf16>
    %c0_3 = arith.constant 0 : index
    %c0_4 = arith.constant 0 : index
    %2 = vector.load %arg4[%c0_3, %c0_4] : memref<64x64xbf16, #tpu.memory_space<vmem>>, vector<64x64xbf16>
    %c0_5 = arith.constant 0 : index
    %c0_6 = arith.constant 0 : index
    %3 = vector.load %arg5[%c0_5, %c0_6] : memref<64x64xbf16, #tpu.memory_space<vmem>>, vector<64x64xbf16>
    %c0_7 = arith.constant 0 : index
    %c0_8 = arith.constant 0 : index
    %4 = vector.load %arg6[%c0_7, %c0_8] : memref<64x64xbf16, #tpu.memory_space<vmem>>, vector<64x64xbf16>
    %c0_9 = arith.constant 0 : index
    %c0_10 = arith.constant 0 : index
    %c0_11 = arith.constant 0 : index
    %5 = vector.load %arg1[%c0_9, %c0_10, %c0_11] : memref<2x64x16xbf16, #tpu.memory_space<vmem>>, vector<1x64x16xbf16>
    %6 = vector.shape_cast %5 : vector<1x64x16xbf16> to vector<64x16xbf16>
    %cst = arith.constant dense<0.000000e+00> : vector<64x16xf32>
    %7 = tpu.matmul %0, %6, %cst {dimension_numbers = #tpu.dot_dimension_numbers<[1], [0], [0], [1], [0, 0, 1, 1], [], []>} : vector<64x64xbf16>, vector<64x16xbf16>, vector<64x16xf32> -> vector<64x16xf32>
    %8 = arith.truncf %7 : vector<64x16xf32> to vector<64x16xbf16>
    %cst_12 = arith.constant dense<0.000000e+00> : vector<64x16xf32>
    %9 = tpu.matmul %1, %8, %cst_12 {dimension_numbers = #tpu.dot_dimension_numbers<[1], [0], [0], [1], [0, 0, 1, 1], [], []>} : vector<64x64xbf16>, vector<64x16xbf16>, vector<64x16xf32> -> vector<64x16xf32>
    %10 = arith.negf %9 : vector<64x16xf32>
    %11 = math.exp %10 : vector<64x16xf32>
    %cst_13 = arith.constant 1.000000e+00 : f32
    %12 = vector.broadcast %cst_13 : f32 to vector<64x16xf32>
    %13 = arith.addf %12, %11 : vector<64x16xf32>
    %14 = arith.divf %12, %13 : vector<64x16xf32>
    %15 = arith.mulf %9, %14 : vector<64x16xf32>
    %16 = arith.truncf %15 : vector<64x16xf32> to vector<64x16xbf16>
    %cst_14 = arith.constant dense<0.000000e+00> : vector<64x16xf32>
    %17 = tpu.matmul %2, %16, %cst_14 {dimension_numbers = #tpu.dot_dimension_numbers<[1], [0], [0], [1], [0, 0, 1, 1], [], []>} : vector<64x64xbf16>, vector<64x16xbf16>, vector<64x16xf32> -> vector<64x16xf32>
    %18 = arith.addf %7, %17 : vector<64x16xf32>
    %19 = arith.truncf %18 : vector<64x16xf32> to vector<64x16xbf16>
    %cst_15 = arith.constant dense<0.000000e+00> : vector<64x16xf32>
    %20 = tpu.matmul %3, %19, %cst_15 {dimension_numbers = #tpu.dot_dimension_numbers<[1], [0], [0], [1], [0, 0, 1, 1], [], []>} : vector<64x64xbf16>, vector<64x16xbf16>, vector<64x16xf32> -> vector<64x16xf32>
    %21 = arith.negf %20 : vector<64x16xf32>
    %22 = math.exp %21 : vector<64x16xf32>
    %cst_16 = arith.constant 1.000000e+00 : f32
    %23 = vector.broadcast %cst_16 : f32 to vector<64x16xf32>
    %24 = arith.addf %23, %22 : vector<64x16xf32>
    %25 = arith.divf %23, %24 : vector<64x16xf32>
    %26 = arith.mulf %20, %25 : vector<64x16xf32>
    %27 = arith.truncf %26 : vector<64x16xf32> to vector<64x16xbf16>
    %cst_17 = arith.constant dense<0.000000e+00> : vector<64x16xf32>
    %28 = tpu.matmul %4, %27, %cst_17 {dimension_numbers = #tpu.dot_dimension_numbers<[1], [0], [0], [1], [0, 0, 1, 1], [], []>} : vector<64x64xbf16>, vector<64x16xbf16>, vector<64x16xf32> -> vector<64x16xf32>
    %29 = arith.addf %18, %28 : vector<64x16xf32>
    %c0_18 = arith.constant 0 : index
    %c0_19 = arith.constant 0 : index
    %c0_20 = arith.constant 0 : index
    %30 = vector.load %arg7[%c0_18, %c0_19, %c0_20] : memref<2x64x16xf32, #tpu.memory_space<vmem>>, vector<1x64x16xf32>
    %31 = vector.shape_cast %30 : vector<1x64x16xf32> to vector<64x16xf32>
    %32 = vector.shape_cast %29 : vector<64x16xf32> to vector<1x64x16xf32>
    tpu.vector_store %arg7[%c0_18, %c0_19, %c0_20], %32 {strides = array<i32>} : memref<2x64x16xf32, #tpu.memory_space<vmem>>, vector<1x64x16xf32>,
    %c1 = arith.constant 1 : index
    %c0_21 = arith.constant 0 : index
    %c0_22 = arith.constant 0 : index
    %33 = vector.load %arg1[%c1, %c0_21, %c0_22] : memref<2x64x16xbf16, #tpu.memory_space<vmem>>, vector<1x64x16xbf16>
    %34 = vector.shape_cast %33 : vector<1x64x16xbf16> to vector<64x16xbf16>
    %cst_23 = arith.constant dense<0.000000e+00> : vector<64x16xf32>
    %35 = tpu.matmul %0, %34, %cst_23 {dimension_numbers = #tpu.dot_dimension_numbers<[1], [0], [0], [1], [0, 0, 1, 1], [], []>} : vector<64x64xbf16>, vector<64x16xbf16>, vector<64x16xf32> -> vector<64x16xf32>
    %36 = arith.truncf %35 : vector<64x16xf32> to vector<64x16xbf16>
    %cst_24 = arith.constant dense<0.000000e+00> : vector<64x16xf32>
    %37 = tpu.matmul %1, %36, %cst_24 {dimension_numbers = #tpu.dot_dimension_numbers<[1], [0], [0], [1], [0, 0, 1, 1], [], []>} : vector<64x64xbf16>, vector<64x16xbf16>, vector<64x16xf32> -> vector<64x16xf32>
    %38 = arith.negf %37 : vector<64x16xf32>
    %39 = math.exp %38 : vector<64x16xf32>
    %cst_25 = arith.constant 1.000000e+00 : f32
    %40 = vector.broadcast %cst_25 : f32 to vector<64x16xf32>
    %41 = arith.addf %40, %39 : vector<64x16xf32>
    %42 = arith.divf %40, %41 : vector<64x16xf32>
    %43 = arith.mulf %37, %42 : vector<64x16xf32>
    %44 = arith.truncf %43 : vector<64x16xf32> to vector<64x16xbf16>
    %cst_26 = arith.constant dense<0.000000e+00> : vector<64x16xf32>
    %45 = tpu.matmul %2, %44, %cst_26 {dimension_numbers = #tpu.dot_dimension_numbers<[1], [0], [0], [1], [0, 0, 1, 1], [], []>} : vector<64x64xbf16>, vector<64x16xbf16>, vector<64x16xf32> -> vector<64x16xf32>
    %46 = arith.addf %35, %45 : vector<64x16xf32>
    %47 = arith.truncf %46 : vector<64x16xf32> to vector<64x16xbf16>
    %cst_27 = arith.constant dense<0.000000e+00> : vector<64x16xf32>
    %48 = tpu.matmul %3, %47, %cst_27 {dimension_numbers = #tpu.dot_dimension_numbers<[1], [0], [0], [1], [0, 0, 1, 1], [], []>} : vector<64x64xbf16>, vector<64x16xbf16>, vector<64x16xf32> -> vector<64x16xf32>
    %49 = arith.negf %48 : vector<64x16xf32>
    %50 = math.exp %49 : vector<64x16xf32>
    %cst_28 = arith.constant 1.000000e+00 : f32
    %51 = vector.broadcast %cst_28 : f32 to vector<64x16xf32>
    %52 = arith.addf %51, %50 : vector<64x16xf32>
    %53 = arith.divf %51, %52 : vector<64x16xf32>
    %54 = arith.mulf %48, %53 : vector<64x16xf32>
    %55 = arith.truncf %54 : vector<64x16xf32> to vector<64x16xbf16>
    %cst_29 = arith.constant dense<0.000000e+00> : vector<64x16xf32>
    %56 = tpu.matmul %4, %55, %cst_29 {dimension_numbers = #tpu.dot_dimension_numbers<[1], [0], [0], [1], [0, 0, 1, 1], [], []>} : vector<64x64xbf16>, vector<64x16xbf16>, vector<64x16xf32> -> vector<64x16xf32>
    %57 = arith.addf %46, %56 : vector<64x16xf32>
    %c1_30 = arith.constant 1 : index
    %c0_31 = arith.constant 0 : index
    %c0_32 = arith.constant 0 : index
    %58 = vector.load %arg7[%c1_30, %c0_31, %c0_32] : memref<2x64x16xf32, #tpu.memory_space<vmem>>, vector<1x64x16xf32>
    %59 = vector.shape_cast %58 : vector<1x64x16xf32> to vector<64x16xf32>
    %60 = vector.shape_cast %57 : vector<64x16xf32> to vector<1x64x16xf32>
    tpu.vector_store %arg7[%c1_30, %c0_31, %c0_32], %60 {strides = array<i32>} : memref<2x64x16xf32, #tpu.memory_space<vmem>>, vector<1x64x16xf32>,
    return
  }
  func.func @transform_0(%arg0: i32) -> (i32, i32, i32) {
    %c0_i32 = arith.constant 0 : i32
    %c0_i32_0 = arith.constant 0 : i32
    %c0_i32_1 = arith.constant 0 : i32
    %c0_i32_2 = arith.constant 0 : i32
    return %c0_i32, %c0_i32_0, %c0_i32_1 : i32, i32, i32
  }
  func.func @transform_1(%arg0: i32) -> (i32, i32) {
    %c0_i32 = arith.constant 0 : i32
    %c0_i32_0 = arith.constant 0 : i32
    %c0_i32_1 = arith.constant 0 : i32
    return %c0_i32, %c0_i32_0 : i32, i32
  }
  func.func @transform_2(%arg0: i32) -> (i32, i32) {
    %c0_i32 = arith.constant 0 : i32
    %c0_i32_0 = arith.constant 0 : i32
    %c0_i32_1 = arith.constant 0 : i32
    return %c0_i32, %c0_i32_0 : i32, i32
  }
  func.func @transform_3(%arg0: i32) -> (i32, i32) {
    %c0_i32 = arith.constant 0 : i32
    %c0_i32_0 = arith.constant 0 : i32
    %c0_i32_1 = arith.constant 0 : i32
    return %c0_i32, %c0_i32_0 : i32, i32
  }
  func.func @transform_4(%arg0: i32) -> (i32, i32) {
    %c0_i32 = arith.constant 0 : i32
    %c0_i32_0 = arith.constant 0 : i32
    %c0_i32_1 = arith.constant 0 : i32
    return %c0_i32, %c0_i32_0 : i32, i32
  }
  func.func @transform_5(%arg0: i32) -> (i32, i32) {
    %c0_i32 = arith.constant 0 : i32
    %c0_i32_0 = arith.constant 0 : i32
    %c0_i32_1 = arith.constant 0 : i32
    return %c0_i32, %c0_i32_0 : i32, i32
  }
  func.func @transform_6(%arg0: i32) -> (i32, i32, i32) {
    %c0_i32 = arith.constant 0 : i32
    %c0_i32_0 = arith.constant 0 : i32
    %c0_i32_1 = arith.constant 0 : i32
    %c0_i32_2 = arith.constant 0 : i32
    return %c0_i32, %c0_i32_0, %c0_i32_1 : i32, i32, i32
  }
}

module attributes {stable_mosaic.version = 11 : i64} {
  func.func @_fused_network_kernel(%arg0: i32, %arg1: memref<2xf32, #tpu.memory_space<smem>>, %arg2: memref<2xf32, #tpu.memory_space<smem>>, %arg3: memref<2xf32, #tpu.memory_space<smem>>, %arg4: memref<2x3x256xf32, #tpu.memory_space<vmem>>, %arg5: memref<2x64x256xbf16, #tpu.memory_space<vmem>>, %arg6: memref<2x128x1xf32, #tpu.memory_space<vmem>>, %arg7: memref<2x128x1xf32, #tpu.memory_space<vmem>>, %arg8: memref<128x3xbf16, #tpu.memory_space<vmem>>, %arg9: memref<128x64xbf16, #tpu.memory_space<vmem>>, %arg10: memref<3x128xbf16, #tpu.memory_space<vmem>>, %arg11: memref<2x3x256xf32, #tpu.memory_space<vmem>>) attributes {dimension_semantics = [#tpu.dimension_semantics<arbitrary>], iteration_bounds = array<i64: 1>, scalar_prefetch = 0 : i64, scratch_operands = 0 : i64, tpu.core_type = #tpu.core_type<tc>, window_params = [{transform_indices = @transform_0, window_bounds = array<i64: 2>}, {transform_indices = @transform_1, window_bounds = array<i64: 2>}, {transform_indices = @transform_2, window_bounds = array<i64: 2>}, {pipeline_mode = #tpu.pipeline_mode<synchronous>, transform_indices = @transform_3, window_bounds = array<i64: 2, 3, 256>}, {pipeline_mode = #tpu.pipeline_mode<synchronous>, transform_indices = @transform_4, window_bounds = array<i64: 2, 64, 256>}, {pipeline_mode = #tpu.pipeline_mode<synchronous>, transform_indices = @transform_5, window_bounds = array<i64: 2, 128, 1>}, {pipeline_mode = #tpu.pipeline_mode<synchronous>, transform_indices = @transform_6, window_bounds = array<i64: 2, 128, 1>}, {pipeline_mode = #tpu.pipeline_mode<synchronous>, transform_indices = @transform_7, window_bounds = array<i64: 128, 3>}, {pipeline_mode = #tpu.pipeline_mode<synchronous>, transform_indices = @transform_8, window_bounds = array<i64: 128, 64>}, {pipeline_mode = #tpu.pipeline_mode<synchronous>, transform_indices = @transform_9, window_bounds = array<i64: 3, 128>}, {pipeline_mode = #tpu.pipeline_mode<synchronous>, transform_indices = @transform_10, window_bounds = array<i64: 2, 3, 256>}]} {
    %c0 = arith.constant 0 : index
    %c0_0 = arith.constant 0 : index
    %0 = vector.load %arg8[%c0, %c0_0] : memref<128x3xbf16, #tpu.memory_space<vmem>>, vector<128x3xbf16>
    %c0_1 = arith.constant 0 : index
    %c0_2 = arith.constant 0 : index
    %1 = vector.load %arg9[%c0_1, %c0_2] : memref<128x64xbf16, #tpu.memory_space<vmem>>, vector<128x64xbf16>
    %c0_3 = arith.constant 0 : index
    %c0_4 = arith.constant 0 : index
    %2 = vector.load %arg10[%c0_3, %c0_4] : memref<3x128xbf16, #tpu.memory_space<vmem>>, vector<3x128xbf16>
    %c0_5 = arith.constant 0 : index
    %c0_6 = arith.constant 0 : index
    %c0_7 = arith.constant 0 : index
    %3 = vector.load %arg4[%c0_5, %c0_6, %c0_7] : memref<2x3x256xf32, #tpu.memory_space<vmem>>, vector<1x3x256xf32>
    %4 = vector.shape_cast %3 : vector<1x3x256xf32> to vector<3x256xf32>
    %c0_8 = arith.constant 0 : index
    %c0_9 = arith.constant 0 : index
    %c0_10 = arith.constant 0 : index
    %5 = vector.load %arg5[%c0_8, %c0_9, %c0_10] : memref<2x64x256xbf16, #tpu.memory_space<vmem>>, vector<1x64x256xbf16>
    %6 = vector.shape_cast %5 : vector<1x64x256xbf16> to vector<64x256xbf16>
    %c0_11 = arith.constant 0 : index
    %7 = memref.load %arg1[%c0_11] : memref<2xf32, #tpu.memory_space<smem>>
    %8 = vector.broadcast %7 : f32 to vector<3x256xf32>
    %9 = arith.mulf %4, %8 : vector<3x256xf32>
    %10 = arith.truncf %9 : vector<3x256xf32> to vector<3x256xbf16>
    %cst = arith.constant dense<0.000000e+00> : vector<128x256xf32>
    %11 = tpu.matmul %0, %10, %cst {dimension_numbers = #tpu.dot_dimension_numbers<[1], [0], [0], [1], [0, 0, 1, 1], [], []>} : vector<128x3xbf16>, vector<3x256xbf16>, vector<128x256xf32> -> vector<128x256xf32>
    %cst_12 = arith.constant dense<0.000000e+00> : vector<128x256xf32>
    %12 = tpu.matmul %1, %6, %cst_12 {dimension_numbers = #tpu.dot_dimension_numbers<[1], [0], [0], [1], [0, 0, 1, 1], [], []>} : vector<128x64xbf16>, vector<64x256xbf16>, vector<128x256xf32> -> vector<128x256xf32>
    %13 = arith.addf %11, %12 : vector<128x256xf32>
    %c0_13 = arith.constant 0 : index
    %c0_14 = arith.constant 0 : index
    %c0_15 = arith.constant 0 : index
    %14 = vector.load %arg6[%c0_13, %c0_14, %c0_15] : memref<2x128x1xf32, #tpu.memory_space<vmem>>, vector<1x128x1xf32>
    %15 = vector.shape_cast %14 : vector<1x128x1xf32> to vector<128x1xf32>
    %cst_16 = arith.constant 1.000000e+00 : f32
    %16 = vector.broadcast %cst_16 : f32 to vector<128x1xf32>
    %17 = arith.addf %16, %15 : vector<128x1xf32>
    %18 = vector.broadcast %17 : vector<128x1xf32> to vector<128x256xf32>
    %19 = arith.mulf %13, %18 : vector<128x256xf32>
    %c0_17 = arith.constant 0 : index
    %c0_18 = arith.constant 0 : index
    %c0_19 = arith.constant 0 : index
    %20 = vector.load %arg7[%c0_17, %c0_18, %c0_19] : memref<2x128x1xf32, #tpu.memory_space<vmem>>, vector<1x128x1xf32>
    %21 = vector.shape_cast %20 : vector<1x128x1xf32> to vector<128x1xf32>
    %22 = vector.broadcast %21 : vector<128x1xf32> to vector<128x256xf32>
    %23 = arith.addf %19, %22 : vector<128x256xf32>
    %24 = arith.negf %23 : vector<128x256xf32>
    %25 = math.exp %24 : vector<128x256xf32>
    %cst_20 = arith.constant 1.000000e+00 : f32
    %26 = vector.broadcast %cst_20 : f32 to vector<128x256xf32>
    %27 = arith.addf %26, %25 : vector<128x256xf32>
    %28 = arith.divf %26, %27 : vector<128x256xf32>
    %29 = arith.mulf %23, %28 : vector<128x256xf32>
    %30 = arith.truncf %29 : vector<128x256xf32> to vector<128x256xbf16>
    %cst_21 = arith.constant dense<0.000000e+00> : vector<3x256xf32>
    %31 = tpu.matmul %2, %30, %cst_21 {dimension_numbers = #tpu.dot_dimension_numbers<[1], [0], [0], [1], [0, 0, 1, 1], [], []>} : vector<3x128xbf16>, vector<128x256xbf16>, vector<3x256xf32> -> vector<3x256xf32>
    %c0_22 = arith.constant 0 : index
    %32 = memref.load %arg2[%c0_22] : memref<2xf32, #tpu.memory_space<smem>>
    %33 = vector.broadcast %32 : f32 to vector<3x256xf32>
    %34 = arith.mulf %33, %4 : vector<3x256xf32>
    %c0_23 = arith.constant 0 : index
    %35 = memref.load %arg3[%c0_23] : memref<2xf32, #tpu.memory_space<smem>>
    %36 = vector.broadcast %35 : f32 to vector<3x256xf32>
    %37 = arith.mulf %36, %31 : vector<3x256xf32>
    %38 = arith.addf %34, %37 : vector<3x256xf32>
    %cst_24 = arith.constant 5.000000e-01 : f32
    %39 = vector.broadcast %cst_24 : f32 to vector<3x256xf32>
    %40 = arith.mulf %38, %39 : vector<3x256xf32>
    %cst_25 = arith.constant 5.000000e-01 : f32
    %41 = vector.broadcast %cst_25 : f32 to vector<3x256xf32>
    %42 = arith.addf %40, %41 : vector<3x256xf32>
    %c0_26 = arith.constant 0 : index
    %c0_27 = arith.constant 0 : index
    %c0_28 = arith.constant 0 : index
    %43 = vector.load %arg11[%c0_26, %c0_27, %c0_28] : memref<2x3x256xf32, #tpu.memory_space<vmem>>, vector<1x3x256xf32>
    %44 = vector.shape_cast %43 : vector<1x3x256xf32> to vector<3x256xf32>
    %45 = vector.shape_cast %42 : vector<3x256xf32> to vector<1x3x256xf32>
    tpu.vector_store %arg11[%c0_26, %c0_27, %c0_28], %45 {strides = array<i32>} : memref<2x3x256xf32, #tpu.memory_space<vmem>>, vector<1x3x256xf32>,
    %c1 = arith.constant 1 : index
    %c0_29 = arith.constant 0 : index
    %c0_30 = arith.constant 0 : index
    %46 = vector.load %arg4[%c1, %c0_29, %c0_30] : memref<2x3x256xf32, #tpu.memory_space<vmem>>, vector<1x3x256xf32>
    %47 = vector.shape_cast %46 : vector<1x3x256xf32> to vector<3x256xf32>
    %c1_31 = arith.constant 1 : index
    %c0_32 = arith.constant 0 : index
    %c0_33 = arith.constant 0 : index
    %48 = vector.load %arg5[%c1_31, %c0_32, %c0_33] : memref<2x64x256xbf16, #tpu.memory_space<vmem>>, vector<1x64x256xbf16>
    %49 = vector.shape_cast %48 : vector<1x64x256xbf16> to vector<64x256xbf16>
    %c1_34 = arith.constant 1 : index
    %50 = memref.load %arg1[%c1_34] : memref<2xf32, #tpu.memory_space<smem>>
    %51 = vector.broadcast %50 : f32 to vector<3x256xf32>
    %52 = arith.mulf %47, %51 : vector<3x256xf32>
    %53 = arith.truncf %52 : vector<3x256xf32> to vector<3x256xbf16>
    %cst_35 = arith.constant dense<0.000000e+00> : vector<128x256xf32>
    %54 = tpu.matmul %0, %53, %cst_35 {dimension_numbers = #tpu.dot_dimension_numbers<[1], [0], [0], [1], [0, 0, 1, 1], [], []>} : vector<128x3xbf16>, vector<3x256xbf16>, vector<128x256xf32> -> vector<128x256xf32>
    %cst_36 = arith.constant dense<0.000000e+00> : vector<128x256xf32>
    %55 = tpu.matmul %1, %49, %cst_36 {dimension_numbers = #tpu.dot_dimension_numbers<[1], [0], [0], [1], [0, 0, 1, 1], [], []>} : vector<128x64xbf16>, vector<64x256xbf16>, vector<128x256xf32> -> vector<128x256xf32>
    %56 = arith.addf %54, %55 : vector<128x256xf32>
    %c1_37 = arith.constant 1 : index
    %c0_38 = arith.constant 0 : index
    %c0_39 = arith.constant 0 : index
    %57 = vector.load %arg6[%c1_37, %c0_38, %c0_39] : memref<2x128x1xf32, #tpu.memory_space<vmem>>, vector<1x128x1xf32>
    %58 = vector.shape_cast %57 : vector<1x128x1xf32> to vector<128x1xf32>
    %cst_40 = arith.constant 1.000000e+00 : f32
    %59 = vector.broadcast %cst_40 : f32 to vector<128x1xf32>
    %60 = arith.addf %59, %58 : vector<128x1xf32>
    %61 = vector.broadcast %60 : vector<128x1xf32> to vector<128x256xf32>
    %62 = arith.mulf %56, %61 : vector<128x256xf32>
    %c1_41 = arith.constant 1 : index
    %c0_42 = arith.constant 0 : index
    %c0_43 = arith.constant 0 : index
    %63 = vector.load %arg7[%c1_41, %c0_42, %c0_43] : memref<2x128x1xf32, #tpu.memory_space<vmem>>, vector<1x128x1xf32>
    %64 = vector.shape_cast %63 : vector<1x128x1xf32> to vector<128x1xf32>
    %65 = vector.broadcast %64 : vector<128x1xf32> to vector<128x256xf32>
    %66 = arith.addf %62, %65 : vector<128x256xf32>
    %67 = arith.negf %66 : vector<128x256xf32>
    %68 = math.exp %67 : vector<128x256xf32>
    %cst_44 = arith.constant 1.000000e+00 : f32
    %69 = vector.broadcast %cst_44 : f32 to vector<128x256xf32>
    %70 = arith.addf %69, %68 : vector<128x256xf32>
    %71 = arith.divf %69, %70 : vector<128x256xf32>
    %72 = arith.mulf %66, %71 : vector<128x256xf32>
    %73 = arith.truncf %72 : vector<128x256xf32> to vector<128x256xbf16>
    %cst_45 = arith.constant dense<0.000000e+00> : vector<3x256xf32>
    %74 = tpu.matmul %2, %73, %cst_45 {dimension_numbers = #tpu.dot_dimension_numbers<[1], [0], [0], [1], [0, 0, 1, 1], [], []>} : vector<3x128xbf16>, vector<128x256xbf16>, vector<3x256xf32> -> vector<3x256xf32>
    %c1_46 = arith.constant 1 : index
    %75 = memref.load %arg2[%c1_46] : memref<2xf32, #tpu.memory_space<smem>>
    %76 = vector.broadcast %75 : f32 to vector<3x256xf32>
    %77 = arith.mulf %76, %47 : vector<3x256xf32>
    %c1_47 = arith.constant 1 : index
    %78 = memref.load %arg3[%c1_47] : memref<2xf32, #tpu.memory_space<smem>>
    %79 = vector.broadcast %78 : f32 to vector<3x256xf32>
    %80 = arith.mulf %79, %74 : vector<3x256xf32>
    %81 = arith.addf %77, %80 : vector<3x256xf32>
    %cst_48 = arith.constant 5.000000e-01 : f32
    %82 = vector.broadcast %cst_48 : f32 to vector<3x256xf32>
    %83 = arith.mulf %81, %82 : vector<3x256xf32>
    %cst_49 = arith.constant 5.000000e-01 : f32
    %84 = vector.broadcast %cst_49 : f32 to vector<3x256xf32>
    %85 = arith.addf %83, %84 : vector<3x256xf32>
    %c1_50 = arith.constant 1 : index
    %c0_51 = arith.constant 0 : index
    %c0_52 = arith.constant 0 : index
    %86 = vector.load %arg11[%c1_50, %c0_51, %c0_52] : memref<2x3x256xf32, #tpu.memory_space<vmem>>, vector<1x3x256xf32>
    %87 = vector.shape_cast %86 : vector<1x3x256xf32> to vector<3x256xf32>
    %88 = vector.shape_cast %85 : vector<3x256xf32> to vector<1x3x256xf32>
    tpu.vector_store %arg11[%c1_50, %c0_51, %c0_52], %88 {strides = array<i32>} : memref<2x3x256xf32, #tpu.memory_space<vmem>>, vector<1x3x256xf32>,
    return
  }
  func.func @transform_0(%arg0: i32) -> i32 {
    %c0_i32 = arith.constant 0 : i32
    %c0_i32_0 = arith.constant 0 : i32
    return %c0_i32 : i32
  }
  func.func @transform_1(%arg0: i32) -> i32 {
    %c0_i32 = arith.constant 0 : i32
    %c0_i32_0 = arith.constant 0 : i32
    return %c0_i32 : i32
  }
  func.func @transform_2(%arg0: i32) -> i32 {
    %c0_i32 = arith.constant 0 : i32
    %c0_i32_0 = arith.constant 0 : i32
    return %c0_i32 : i32
  }
  func.func @transform_3(%arg0: i32) -> (i32, i32, i32) {
    %c0_i32 = arith.constant 0 : i32
    %c0_i32_0 = arith.constant 0 : i32
    %c0_i32_1 = arith.constant 0 : i32
    %c0_i32_2 = arith.constant 0 : i32
    return %c0_i32, %c0_i32_0, %c0_i32_1 : i32, i32, i32
  }
  func.func @transform_4(%arg0: i32) -> (i32, i32, i32) {
    %c0_i32 = arith.constant 0 : i32
    %c0_i32_0 = arith.constant 0 : i32
    %c0_i32_1 = arith.constant 0 : i32
    %c0_i32_2 = arith.constant 0 : i32
    return %c0_i32, %c0_i32_0, %c0_i32_1 : i32, i32, i32
  }
  func.func @transform_5(%arg0: i32) -> (i32, i32, i32) {
    %c0_i32 = arith.constant 0 : i32
    %c0_i32_0 = arith.constant 0 : i32
    %c0_i32_1 = arith.constant 0 : i32
    %c0_i32_2 = arith.constant 0 : i32
    return %c0_i32, %c0_i32_0, %c0_i32_1 : i32, i32, i32
  }
  func.func @transform_6(%arg0: i32) -> (i32, i32, i32) {
    %c0_i32 = arith.constant 0 : i32
    %c0_i32_0 = arith.constant 0 : i32
    %c0_i32_1 = arith.constant 0 : i32
    %c0_i32_2 = arith.constant 0 : i32
    return %c0_i32, %c0_i32_0, %c0_i32_1 : i32, i32, i32
  }
  func.func @transform_7(%arg0: i32) -> (i32, i32) {
    %c0_i32 = arith.constant 0 : i32
    %c0_i32_0 = arith.constant 0 : i32
    %c0_i32_1 = arith.constant 0 : i32
    return %c0_i32, %c0_i32_0 : i32, i32
  }
  func.func @transform_8(%arg0: i32) -> (i32, i32) {
    %c0_i32 = arith.constant 0 : i32
    %c0_i32_0 = arith.constant 0 : i32
    %c0_i32_1 = arith.constant 0 : i32
    return %c0_i32, %c0_i32_0 : i32, i32
  }
  func.func @transform_9(%arg0: i32) -> (i32, i32) {
    %c0_i32 = arith.constant 0 : i32
    %c0_i32_0 = arith.constant 0 : i32
    %c0_i32_1 = arith.constant 0 : i32
    return %c0_i32, %c0_i32_0 : i32, i32
  }
  func.func @transform_10(%arg0: i32) -> (i32, i32, i32) {
    %c0_i32 = arith.constant 0 : i32
    %c0_i32_0 = arith.constant 0 : i32
    %c0_i32_1 = arith.constant 0 : i32
    %c0_i32_2 = arith.constant 0 : i32
    return %c0_i32, %c0_i32_0, %c0_i32_1 : i32, i32, i32
  }
}

</mosaic_0001>

<bundles_post_ra>
// kernel: model_forward.2
= control target key start
LH: loop header
LB: loop body
LE: loop exit
PB: predicated region body
PF: predicated region fallthrough
CT: control target
= control target key end

     0   :  { %11 = vsyncpa [#allocation3], 0  ;;  %s1802_s21 = smov [#allocation2]   ;;  %s2275_s0 = inlined_call_operand.vmem [shape: bf16[2,64,16], index: 0, kind: input, shape index: {}]   ;;  %s2276_s1 = inlined_call_operand.hbm [shape: bf16[64,64], index: 1, kind: input, shape index: {}]   ;;  %s2277_s2 = inlined_call_operand.vmem [shape: bf16[64,64], index: 2, kind: input, shape index: {}]   ;;  %s2278_s3 = inlined_call_operand.vmem [shape: bf16[64,64], index: 3, kind: input, shape index: {}]   ;;  %s2279_s4 = inlined_call_operand.vmem [shape: bf16[64,64], index: 4, kind: input, shape index: {}]   ;;  %s2280_s5 = inlined_call_operand.vmem [shape: bf16[64,64], index: 5, kind: input, shape index: {}]   ;;  %s2281_s6 = inlined_call_operand.vmem [shape: f32[2,64,16], index: 6, kind: output, shape index: {}]  }
   0x1   :  { %s19_s22 = sshll.u32 %s1802_s21, 4  ;;  %s20_s22 = int_to_ptr.vmem [resolvable:$true] %s19_s22 }
   0x2   :  { %s1788_s23 = scalar_lea.vmem %s20_s22, 512  ;;  %p1793_p1 = scmp.lt.s32.totalorder %s20_s22, %s20_s22 }
   0x3   :  { %p1789_p0 = scmp.ne.s32.totalorder %s20_s22, %s1788_s23  ;;  %p1794_p2 = scmp.lt.s32.totalorder %s1788_s23, %s1788_s23 }
   0x5   :  { %p1795_p3 = por %p1794_p2, %p1793_p1 }
   0x7   :  { %p1796_p4 = pnand %p1795_p3, %p1789_p0 }
   0x9   :  { %1799 = shalt.err (!%p1796_p4)
}
   0xa   :  { %s1803_s24 = smov 64   ;;  %s1804_s25 = smov 4  }
   0xb   :  { %25 = dma.hbm_to_vmem [thread:$0]  %s2276_s1, 512, %s20_s22, [#allocation3], %s1803_s24, %s1803_s24, %s1804_s25  }
   0xc   :  { %1800 = dma.done.wait [#allocation3], 512  }
   0xd   :  { %1801 = vsyncadd [#allocation3], 4294966784  ;;  %v1624_v0 = vld [vmem:[%s2275_s0 + $0x18] sm:$0xff]   ;;  %v1625_v1 = vld [vmem:[%s2275_s0 + $0x10] sm:$0xff]   ;;  %vm130_vm0 = vcmask 523264   ;;  %vm740_vm1 = vcmask 130048  }
   0xe   :  { %1461 = vmatprep.subr.bf16.mxu0 %v1624_v0  ;;  %v1626_v2 = vld [vmem:[%s2275_s0 + $0x8] sm:$0xff]   ;;  %v1852_v3 = vld [vmem:[#allocation2] sm:$0xff]   ;;  %v1861_v6 = vld [vmem:[#allocation2 + $0x10] sm:$0xff]  }
   0xf   :  { %1462 = vmatpush3.bf16.msra.mxu0 %v1624_v0  ;;  %1469 = vmatprep.mubr.msk.bf16.mxu0 %vm130_vm0, %v1852_v3  ;;  %v1627_v4 = vld [vmem:[%s2275_s0] sm:$0xff]   ;;  %v1859_v5 = vld [vmem:[#allocation2 + $0x8] sm:$0xff]   ;;  %v1867_v7 = vld [vmem:[#allocation2 + $0x18] sm:$0xff]  }
  0x10   :  { %1463 = vmatprep.subr.bf16.mxu0 %v1625_v1  ;;  %v1874_v8 = vld [vmem:[%s2277_s2] sm:$0xff]   ;;  %v1905_v21 = vld [vmem:[%s2277_s2 + $0x8] sm:$0xff]   ;;  %v1910_v22 = vld [vmem:[%s2277_s2 + $0x10] sm:$0xff]  }
  0x11   :  { %1485 = vmatprep.mubr.msk.bf16.mxu1 %vm130_vm0, %v1874_v8  ;;  %v1919_v23 = vld [vmem:[%s2277_s2 + $0x18] sm:$0xff]   ;;  %v1926_v24 = vld [vmem:[%s2278_s3] sm:$0xff]  }
  0x13   :  { %1464 = vmatpush3.bf16.msra.mxu0 %v1625_v1 }
  0x14   :  { %1465 = vmatprep.subr.bf16.mxu0 %v1626_v2 }
  0x17   :  { %1466 = vmatpush3.bf16.msra.mxu0 %v1626_v2 }
  0x18   :  { %1467 = vmatprep.subr.bf16.mxu0 %v1627_v4 }
  0x1b   :  { %1468 = vmatpush3.bf16.msra.mxu0 %v1627_v4 }
  0x1e   :  { %1470 = vmatmul.mubr.msk.bf16.vlgmr.msra.gmra.mxu0 %vm130_vm0, %v1859_v5 }
  0x1f   :  { %1473 = vmatprep.mubr.msk.bf16.mxu0 %vm130_vm0, %v1861_v6 }
  0x26   :  { %1474 = vmatmul.mubr.msk.bf16.gmra.mxu0 %vm130_vm0, %v1867_v7 }
  0x27   :  { %1501 = vmatprep.mubr.msk.bf16.mxu0 %vm130_vm0, %v1926_v24 }
  0xde   :  { %v1878_v9 = vpop.f32.mrf.mxu0 }
  0xe0   :  { %v1880_v10 = vpop.f32.mrf.mxu0 }
  0xe2   :  { %v1882_v11 = vpop.f32.mrf.mxu0 }
  0xe3   :  { %v209_v19 = vpack.c.bf16 %v1882_v11, %v1878_v9 }
  0xe4   :  { %v1884_v12 = vpop.f32.mrf.mxu0 }
  0xe5   :  { %v208_v20 = vpack.c.bf16 %v1884_v12, %v1880_v10 }
  0xe6   :  { %v1886_v13 = vpop.f32.mrf.mxu0 }
  0xe8   :  { %v1888_v14 = vpop.f32.mrf.mxu0 }
  0xea   :  { %v1890_v15 = vpop.f32.mrf.mxu0 }
  0xeb   :  { %v211_v16 = vpack.c.bf16 %v1890_v15, %v1886_v13 }
  0xec   :  { %v1894_v17 = vpop.f32.mrf.mxu0 }
  0xed   :  { %v210_v18 = vpack.c.bf16 %v1894_v17, %v1888_v14  ;;  %1477 = vmatprep.subr.bf16.mxu1 %v211_v16 }
  0xee   :  { %1478 = vmatpush3.bf16.msra.mxu1 %v211_v16 }
  0xef   :  { %1479 = vmatprep.subr.bf16.mxu1 %v210_v18 }
  0xf2   :  { %1480 = vmatpush3.bf16.msra.mxu1 %v210_v18 }
  0xf3   :  { %1481 = vmatprep.subr.bf16.mxu1 %v209_v19 }
  0xf6   :  { %1482 = vmatpush3.bf16.msra.mxu1 %v209_v19 }
  0xf7   :  { %1483 = vmatprep.subr.bf16.mxu1 %v208_v20 }
  0xfa   :  { %1484 = vmatpush3.bf16.msra.mxu1 %v208_v20 }
  0xfd   :  { %1486 = vmatmul.mubr.msk.bf16.vlgmr.msra.gmra.mxu1 %vm130_vm0, %v1905_v21 }
  0xfe   :  { %1489 = vmatprep.mubr.msk.bf16.mxu1 %vm130_vm0, %v1910_v22 }
 0x105   :  { %1490 = vmatmul.mubr.msk.bf16.gmra.mxu1 %vm130_vm0, %v1919_v23 }
 0x1bd   :  { %v1930_v25 = vpop.f32.mrf.mxu1 }
 0x1be   :  { %v1287_v32 = vmul.f32 -1.442695, %v1930_v25 }
 0x1bf   :  { %v1932_v26 = vpop.f32.mrf.mxu1 }
 0x1c0   :  { %v1285_v39 = vmul.f32 -1.442695, %v1932_v26 }
 0x1c1   :  { %v1488_v27 = vpop.f32.mrf.mxu1 }
 0x1c2   :  { %v1288_v29 = vmul.f32 -1.442695, %v1488_v27 }
 0x1c3   :  { %v1934_v28 = vpop.f32.mrf.mxu1 }
 0x1c4   :  { %v1286_v35 = vmul.f32 -1.442695, %v1934_v28 }
 0x1c5   :  { %v1491_v30 = vpop.f32.mrf.mxu1 }
 0x1c6   :  { %v1291_v31 = vmul.f32 -1.442695, %v1491_v30 }
 0x1c7   :  { %v294_v33 = vpop.f32.mrf.mxu1 }
 0x1c8   :  { %1652 = vpow2.f32 %v1291_v31  ;;  %v1289_v34 = vmul.f32 -1.442695, %v294_v33 }
 0x1c9   :  { %1654 = vpow2.f32 %v1288_v29  ;;  %v1492_v36 = vpop.f32.mrf.mxu1 }
 0x1ca   :  { %1656 = vpow2.f32 %v1289_v34  ;;  %v1292_v37 = vmul.f32 -1.442695, %v1492_v36 }
 0x1cb   :  { %1658 = vpow2.f32 %v1287_v32  ;;  %v297_v38 = vpop.f32.mrf.mxu1 }
 0x1cc   :  { %1660 = vpow2.f32 %v1292_v37  ;;  %v1290_v40 = vmul.f32 -1.442695, %v297_v38 }
 0x1cd   :  { %1662 = vpow2.f32 %v1286_v35 }
 0x1ce   :  { %1664 = vpow2.f32 %v1290_v40 }
 0x1cf   :  { %1666 = vpow2.f32 %v1285_v39 }
 0x1d5   :  { %v1653_v41 = vpop.eup %1652 }
 0x1d6   :  { %v1655_v42 = vpop.eup %1654  ;;  %v339_v43 = vadd.f32 1.0, %v1653_v41 }
 0x1d7   :  { %v1657_v44 = vpop.eup %1656  ;;  %v336_v48 = vadd.f32 1.0, %v1655_v42 }
 0x1d8   :  { %v1659_v45 = vpop.eup %1658  ;;  %v337_v46 = vadd.f32 1.0, %v1657_v44  ;;  %1668 = vrcp.f32 %v339_v43 }
 0x1d9   :  { %v1661_v47 = vpop.eup %1660  ;;  %v335_v52 = vadd.f32 1.0, %v1659_v45 }
 0x1da   :  { %v1663_v49 = vpop.eup %1662  ;;  %v340_v50 = vadd.f32 1.0, %v1661_v47  ;;  %1670 = vrcp.f32 %v337_v46 }
 0x1db   :  { %v1665_v51 = vpop.eup %1664  ;;  %v334_v55 = vadd.f32 1.0, %v1663_v49  ;;  %v2008_v49 = vld [vmem:[%s2279_s4 + $0x8] sm:$0xff]  }
 0x1dc   :  { %1672 = vrcp.f32 %v340_v50  ;;  %v338_v53 = vadd.f32 1.0, %v1665_v51  ;;  %v1667_v54 = vpop.eup %1666  ;;  %v1646_v50 = vld [vmem:[%s2275_s0 + $0x28] sm:$0xff]   ;;  %v2028_v51 = vld [vmem:[%s2279_s4 + $0x18] sm:$0xff]  }
 0x1dd   :  { %1674 = vrcp.f32 %v336_v48  ;;  %v333_v56 = vadd.f32 1.0, %v1667_v54 }
 0x1de   :  { %1676 = vrcp.f32 %v338_v53  ;;  %v2048_v53 = vld [vmem:[%s2280_s5] sm:$0xff]  }
 0x1df   :  { %1678 = vrcp.f32 %v335_v52  ;;  %v1647_v52 = vld [vmem:[%s2275_s0 + $0x20] sm:$0xff]  }
 0x1e0   :  { %1680 = vrcp.f32 %v334_v55 }
 0x1e1   :  { %1682 = vrcp.f32 %v333_v56 }
 0x1e5   :  { %v1669_v57 = vpop.eup %1668 }
 0x1e6   :  { %v363_v61 = vmul.f32 %v1669_v57, %v1491_v30 }
 0x1e7   :  { %v1671_v58 = vpop.eup %1670 }
 0x1e8   :  { %v361_v0 = vmul.f32 %v1671_v58, %v294_v33 }
 0x1e9   :  { %v1673_v59 = vpop.eup %1672 }
 0x1ea   :  { %v1675_v60 = vpop.eup %1674  ;;  %v364_v62 = vmul.f32 %v1673_v59, %v1492_v36 }
 0x1eb   :  { %v1677_v63 = vpop.eup %1676  ;;  %v360_v16 = vmul.f32 %v1675_v60, %v1488_v27  ;;  %v1945_v27 = vld [vmem:[%s2278_s3 + $0x8] sm:$0xff]  }
 0x1ec   :  { %v368_v1 = vpack.c.bf16 %v364_v62, %v363_v61  ;;  %v362_v2 = vmul.f32 %v1677_v63, %v297_v38  ;;  %v1679_v4 = vpop.eup %1678 }
 0x1ed   :  { %v1681_v19 = vpop.eup %1680  ;;  %v359_v20 = vmul.f32 %v1679_v4, %v1930_v25  ;;  %v1950_v25 = vld [vmem:[%s2278_s3 + $0x10] sm:$0xff]  }
 0x1ee   :  { %v367_v18 = vpack.c.bf16 %v362_v2, %v361_v0  ;;  %1493 = vmatprep.subr.bf16.mxu0 %v368_v1  ;;  %v1683_v29 = vpop.eup %1682  ;;  %v358_v32 = vmul.f32 %v1681_v19, %v1934_v28  ;;  %v1966_v28 = vld [vmem:[%s2279_s4] sm:$0xff]  }
 0x1ef   :  { %1494 = vmatpush3.bf16.msra.mxu0 %v368_v1  ;;  %v366_v31 = vpack.c.bf16 %v360_v16, %v359_v20  ;;  %v357_v30 = vmul.f32 %v1683_v29, %v1932_v26  ;;  %v1959_v26 = vld [vmem:[%s2278_s3 + $0x18] sm:$0xff]   ;;  %1517 = vmatprep.mubr.msk.bf16.mxu1 %vm130_vm0, %v1966_v28 }
 0x1f0   :  { %1495 = vmatprep.subr.bf16.mxu0 %v367_v18 }
 0x1f1   :  { %v365_v33 = vpack.c.bf16 %v358_v32, %v357_v30 }
 0x1f3   :  { %1496 = vmatpush3.bf16.msra.mxu0 %v367_v18 }
 0x1f4   :  { %1497 = vmatprep.subr.bf16.mxu0 %v366_v31 }
 0x1f7   :  { %1498 = vmatpush3.bf16.msra.mxu0 %v366_v31 }
 0x1f8   :  { %1499 = vmatprep.subr.bf16.mxu0 %v365_v33 }
 0x1fb   :  { %1500 = vmatpush3.bf16.msra.mxu0 %v365_v33 }
 0x1fe   :  { %1502 = vmatmul.mubr.msk.bf16.vlgmr.msra.gmra.mxu0 %vm130_vm0, %v1945_v27 }
 0x1ff   :  { %1505 = vmatprep.mubr.msk.bf16.mxu0 %vm130_vm0, %v1950_v25 }
 0x206   :  { %1506 = vmatmul.mubr.msk.bf16.gmra.mxu0 %vm130_vm0, %v1959_v26 }
 0x207   :  { %1533 = vmatprep.mubr.msk.bf16.mxu0 %vm130_vm0, %v2048_v53 }
 0x2be   :  { %v1503_v34 = vpop.f32.mrf.mxu0 }
 0x2c0   :  { %v435_v35 = vpop.f32.mrf.mxu0 }
 0x2c2   :  { %v1504_v36 = vpop.f32.mrf.mxu0 }
 0x2c3   :  { %v1985_v47 = vadd.f32 %v1504_v36, %v1882_v11 }
 0x2c4   :  { %v438_v37 = vpop.f32.mrf.mxu0 }
 0x2c5   :  { %v1995_v48 = vadd.f32 %v438_v37, %v1884_v12  ;;  %v1645_v12 = vld [vmem:[%s2275_s0 + $0x30] sm:$0xff]  }
 0x2c6   :  { %v1507_v38 = vpop.f32.mrf.mxu0 }
 0x2c7   :  { %v1971_v41 = vadd.f32 %v1507_v38, %v1886_v13 }
 0x2c8   :  { %v451_v39 = vpop.f32.mrf.mxu0 }
 0x2c9   :  { %v1977_v44 = vadd.f32 %v451_v39, %v1888_v14 }
 0x2ca   :  { %v1508_v40 = vpop.f32.mrf.mxu0 }
 0x2cb   :  { %v1974_v42 = vadd.f32 %v1508_v40, %v1890_v15  ;;  %v1990_v15 = vadd.f32 %v1503_v34, %v1878_v9  ;;  %v1644_v9 = vld [vmem:[%s2275_s0 + $0x38] sm:$0xff]  }
 0x2cc   :  { %v454_v43 = vpop.f32.mrf.mxu0 }
 0x2cd   :  { %v477_v45 = vpack.c.bf16 %v1974_v42, %v1971_v41  ;;  %v1982_v46 = vadd.f32 %v454_v43, %v1894_v17  ;;  %v475_v14 = vpack.c.bf16 %v1985_v47, %v1990_v15  ;;  %v1998_v17 = vadd.f32 %v435_v35, %v1880_v10  ;;  %v2013_v10 = vld [vmem:[%s2279_s4 + $0x10] sm:$0xff]  }
 0x2cf   :  { %v476_v13 = vpack.c.bf16 %v1982_v46, %v1977_v44  ;;  %1509 = vmatprep.subr.bf16.mxu1 %v477_v45  ;;  %v474_v11 = vpack.c.bf16 %v1995_v48, %v1998_v17 }
 0x2d0   :  { %1510 = vmatpush3.bf16.msra.mxu1 %v477_v45 }
 0x2d1   :  { %1511 = vmatprep.subr.bf16.mxu1 %v476_v13 }
 0x2d4   :  { %1512 = vmatpush3.bf16.msra.mxu1 %v476_v13 }
 0x2d5   :  { %1513 = vmatprep.subr.bf16.mxu1 %v475_v14 }
 0x2d8   :  { %1514 = vmatpush3.bf16.msra.mxu1 %v475_v14 }
 0x2d9   :  { %1515 = vmatprep.subr.bf16.mxu1 %v474_v11 }
 0x2dc   :  { %1516 = vmatpush3.bf16.msra.mxu1 %v474_v11 }
 0x2dd   :  { %1541 = vmatprep.subr.bf16.mxu1 %v1644_v9 }
 0x2df   :  { %1518 = vmatmul.mubr.msk.bf16.vlgmr.msra.gmra.mxu1 %vm130_vm0, %v2008_v49 }
 0x2e0   :  { %1521 = vmatprep.mubr.msk.bf16.mxu1 %vm130_vm0, %v2013_v10  ;;  %1542 = vmatpush3.bf16.msra.mxu1 %v1644_v9 }
 0x2e1   :  { %1543 = vmatprep.subr.bf16.mxu1 %v1645_v12 }
 0x2e4   :  { %1544 = vmatpush3.bf16.msra.mxu1 %v1645_v12 }
 0x2e5   :  { %1545 = vmatprep.subr.bf16.mxu1 %v1646_v50 }
 0x2e7   :  { %1522 = vmatmul.mubr.msk.bf16.gmra.mxu1 %vm130_vm0, %v2028_v51 }
 0x2e8   :  { %1546 = vmatpush3.bf16.msra.mxu1 %v1646_v50  ;;  %1549 = vmatprep.mubr.msk.bf16.mxu1 %vm130_vm0, %v1852_v3 }
 0x2e9   :  { %1547 = vmatprep.subr.bf16.mxu1 %v1647_v52 }
 0x2ec   :  { %1548 = vmatpush3.bf16.msra.mxu1 %v1647_v52 }
 0x2ef   :  { %1550 = vmatmul.mubr.msk.bf16.vlgmr.msra.gmra.mxu1 %vm130_vm0, %v1859_v5 }
 0x2f0   :  { %1553 = vmatprep.mubr.msk.bf16.mxu1 %vm130_vm0, %v1861_v6 }
 0x2f7   :  { %1554 = vmatmul.mubr.msk.bf16.gmra.mxu1 %vm130_vm0, %v1867_v7 }
 0x2f8   :  { %1581 = vmatprep.mubr.msk.bf16.mxu1 %vm130_vm0, %v1926_v24 }
 0x39f   :  { %v2052_v3 = vpop.f32.mrf.mxu1 }
 0x3a0   :  { %v1311_v24 = vmul.f32 -1.442695, %v2052_v3 }
 0x3a1   :  { %v2054_v5 = vpop.f32.mrf.mxu1 }
 0x3a2   :  { %v1309_v63 = vmul.f32 -1.442695, %v2054_v5 }
 0x3a3   :  { %v1520_v54 = vpop.f32.mrf.mxu1 }
 0x3a4   :  { %v1312_v55 = vmul.f32 -1.442695, %v1520_v54 }
 0x3a5   :  { %v2056_v6 = vpop.f32.mrf.mxu1 }
 0x3a6   :  { %v1310_v59 = vmul.f32 -1.442695, %v2056_v6 }
 0x3a7   :  { %v1523_v7 = vpop.f32.mrf.mxu1 }
 0x3a8   :  { %v1315_v56 = vmul.f32 -1.442695, %v1523_v7 }
 0x3a9   :  { %v560_v57 = vpop.f32.mrf.mxu1 }
 0x3aa   :  { %1684 = vpow2.f32 %v1315_v56  ;;  %v1313_v58 = vmul.f32 -1.442695, %v560_v57 }
 0x3ab   :  { %1686 = vpow2.f32 %v1312_v55  ;;  %v1524_v60 = vpop.f32.mrf.mxu1 }
 0x3ac   :  { %1688 = vpow2.f32 %v1313_v58  ;;  %v1316_v61 = vmul.f32 -1.442695, %v1524_v60 }
 0x3ad   :  { %1690 = vpow2.f32 %v1311_v24  ;;  %v563_v62 = vpop.f32.mrf.mxu1 }
 0x3ae   :  { %1692 = vpow2.f32 %v1316_v61  ;;  %v1314_v0 = vmul.f32 -1.442695, %v563_v62 }
 0x3af   :  { %1694 = vpow2.f32 %v1310_v59  ;;  %v2061_v37 = vpop.f32.mrf.mxu1 }
 0x3b0   :  { %1696 = vpow2.f32 %v1314_v0 }
 0x3b1   :  { %1698 = vpow2.f32 %v1309_v63  ;;  %v2063_v39 = vpop.f32.mrf.mxu1 }
 0x3b3   :  { %v2065_v43 = vpop.f32.mrf.mxu1 }
 0x3b5   :  { %v2067_v50 = vpop.f32.mrf.mxu1 }
 0x3b7   :  { %v1685_v1 = vpop.eup %1684  ;;  %v2069_v63 = vpop.f32.mrf.mxu1 }
 0x3b8   :  { %v1687_v2 = vpop.eup %1686  ;;  %v605_v4 = vadd.f32 1.0, %v1685_v1 }
 0x3b9   :  { %v1689_v16 = vpop.eup %1688  ;;  %v602_v29 = vadd.f32 1.0, %v1687_v2  ;;  %v2073_v2 = vpop.f32.mrf.mxu1 }
 0x3ba   :  { %v1691_v18 = vpop.eup %1690  ;;  %v603_v19 = vadd.f32 1.0, %v1689_v16  ;;  %1700 = vrcp.f32 %v605_v4 }
 0x3bb   :  { %v1693_v20 = vpop.eup %1692  ;;  %v601_v33 = vadd.f32 1.0, %v1691_v18  ;;  %v848_v18 = vpack.c.bf16 %v2065_v43, %v2061_v37 }
 0x3bc   :  { %v1695_v31 = vpop.eup %1694  ;;  %v606_v32 = vadd.f32 1.0, %v1693_v20  ;;  %1702 = vrcp.f32 %v603_v19  ;;  %v2103_v19 = vld [vmem:[%s2280_s5 + $0x18] sm:$0xff]   ;;  %v847_v20 = vpack.c.bf16 %v2067_v50, %v2063_v39 }
 0x3bd   :  { %v1697_v30 = vpop.eup %1696  ;;  %v600_v36 = vadd.f32 1.0, %v1695_v31 }
 0x3be   :  { %1704 = vrcp.f32 %v606_v32  ;;  %v604_v34 = vadd.f32 1.0, %v1697_v30  ;;  %v1699_v35 = vpop.eup %1698 }
 0x3bf   :  { %1706 = vrcp.f32 %v602_v29  ;;  %v599_v38 = vadd.f32 1.0, %v1699_v35 }
 0x3c0   :  { %1708 = vrcp.f32 %v604_v34 }
 0x3c1   :  { %1710 = vrcp.f32 %v601_v33 }
 0x3c2   :  { %1712 = vrcp.f32 %v600_v36 }
 0x3c3   :  { %1714 = vrcp.f32 %v599_v38 }
 0x3c7   :  { %v1701_v40 = vpop.eup %1700 }
 0x3c8   :  { %v629_v11 = vmul.f32 %v1701_v40, %v1523_v7 }
 0x3c9   :  { %v1703_v45 = vpop.eup %1702 }
 0x3ca   :  { %v627_v52 = vmul.f32 %v1703_v45, %v560_v57 }
 0x3cb   :  { %v1705_v13 = vpop.eup %1704 }
 0x3cc   :  { %v1707_v14 = vpop.eup %1706  ;;  %v630_v9 = vmul.f32 %v1705_v13, %v1524_v60 }
 0x3cd   :  { %v1709_v12 = vpop.eup %1708  ;;  %v626_v58 = vmul.f32 %v1707_v14, %v1520_v54 }
 0x3ce   :  { %v634_v55 = vpack.c.bf16 %v630_v9, %v629_v11  ;;  %v628_v56 = vmul.f32 %v1709_v12, %v563_v62  ;;  %v1711_v24 = vpop.eup %1710  ;;  %v2076_v62 = vpop.f32.mrf.mxu1 }
 0x3cf   :  { %v1713_v61 = vpop.eup %1712  ;;  %v625_v0 = vmul.f32 %v1711_v24, %v2052_v3  ;;  %v850_v4 = vpack.c.bf16 %v2076_v62, %v2069_v63  ;;  %v2083_v3 = vld [vmem:[%s2280_s5 + $0x8] sm:$0xff]  }
 0x3d0   :  { %v633_v59 = vpack.c.bf16 %v628_v56, %v627_v52  ;;  %1525 = vmatprep.subr.bf16.mxu0 %v634_v55  ;;  %v1715_v1 = vpop.eup %1714  ;;  %v624_v60 = vmul.f32 %v1713_v61, %v2056_v6  ;;  %v2085_v6 = vpop.f32.mrf.mxu1 }
 0x3d1   :  { %1526 = vmatpush3.bf16.msra.mxu0 %v634_v55  ;;  %v632_v7 = vpack.c.bf16 %v626_v58, %v625_v0  ;;  %v623_v57 = vmul.f32 %v1715_v1, %v2054_v5  ;;  %v2090_v5 = vld [vmem:[%s2280_s5 + $0x10] sm:$0xff]   ;;  %v849_v16 = vpack.c.bf16 %v2085_v6, %v2073_v2 }
 0x3d2   :  { %1527 = vmatprep.subr.bf16.mxu0 %v633_v59 }
 0x3d3   :  { %v631_v54 = vpack.c.bf16 %v624_v60, %v623_v57 }
 0x3d5   :  { %1528 = vmatpush3.bf16.msra.mxu0 %v633_v59 }
 0x3d6   :  { %1529 = vmatprep.subr.bf16.mxu0 %v632_v7 }
 0x3d9   :  { %1530 = vmatpush3.bf16.msra.mxu0 %v632_v7 }
 0x3da   :  { %1531 = vmatprep.subr.bf16.mxu0 %v631_v54 }
 0x3dd   :  { %1532 = vmatpush3.bf16.msra.mxu0 %v631_v54 }
 0x3de   :  { %1557 = vmatprep.subr.bf16.mxu0 %v850_v4 }
 0x3e0   :  { %1534 = vmatmul.mubr.msk.bf16.vlgmr.msra.gmra.mxu0 %vm130_vm0, %v2083_v3 }
 0x3e1   :  { %1558 = vmatpush3.bf16.msra.mxu0 %v850_v4  ;;  %1537 = vmatprep.mubr.msk.bf16.mxu0 %vm130_vm0, %v2090_v5 }
 0x3e2   :  { %1559 = vmatprep.subr.bf16.mxu0 %v849_v16 }
 0x3e5   :  { %1560 = vmatpush3.bf16.msra.mxu0 %v849_v16 }
 0x3e6   :  { %1561 = vmatprep.subr.bf16.mxu0 %v848_v18 }
 0x3e8   :  { %1538 = vmatmul.mubr.msk.bf16.gmra.mxu0 %vm130_vm0, %v2103_v19 }
 0x3e9   :  { %1562 = vmatpush3.bf16.msra.mxu0 %v848_v18  ;;  %1565 = vmatprep.mubr.msk.bf16.mxu0 %vm130_vm0, %v1874_v8 }
 0x3ea   :  { %1563 = vmatprep.subr.bf16.mxu0 %v847_v20 }
 0x3ed   :  { %1564 = vmatpush3.bf16.msra.mxu0 %v847_v20 }
 0x3f0   :  { %1566 = vmatmul.mubr.msk.bf16.vlgmr.msra.gmra.mxu0 %vm130_vm0, %v1905_v21 }
 0x3f1   :  { %1569 = vmatprep.mubr.msk.bf16.mxu0 %vm130_vm0, %v1910_v22 }
 0x3f8   :  { %1570 = vmatmul.mubr.msk.bf16.gmra.mxu0 %vm130_vm0, %v1919_v23 }
 0x3f9   :  { %1597 = vmatprep.mubr.msk.bf16.mxu0 %vm130_vm0, %v1966_v28 }
 0x4a0   :  { %v1535_v29 = vpop.f32.mrf.mxu0 }
 0x4a1   :  { %v734_v31 = vadd.f32 %v1535_v29, %v1990_v15 }
 0x4a2   :  { %v701_v32 = vpop.f32.mrf.mxu0 }
 0x4a3   :  { %743 = vst.msk [vmem:[%s2281_s6 + $0x10] sm:$0xff] %vm740_vm1, %v734_v31  ;;  %v732_v8 = vadd.f32 %v701_v32, %v1998_v17 }
 0x4a4   :  { %v1536_v21 = vpop.f32.mrf.mxu0 }
 0x4a5   :  { %741 = vst.msk [vmem:[%s2281_s6] sm:$0xff] %vm740_vm1, %v732_v8  ;;  %v735_v22 = vadd.f32 %v1536_v21, %v1985_v47 }
 0x4a6   :  { %v704_v23 = vpop.f32.mrf.mxu0 }
 0x4a7   :  { %744 = vst.msk [vmem:[%s2281_s6 + $0x18] sm:$0xff] %vm740_vm1, %v735_v22  ;;  %v733_v28 = vadd.f32 %v704_v23, %v1995_v48 }
 0x4a8   :  { %v1539_v15 = vpop.f32.mrf.mxu0 }
 0x4a9   :  { %742 = vst.msk [vmem:[%s2281_s6 + $0x8] sm:$0xff] %vm740_vm1, %v733_v28  ;;  %v738_v17 = vadd.f32 %v1539_v15, %v1971_v41 }
 0x4aa   :  { %v717_v30 = vpop.f32.mrf.mxu0 }
 0x4ab   :  { %747 = vst.msk [vmem:[%s2281_s6 + $0x30] sm:$0xff] %vm740_vm1, %v738_v17  ;;  %v736_v47 = vadd.f32 %v717_v30, %v1977_v44 }
 0x4ac   :  { %v1540_v33 = vpop.f32.mrf.mxu0 }
 0x4ad   :  { %745 = vst.msk [vmem:[%s2281_s6 + $0x20] sm:$0xff] %vm740_vm1, %v736_v47  ;;  %v739_v48 = vadd.f32 %v1540_v33, %v1974_v42 }
 0x4ae   :  { %v720_v34 = vpop.f32.mrf.mxu0 }
 0x4af   :  { %748 = vst.msk [vmem:[%s2281_s6 + $0x38] sm:$0xff] %vm740_vm1, %v739_v48  ;;  %v737_v41 = vadd.f32 %v720_v34, %v1982_v46 }
 0x4b0   :  { %v2155_v35 = vpop.f32.mrf.mxu0 }
 0x4b1   :  { %746 = vst.msk [vmem:[%s2281_s6 + $0x28] sm:$0xff] %vm740_vm1, %v737_v41  ;;  %v1347_v13 = vmul.f32 -1.442695, %v2155_v35 }
 0x4b2   :  { %v2161_v44 = vpop.f32.mrf.mxu0 }
 0x4b3   :  { %v1345_v55 = vmul.f32 -1.442695, %v2161_v44 }
 0x4b4   :  { %v1568_v36 = vpop.f32.mrf.mxu0 }
 0x4b5   :  { %v1348_v42 = vmul.f32 -1.442695, %v1568_v36 }
 0x4b6   :  { %v2163_v38 = vpop.f32.mrf.mxu0 }
 0x4b7   :  { %v1346_v11 = vmul.f32 -1.442695, %v2163_v38 }
 0x4b8   :  { %v1571_v40 = vpop.f32.mrf.mxu0 }
 0x4b9   :  { %v1351_v45 = vmul.f32 -1.442695, %v1571_v40 }
 0x4ba   :  { %v901_v14 = vpop.f32.mrf.mxu0 }
 0x4bb   :  { %1716 = vpow2.f32 %v1351_v45  ;;  %v1349_v46 = vmul.f32 -1.442695, %v901_v14 }
 0x4bc   :  { %1718 = vpow2.f32 %v1348_v42  ;;  %v1572_v9 = vpop.f32.mrf.mxu0 }
 0x4bd   :  { %1720 = vpow2.f32 %v1349_v46  ;;  %v1352_v12 = vmul.f32 -1.442695, %v1572_v9 }
 0x4be   :  { %1722 = vpow2.f32 %v1347_v13  ;;  %v904_v52 = vpop.f32.mrf.mxu0 }
 0x4bf   :  { %1724 = vpow2.f32 %v1352_v12  ;;  %v1350_v56 = vmul.f32 -1.442695, %v904_v52 }
 0x4c0   :  { %1726 = vpow2.f32 %v1346_v11 }
 0x4c1   :  { %1728 = vpow2.f32 %v1350_v56 }
 0x4c2   :  { %1730 = vpow2.f32 %v1345_v55 }
 0x4c8   :  { %v1717_v24 = vpop.eup %1716 }
 0x4c9   :  { %v1719_v58 = vpop.eup %1718  ;;  %v946_v59 = vadd.f32 1.0, %v1717_v24 }
 0x4ca   :  { %v1721_v61 = vpop.eup %1720  ;;  %v943_v60 = vadd.f32 1.0, %v1719_v58 }
 0x4cb   :  { %v1723_v0 = vpop.eup %1722  ;;  %v944_v1 = vadd.f32 1.0, %v1721_v61  ;;  %1732 = vrcp.f32 %v946_v59 }
 0x4cc   :  { %v1725_v7 = vpop.eup %1724  ;;  %v942_v16 = vadd.f32 1.0, %v1723_v0 }
 0x4cd   :  { %v1727_v57 = vpop.eup %1726  ;;  %v947_v54 = vadd.f32 1.0, %v1725_v7  ;;  %1734 = vrcp.f32 %v944_v1 }
 0x4ce   :  { %v1729_v4 = vpop.eup %1728  ;;  %v941_v29 = vadd.f32 1.0, %v1727_v57 }
 0x4cf   :  { %1736 = vrcp.f32 %v947_v54  ;;  %v945_v18 = vadd.f32 1.0, %v1729_v4  ;;  %v1731_v20 = vpop.eup %1730 }
 0x4d0   :  { %1738 = vrcp.f32 %v943_v60  ;;  %v940_v31 = vadd.f32 1.0, %v1731_v20 }
 0x4d1   :  { %1740 = vrcp.f32 %v945_v18 }
 0x4d2   :  { %1742 = vrcp.f32 %v942_v16 }
 0x4d3   :  { %1744 = vrcp.f32 %v941_v29 }
 0x4d4   :  { %1746 = vrcp.f32 %v940_v31 }
 0x4d8   :  { %v1733_v32 = vpop.eup %1732 }
 0x4d9   :  { %v970_v23 = vmul.f32 %v1733_v32, %v1571_v40 }
 0x4da   :  { %v1735_v8 = vpop.eup %1734 }
 0x4db   :  { %v968_v17 = vmul.f32 %v1735_v8, %v901_v14 }
 0x4dc   :  { %v1737_v21 = vpop.eup %1736 }
 0x4dd   :  { %v1739_v22 = vpop.eup %1738  ;;  %v971_v28 = vmul.f32 %v1737_v21, %v1572_v9 }
 0x4de   :  { %v1741_v15 = vpop.eup %1740  ;;  %v967_v48 = vmul.f32 %v1739_v22, %v1568_v36 }
 0x4df   :  { %v975_v30 = vpack.c.bf16 %v971_v28, %v970_v23  ;;  %v969_v47 = vmul.f32 %v1741_v15, %v904_v52  ;;  %v1743_v33 = vpop.eup %1742 }
 0x4e0   :  { %v1745_v41 = vpop.eup %1744  ;;  %v966_v42 = vmul.f32 %v1743_v33, %v2155_v35 }
 0x4e1   :  { %v974_v34 = vpack.c.bf16 %v969_v47, %v968_v17  ;;  %1573 = vmatprep.subr.bf16.mxu1 %v975_v30  ;;  %v1747_v45 = vpop.eup %1746  ;;  %v965_v46 = vmul.f32 %v1745_v41, %v2163_v38 }
 0x4e2   :  { %1574 = vmatpush3.bf16.msra.mxu1 %v975_v30  ;;  %v973_v13 = vpack.c.bf16 %v967_v48, %v966_v42  ;;  %v964_v40 = vmul.f32 %v1747_v45, %v2161_v44 }
 0x4e3   :  { %1575 = vmatprep.subr.bf16.mxu1 %v974_v34 }
 0x4e4   :  { %v972_v14 = vpack.c.bf16 %v965_v46, %v964_v40 }
 0x4e6   :  { %1576 = vmatpush3.bf16.msra.mxu1 %v974_v34 }
 0x4e7   :  { %1577 = vmatprep.subr.bf16.mxu1 %v973_v13 }
 0x4ea   :  { %1578 = vmatpush3.bf16.msra.mxu1 %v973_v13 }
 0x4eb   :  { %1579 = vmatprep.subr.bf16.mxu1 %v972_v14 }
 0x4ee   :  { %1580 = vmatpush3.bf16.msra.mxu1 %v972_v14 }
 0x4f1   :  { %1582 = vmatmul.mubr.msk.bf16.vlgmr.msra.gmra.mxu1 %vm130_vm0, %v1945_v27 }
 0x4f2   :  { %1585 = vmatprep.mubr.msk.bf16.mxu1 %vm130_vm0, %v1950_v25 }
 0x4f9   :  { %1586 = vmatmul.mubr.msk.bf16.gmra.mxu1 %vm130_vm0, %v1959_v26 }
 0x4fa   :  { %1613 = vmatprep.mubr.msk.bf16.mxu1 %vm130_vm0, %v2048_v53 }
 0x5b1   :  { %v1583_v35 = vpop.f32.mrf.mxu1 }
 0x5b3   :  { %v1010_v36 = vpop.f32.mrf.mxu1 }
 0x5b5   :  { %v1584_v44 = vpop.f32.mrf.mxu1 }
 0x5b6   :  { %v2194_v56 = vadd.f32 %v1584_v44, %v2065_v43 }
 0x5b7   :  { %v1013_v38 = vpop.f32.mrf.mxu1 }
 0x5b8   :  { %v2204_v24 = vadd.f32 %v1013_v38, %v2067_v50 }
 0x5b9   :  { %v1587_v11 = vpop.f32.mrf.mxu1 }
 0x5ba   :  { %v2180_v52 = vadd.f32 %v1587_v11, %v2069_v63 }
 0x5bb   :  { %v1026_v9 = vpop.f32.mrf.mxu1 }
 0x5bc   :  { %v2186_v55 = vadd.f32 %v1026_v9, %v2073_v2 }
 0x5bd   :  { %v1588_v12 = vpop.f32.mrf.mxu1 }
 0x5be   :  { %v2183_v27 = vadd.f32 %v1588_v12, %v2076_v62  ;;  %v2199_v62 = vadd.f32 %v1583_v35, %v2061_v37 }
 0x5bf   :  { %v1029_v25 = vpop.f32.mrf.mxu1 }
 0x5c0   :  { %v1052_v26 = vpack.c.bf16 %v2183_v27, %v2180_v52  ;;  %v2191_v53 = vadd.f32 %v1029_v25, %v2085_v6  ;;  %v1050_v2 = vpack.c.bf16 %v2194_v56, %v2199_v62  ;;  %v2207_v6 = vadd.f32 %v1010_v36, %v2063_v39 }
 0x5c2   :  { %v1051_v63 = vpack.c.bf16 %v2191_v53, %v2186_v55  ;;  %1589 = vmatprep.subr.bf16.mxu0 %v1052_v26  ;;  %v1049_v43 = vpack.c.bf16 %v2204_v24, %v2207_v6 }
 0x5c3   :  { %1590 = vmatpush3.bf16.msra.mxu0 %v1052_v26 }
 0x5c4   :  { %1591 = vmatprep.subr.bf16.mxu0 %v1051_v63 }
 0x5c7   :  { %1592 = vmatpush3.bf16.msra.mxu0 %v1051_v63 }
 0x5c8   :  { %1593 = vmatprep.subr.bf16.mxu0 %v1050_v2 }
 0x5cb   :  { %1594 = vmatpush3.bf16.msra.mxu0 %v1050_v2 }
 0x5cc   :  { %1595 = vmatprep.subr.bf16.mxu0 %v1049_v43 }
 0x5cf   :  { %1596 = vmatpush3.bf16.msra.mxu0 %v1049_v43 }
 0x5d2   :  { %1598 = vmatmul.mubr.msk.bf16.vlgmr.msra.gmra.mxu0 %vm130_vm0, %v2008_v49 }
 0x5d3   :  { %1601 = vmatprep.mubr.msk.bf16.mxu0 %vm130_vm0, %v2013_v10 }
 0x5da   :  { %1602 = vmatmul.mubr.msk.bf16.gmra.mxu0 %vm130_vm0, %v2028_v51 }
 0x692   :  { %v2217_v37 = vpop.f32.mrf.mxu0 }
 0x693   :  { %v1363_v1 = vmul.f32 -1.442695, %v2217_v37 }
 0x694   :  { %v2219_v39 = vpop.f32.mrf.mxu0 }
 0x695   :  { %v1361_v54 = vmul.f32 -1.442695, %v2219_v39 }
 0x696   :  { %v1600_v50 = vpop.f32.mrf.mxu0 }
 0x697   :  { %v1364_v59 = vmul.f32 -1.442695, %v1600_v50 }
 0x698   :  { %v2221_v58 = vpop.f32.mrf.mxu0 }
 0x699   :  { %v1362_v10 = vmul.f32 -1.442695, %v2221_v58 }
 0x69a   :  { %v1603_v61 = vpop.f32.mrf.mxu0 }
 0x69b   :  { %v1367_v0 = vmul.f32 -1.442695, %v1603_v61 }
 0x69c   :  { %v1103_v7 = vpop.f32.mrf.mxu0 }
 0x69d   :  { %1748 = vpow2.f32 %v1367_v0  ;;  %v1365_v49 = vmul.f32 -1.442695, %v1103_v7 }
 0x69e   :  { %1750 = vpow2.f32 %v1364_v59  ;;  %v1604_v60 = vpop.f32.mrf.mxu0 }
 0x69f   :  { %1752 = vpow2.f32 %v1365_v49  ;;  %v1368_v51 = vmul.f32 -1.442695, %v1604_v60 }
 0x6a0   :  { %1754 = vpow2.f32 %v1363_v1  ;;  %v1106_v57 = vpop.f32.mrf.mxu0 }
 0x6a1   :  { %1756 = vpow2.f32 %v1368_v51  ;;  %v1366_v4 = vmul.f32 -1.442695, %v1106_v57 }
 0x6a2   :  { %1758 = vpow2.f32 %v1362_v10 }
 0x6a3   :  { %1760 = vpow2.f32 %v1366_v4 }
 0x6a4   :  { %1762 = vpow2.f32 %v1361_v54 }
 0x6aa   :  { %v1749_v16 = vpop.eup %1748 }
 0x6ab   :  { %v1751_v18 = vpop.eup %1750  ;;  %v1148_v20 = vadd.f32 1.0, %v1749_v16 }
 0x6ac   :  { %v1753_v29 = vpop.eup %1752  ;;  %v1145_v21 = vadd.f32 1.0, %v1751_v18 }
 0x6ad   :  { %v1755_v31 = vpop.eup %1754  ;;  %v1146_v32 = vadd.f32 1.0, %v1753_v29  ;;  %1764 = vrcp.f32 %v1148_v20 }
 0x6ae   :  { %v1757_v8 = vpop.eup %1756  ;;  %v1144_v15 = vadd.f32 1.0, %v1755_v31 }
 0x6af   :  { %v1759_v22 = vpop.eup %1758  ;;  %v1149_v23 = vadd.f32 1.0, %v1757_v8  ;;  %1766 = vrcp.f32 %v1146_v32 }
 0x6b0   :  { %v1761_v28 = vpop.eup %1760  ;;  %v1143_v47 = vadd.f32 1.0, %v1759_v22 }
 0x6b1   :  { %1768 = vrcp.f32 %v1149_v23  ;;  %v1147_v17 = vadd.f32 1.0, %v1761_v28  ;;  %v1763_v30 = vpop.eup %1762 }
 0x6b2   :  { %1770 = vrcp.f32 %v1145_v21  ;;  %v1142_v33 = vadd.f32 1.0, %v1763_v30 }
 0x6b3   :  { %1772 = vrcp.f32 %v1147_v17 }
 0x6b4   :  { %1774 = vrcp.f32 %v1144_v15 }
 0x6b5   :  { %1776 = vrcp.f32 %v1143_v47 }
 0x6b6   :  { %1778 = vrcp.f32 %v1142_v33 }
 0x6ba   :  { %v1765_v48 = vpop.eup %1764 }
 0x6bb   :  { %v1172_v45 = vmul.f32 %v1765_v48, %v1603_v61 }
 0x6bc   :  { %v1767_v34 = vpop.eup %1766 }
 0x6bd   :  { %v1170_v40 = vmul.f32 %v1767_v34, %v1103_v7 }
 0x6be   :  { %v1769_v41 = vpop.eup %1768 }
 0x6bf   :  { %v1771_v42 = vpop.eup %1770  ;;  %v1173_v13 = vmul.f32 %v1769_v41, %v1604_v60 }
 0x6c0   :  { %v1773_v46 = vpop.eup %1772  ;;  %v1169_v44 = vmul.f32 %v1771_v42, %v1600_v50 }
 0x6c1   :  { %v1177_v14 = vpack.c.bf16 %v1173_v13, %v1172_v45  ;;  %v1171_v35 = vmul.f32 %v1773_v46, %v1106_v57  ;;  %v1775_v36 = vpop.eup %1774 }
 0x6c2   :  { %v1777_v11 = vpop.eup %1776  ;;  %v1168_v9 = vmul.f32 %v1775_v36, %v2217_v37 }
 0x6c3   :  { %v1176_v38 = vpack.c.bf16 %v1171_v35, %v1170_v40  ;;  %1605 = vmatprep.subr.bf16.mxu1 %v1177_v14  ;;  %v1779_v12 = vpop.eup %1778  ;;  %v1167_v26 = vmul.f32 %v1777_v11, %v2221_v58 }
 0x6c4   :  { %1606 = vmatpush3.bf16.msra.mxu1 %v1177_v14  ;;  %v1175_v25 = vpack.c.bf16 %v1169_v44, %v1168_v9  ;;  %v1166_v63 = vmul.f32 %v1779_v12, %v2219_v39 }
 0x6c5   :  { %1607 = vmatprep.subr.bf16.mxu1 %v1176_v38 }
 0x6c6   :  { %v1174_v2 = vpack.c.bf16 %v1167_v26, %v1166_v63 }
 0x6c8   :  { %1608 = vmatpush3.bf16.msra.mxu1 %v1176_v38 }
 0x6c9   :  { %1609 = vmatprep.subr.bf16.mxu1 %v1175_v25 }
 0x6cc   :  { %1610 = vmatpush3.bf16.msra.mxu1 %v1175_v25 }
 0x6cd   :  { %1611 = vmatprep.subr.bf16.mxu1 %v1174_v2 }
 0x6d0   :  { %1612 = vmatpush3.bf16.msra.mxu1 %v1174_v2 }
 0x6d3   :  { %1614 = vmatmul.mubr.msk.bf16.vlgmr.msra.gmra.mxu1 %vm130_vm0, %v2083_v3 }
 0x6d4   :  { %1617 = vmatprep.mubr.msk.bf16.mxu1 %vm130_vm0, %v2090_v5 }
 0x6db   :  { %1618 = vmatmul.mubr.msk.bf16.gmra.mxu1 %vm130_vm0, %v2103_v19 }
 0x793   :  { %v1615_v43 = vpop.f32.mrf.mxu1 }
 0x794   :  { %v1245_v37 = vadd.f32 %v1615_v43, %v2199_v62 }
 0x795   :  { %v1212_v50 = vpop.f32.mrf.mxu1 }
 0x796   :  { %1375 = vst.msk [vmem:[%s2281_s6 + $0x50] sm:$0xff] %vm740_vm1, %v1245_v37  ;;  %v1243_v39 = vadd.f32 %v1212_v50, %v2207_v6 }
 0x797   :  { %v1616_v58 = vpop.f32.mrf.mxu1 }
 0x798   :  { %1373 = vst.msk [vmem:[%s2281_s6 + $0x40] sm:$0xff] %vm740_vm1, %v1243_v39  ;;  %v1246_v3 = vadd.f32 %v1616_v58, %v2194_v56 }
 0x799   :  { %v1215_v5 = vpop.f32.mrf.mxu1 }
 0x79a   :  { %1376 = vst.msk [vmem:[%s2281_s6 + $0x58] sm:$0xff] %vm740_vm1, %v1246_v3  ;;  %v1244_v19 = vadd.f32 %v1215_v5, %v2204_v24 }
 0x79b   :  { %v1619_v62 = vpop.f32.mrf.mxu1 }
 0x79c   :  { %1374 = vst.msk [vmem:[%s2281_s6 + $0x48] sm:$0xff] %vm740_vm1, %v1244_v19  ;;  %v1249_v6 = vadd.f32 %v1619_v62, %v2180_v52 }
 0x79d   :  { %v1228_v59 = vpop.f32.mrf.mxu1 }
 0x79e   :  { %1379 = vst.msk [vmem:[%s2281_s6 + $0x70] sm:$0xff] %vm740_vm1, %v1249_v6  ;;  %v1247_v56 = vadd.f32 %v1228_v59, %v2186_v55 }
 0x79f   :  { %v1620_v61 = vpop.f32.mrf.mxu1 }
 0x7a0   :  { %1377 = vst.msk [vmem:[%s2281_s6 + $0x60] sm:$0xff] %vm740_vm1, %v1247_v56  ;;  %v1250_v24 = vadd.f32 %v1620_v61, %v2183_v27 }
 0x7a1   :  { %v1231_v0 = vpop.f32.mrf.mxu1 }
 0x7a2   :  { %1380 = vst.msk [vmem:[%s2281_s6 + $0x78] sm:$0xff] %vm740_vm1, %v1250_v24  ;;  %v1248_v52 = vadd.f32 %v1231_v0, %v2191_v53 }
 0x7a4   :  { %1378 = vst.msk [vmem:[%s2281_s6 + $0x68] sm:$0xff] %vm740_vm1, %v1248_v52 }
 0x7a5   :  { %1264 = vsyncpa [#allocation3], 1 }

// kernel: model_forward.3
= control target key start
LH: loop header
LB: loop body
LE: loop exit
PB: predicated region body
PF: predicated region fallthrough
CT: control target
= control target key end

     0   :  { %15 = vsyncpa [#allocation3], 0  ;;  %s3735_s0 = inlined_call_operand.vmem [shape: f32[2], index: 0, kind: input, shape index: {}]   ;;  %s3736_s1 = inlined_call_operand.vmem [shape: f32[2], index: 1, kind: input, shape index: {}]   ;;  %s3737_s2 = inlined_call_operand.vmem [shape: f32[2], index: 2, kind: input, shape index: {}]   ;;  %s3738_s3 = inlined_call_operand.vmem [shape: f32[2,3,256], index: 3, kind: input, shape index: {}]   ;;  %s3739_s4 = inlined_call_operand.vmem [shape: bf16[2,64,256], index: 4, kind: input, shape index: {}]   ;;  %s3740_s5 = inlined_call_operand.vmem [shape: f32[2,128,1], index: 5, kind: input, shape index: {}]   ;;  %s3741_s6 = inlined_call_operand.vmem [shape: f32[2,128,1], index: 6, kind: input, shape index: {}]   ;;  %s3742_s7 = inlined_call_operand.vmem [shape: bf16[128,3], index: 7, kind: input, shape index: {}]   ;;  %s3743_s8 = inlined_call_operand.vmem [shape: bf16[128,64], index: 8, kind: input, shape index: {}]   ;;  %s3744_s9 = inlined_call_operand.vmem [shape: bf16[3,128], index: 9, kind: input, shape index: {}]   ;;  %s3745_s10 = inlined_call_operand.vmem [shape: f32[2,3,256], index: 10, kind: output, shape index: {}]  }
   0x1   :  { %16 = vsyncpa [#allocation5], 0  ;;  %s33_s15 = sshll.u32 %s3736_s1, 4  ;;  %s23_s18 = sshll.u32 %s3735_s0, 4  ;;  %s34_s15 = int_to_ptr.vmem [resolvable:$true] %s33_s15  ;;  %s24_s18 = int_to_ptr.vmem [resolvable:$true] %s23_s18 }
   0x2   :  { %s2450_s19 = scalar_lea.vmem %s34_s15, 16  ;;  %p2455_p1 = scmp.lt.s32.totalorder %s34_s15, %s34_s15 }
   0x3   :  { %p2451_p0 = scmp.ne.s32.totalorder %s34_s15, %s2450_s19  ;;  %p2456_p2 = scmp.lt.s32.totalorder %s2450_s19, %s2450_s19 }
   0x5   :  { %p2457_p3 = por %p2456_p2, %p2455_p1 }
   0x7   :  { %p2458_p4 = pnand %p2457_p3, %p2451_p0 }
   0x9   :  { %2461 = shalt.err (!%p2458_p4)
}
   0xa   :  { %s2490_s20 = smov [#allocation4]   ;;  %s2462_s21 = scalar_lea.vmem %s24_s18, 16 }
   0xb   :  { %36 = dma.vmem_to_smem %s34_s15, 16, %s2490_s20, [#allocation5]  }
   0xc   :  { %p2463_p5 = scmp.ne.s32.totalorder %s24_s18, %s2462_s21  ;;  %p2467_p6 = scmp.lt.s32.totalorder %s24_s18, %s24_s18 }
   0xd   :  { %p2468_p7 = scmp.lt.s32.totalorder %s2462_s21, %s2462_s21 }
   0xf   :  { %p2469_p8 = por %p2468_p7, %p2467_p6 }
  0x11   :  { %p2470_p9 = pnand %p2469_p8, %p2463_p5 }
  0x13   :  { %2473 = shalt.err (!%p2470_p9)
}
  0x14   :  { %s2491_s1 = smov [#allocation2]   ;;  %s43_s23 = sshll.u32 %s3737_s2, 4  ;;  %s44_s23 = int_to_ptr.vmem [resolvable:$true] %s43_s23 }
  0x15   :  { %26 = dma.vmem_to_smem %s24_s18, 16, %s2491_s1, [#allocation3]  }
  0x16   :  { %s2474_s24 = scalar_lea.vmem %s44_s23, 16  ;;  %p2479_p11 = scmp.lt.s32.totalorder %s44_s23, %s44_s23 }
  0x17   :  { %p2475_p10 = scmp.ne.s32.totalorder %s44_s23, %s2474_s24  ;;  %p2480_p12 = scmp.lt.s32.totalorder %s2474_s24, %s2474_s24 }
  0x19   :  { %p2481_p13 = por %p2480_p12, %p2479_p11 }
  0x1b   :  { %p2482_p0 = pnand %p2481_p13, %p2475_p10 }
  0x1d   :  { %2485 = shalt.err (!%p2482_p0)
}
  0x1e   :  { %s2492_s25 = smov [#allocation6]  }
  0x1f   :  { %46 = dma.vmem_to_smem %s44_s23, 16, %s2492_s25, [#allocation5]  }
  0x20   :  { %2486 = dma.done.wait [#allocation3], 16  }
  0x21   :  { %2487 = vsyncadd [#allocation3], 4294967280 }
  0x22   :  { %2488 = dma.done.wait [#allocation5], 32  }
  0x23   :  { %2489 = vsyncadd [#allocation5], 4294967264 }
  0x24   :  { %70 = sfence }
  0x25   :  { %v686_v0 = vld [vmem:[%s3741_s6 + $0x70] sm:$0xff]  ;;  %s2565_s29 = sld [smem:[#allocation2]]  ;;  %v3756_v2 = vmov 0   ;;  %v687_v6 = vld [vmem:[%s3741_s6 + $0x78] sm:$0xff]  ;;  %v2147_v9 = vld [vmem:[%s3739_s4 + $0x24] ss:$8 sps:$4 sm:$0xff]  }
  0x26   :  { %v542_v1 = vld [vmem:[%s3740_s5 + $0x70] sm:$0xff]  ;;  %2143 = vset.pattern.permute.xlu1 %v3756_v2  ;;  %2142 = vset.pattern.permute.xlu0 %v3756_v2  ;;  %v543_v7 = vld [vmem:[%s3740_s5 + $0x78] sm:$0xff]  ;;  %v2149_v10 = vld [vmem:[%s3739_s4 + $0x20] ss:$8 sps:$4 sm:$0xff]   ;;  %vm405_vm0 = vcmask 1040384   ;;  %vm406_vm1 = vcmask 1041408  }
  0x27   :  { %v558_v3 = vadd.f32 1.0, %v542_v1  ;;  %v2144_v4 = vld [vmem:[%s3739_s4 + $0x34] ss:$8 sps:$4 sm:$0xff]   ;;  %v2146_v5 = vld [vmem:[%s3739_s4 + $0x30] ss:$8 sps:$4 sm:$0xff]   ;;  %760 = vperm.xlu1 %2143, %v686_v0   ;;  %259 = vmatprep.mubr.bf16.mxu0 %v3756_v2  ;;  %v559_v8 = vadd.f32 1.0, %v543_v7 }
  0x28   :  { %235 = vmatprep.subr.bf16.mxu0 %v2144_v4  ;;  %v541_v11 = vld [vmem:[%s3740_s5 + $0x68] sm:$0xff]  ;;  %v540_v12 = vld [vmem:[%s3740_s5 + $0x60] sm:$0xff]  ;;  %447 = vmatprep.mubr.bf16.mxu1 %v3756_v2  ;;  %v2150_v13 = vld [vmem:[%s3739_s4 + $0x14] ss:$8 sps:$4 sm:$0xff]   ;;  %v2494_v18 = vmov 65535   ;;  %vm202_vm2 = vcmask 523264  }
  0x29   :  { %632 = vperm.xlu0 %2142, %v558_v3   ;;  %236 = vmatpush1.bf16.msra.mxu0 %v2146_v5  ;;  %v557_v14 = vadd.f32 1.0, %v541_v11  ;;  %v556_v16 = vadd.f32 1.0, %v540_v12  ;;  %v105_v17 = vld [vmem:[%s3738_s3] sm:$0x77]  ;;  %v407_v19 = vsel %vm405_vm0, 4294967295, %v2494_v18  ;;  %v685_v26 = vld [vmem:[%s3741_s6 + $0x68] sm:$0xff] }
  0x2a   :  { %237 = vmatprep.subr.bf16.mxu0 %v2147_v9  ;;  %v2152_v20 = vld [vmem:[%s3739_s4 + $0x10] ss:$8 sps:$4 sm:$0xff]   ;;  %v2153_v22 = vld [vmem:[%s3739_s4 + $0x4] ss:$8 sps:$4 sm:$0xff]   ;;  %v2608_v24 = vsel %vm406_vm1, %v407_v19, 0  ;;  %vm380_vm3 = vcmask 23552  }
  0x2b   :  { %765 = vperm.xlu1 %2143, %v687_v6   ;;  %v115_v15 = vstv %s2565_s29  ;;  %3776 = vst [vmem:[#allocation9_spill] sm:$0xff] %v2608_v24  ;;  %v684_v27 = vld [vmem:[%s3741_s6 + $0x60] sm:$0xff]  ;;  %v539_v28 = vld [vmem:[%s3740_s5 + $0x58] sm:$0xff]  ;;  %v538_v31 = vld [vmem:[%s3740_s5 + $0x50] sm:$0xff]  ;;  %s1081_s25 = sld [smem:[#allocation4]] }
  0x2c   :  { %v116_v21 = vmul.f32 %v115_v15, %v105_v17  ;;  %v2155_v30 = vld [vmem:[%s3739_s4] ss:$8 sps:$4 sm:$0xff]   ;;  %v555_v34 = vadd.f32 1.0, %v539_v28  ;;  %v554_v35 = vadd.f32 1.0, %v538_v31  ;;  %v683_v38 = vld [vmem:[%s3741_s6 + $0x58] sm:$0xff]  ;;  %v682_v40 = vld [vmem:[%s3741_s6 + $0x50] sm:$0xff] }
  0x2d   :  { %637 = vperm.xlu0 %2142, %v559_v8   ;;  %238 = vmatpush1.bf16.msra.mxu0 %v2149_v10  ;;  %v2630_v36 = vld [vmem:[%s3743_s8] sm:$0xff]   ;;  %v537_v39 = vld [vmem:[%s3740_s5 + $0x48] sm:$0xff]  ;;  %v535_v48 = vld [vmem:[%s3740_s5 + $0x38] sm:$0xff]  ;;  %s2135_s30 = sld [smem:[#allocation6 + $0x1]] }
  0x2e   :  { %239 = vmatprep.subr.bf16.mxu0 %v2150_v13  ;;  %v118_v23 = vcombine.high %v116_v21, %v116_v21  ;;  %v120_v25 = vpack.c.bf16 %v116_v21, %v116_v21  ;;  %v2157_v37 = vld [vmem:[%s3742_s7] sm:$0xff]   ;;  %v553_v42 = vadd.f32 1.0, %v537_v39  ;;  %v2655_v44 = vld [vmem:[%s3743_s8 + $0x8] sm:$0xff]   ;;  %v534_v49 = vld [vmem:[%s3740_s5 + $0x30] sm:$0xff]  ;;  %v551_v50 = vadd.f32 1.0, %v535_v48  ;;  %s2134_s11 = sld [smem:[#allocation4 + $0x1]] }
  0x2f   :  { %627 = vperm.xlu1 %2143, %v557_v14   ;;  %v536_v41 = vld [vmem:[%s3740_s5 + $0x40] sm:$0xff]  ;;  %v2159_v45 = vld [vmem:[%s3742_s7 + $0x8] sm:$0xff]   ;;  %v550_v51 = vadd.f32 1.0, %v534_v49  ;;  %v2680_v52 = vld [vmem:[%s3743_s8 + $0x10] sm:$0xff]  }
  0x30   :  { %v121_v29 = vpack.c.bf16 %v118_v23, %v118_v23  ;;  %v410_v32 = vand.u32 %v2608_v24, %v120_v25  ;;  %v552_v43 = vadd.f32 1.0, %v536_v41  ;;  %v681_v46 = vld [vmem:[%s3741_s6 + $0x48] sm:$0xff]  ;;  %v680_v47 = vld [vmem:[%s3741_s6 + $0x40] sm:$0xff]  ;;  %v2161_v53 = vld [vmem:[%s3742_s7 + $0x10] sm:$0xff]  }
  0x31   :  { %622 = vperm.xlu0 %2142, %v556_v16   ;;  %240 = vmatpush1.bf16.msra.mxu0 %v2152_v20  ;;  %v679_v54 = vld [vmem:[%s3741_s6 + $0x38] sm:$0xff]  ;;  %v533_v55 = vld [vmem:[%s3740_s5 + $0x28] sm:$0xff]  ;;  %v678_v56 = vld [vmem:[%s3741_s6 + $0x30] sm:$0xff] }
  0x32   :  { %241 = vmatprep.subr.bf16.mxu0 %v2153_v22  ;;  %v413_v33 = vand.u32 %v2608_v24, %v121_v29  ;;  %v532_v57 = vld [vmem:[%s3740_s5 + $0x20] sm:$0xff]  ;;  %v549_v58 = vadd.f32 1.0, %v533_v55  ;;  %v2705_v60 = vld [vmem:[%s3743_s8 + $0x18] sm:$0xff]   ;;  %v677_v62 = vld [vmem:[%s3741_s6 + $0x28] sm:$0xff] }
  0x33   :  { %755 = vperm.xlu1 %2143, %v685_v26   ;;  %v548_v59 = vadd.f32 1.0, %v532_v57  ;;  %v2163_v61 = vld [vmem:[%s3742_s7 + $0x18] sm:$0xff]   ;;  %v676_v63 = vld [vmem:[%s3741_s6 + $0x20] sm:$0xff]  ;;  %v530_v1 = vld [vmem:[%s3740_s5 + $0x10] sm:$0xff] }
  0x34   :  { %429 = vmatprep.subr.bf16.mxu1 %v413_v33  ;;  %v531_v0 = vld [vmem:[%s3740_s5 + $0x18] sm:$0xff]  ;;  %v546_v4 = vadd.f32 1.0, %v530_v1  ;;  %v2730_v5 = vld [vmem:[%s3743_s8 + $0x20] sm:$0xff]   ;;  %v529_v8 = vld [vmem:[%s3740_s5 + $0x8] sm:$0xff] }
  0x35   :  { %750 = vperm.xlu0 %2142, %v684_v27   ;;  %242 = vmatpush1.bf16.msra.mxu0 %v2155_v30  ;;  %v547_v3 = vadd.f32 1.0, %v531_v0  ;;  %v2165_v6 = vld [vmem:[%s3742_s7 + $0x20] sm:$0xff]   ;;  %v675_v7 = vld [vmem:[%s3741_s6 + $0x18] sm:$0xff]  ;;  %v674_v9 = vld [vmem:[%s3741_s6 + $0x10] sm:$0xff]  ;;  %v545_v11 = vadd.f32 1.0, %v529_v8 }
  0x36   :  { %430 = vmatpush1.bf16.msra.mxu1 %v410_v32  ;;  %v528_v10 = vld [vmem:[%s3740_s5] sm:$0xff]  ;;  %v2755_v13 = vld [vmem:[%s3743_s8 + $0x28] sm:$0xff]   ;;  %v2085_v16 = vld [vmem:[%s3740_s5 + $0xf8] sm:$0xff] }
  0x37   :  { %617 = vperm.xlu1 %2143, %v555_v34   ;;  %v544_v12 = vadd.f32 1.0, %v528_v10  ;;  %v2167_v14 = vld [vmem:[%s3742_s7 + $0x28] sm:$0xff]   ;;  %v672_v17 = vld [vmem:[%s3741_s6] sm:$0xff]  ;;  %v2084_v18 = vld [vmem:[%s3740_s5 + $0xf0] sm:$0xff]  ;;  %v1419_v19 = vadd.f32 1.0, %v2085_v16 }
  0x38   :  { %1980 = vmatmul.mubr.msk.bf16.vlgmr.msra.gmra.mxu0 %vm202_vm2, %v2630_v36  ;;  %v673_v15 = vld [vmem:[%s3741_s6 + $0x8] sm:$0xff]  ;;  %v1418_v20 = vadd.f32 1.0, %v2084_v18  ;;  %v2780_v21 = vld [vmem:[%s3743_s8 + $0x30] sm:$0xff]   ;;  %v2101_v23 = vld [vmem:[%s3741_s6 + $0xf8] sm:$0xff] }
  0x39   :  { %612 = vperm.xlu0 %2142, %v554_v35   ;;  %1996 = vmatmul.mubr.msk.bf16.vlgmr.msra.gmra.mxu1 %vm380_vm3, %v2157_v37  ;;  %3777 = vst [vmem:[#allocation10_spill] sm:$0xff] %v2780_v21  ;;  %v2169_v22 = vld [vmem:[%s3742_s7 + $0x30] sm:$0xff]   ;;  %v2083_v25 = vld [vmem:[%s3740_s5 + $0xe8] sm:$0xff]  ;;  %v2082_v27 = vld [vmem:[%s3740_s5 + $0xe0] sm:$0xff] }
  0x3a   :  { %269 = vmatprep.mubr.bf16.mxu0 %v3756_v2  ;;  %457 = vmatprep.mubr.bf16.mxu1 %v3756_v2  ;;  %v2100_v26 = vld [vmem:[%s3741_s6 + $0xf0] sm:$0xff]  ;;  %v1417_v28 = vadd.f32 1.0, %v2083_v25  ;;  %v1416_v29 = vadd.f32 1.0, %v2082_v27  ;;  %v2805_v30 = vld [vmem:[%s3743_s8 + $0x38] sm:$0xff]   ;;  %v2099_v32 = vld [vmem:[%s3741_s6 + $0xe8] sm:$0xff] }
  0x3b   :  { %745 = vperm.xlu1 %2143, %v683_v38   ;;  %3778 = vst [vmem:[#allocation11_spill] sm:$0xff] %v2805_v30  ;;  %v2171_v31 = vld [vmem:[%s3742_s7 + $0x38] sm:$0xff]   ;;  %v2098_v34 = vld [vmem:[%s3741_s6 + $0xe0] sm:$0xff]  ;;  %v2080_v35 = vld [vmem:[%s3740_s5 + $0xd0] sm:$0xff] }
  0x3c   :  { %v2081_v33 = vld [vmem:[%s3740_s5 + $0xd8] sm:$0xff]  ;;  %v1414_v38 = vadd.f32 1.0, %v2080_v35  ;;  %v2096_v41 = vld [vmem:[%s3741_s6 + $0xd0] sm:$0xff]  ;;  %v2094_v48 = vld [vmem:[%s3741_s6 + $0xc0] sm:$0xff] }
  0x3d   :  { %740 = vperm.xlu0 %2142, %v682_v40   ;;  %v1415_v37 = vadd.f32 1.0, %v2081_v33  ;;  %v2097_v39 = vld [vmem:[%s3741_s6 + $0xd8] sm:$0xff]  ;;  %v2079_v40 = vld [vmem:[%s3740_s5 + $0xc8] sm:$0xff]  ;;  %v2076_v49 = vld [vmem:[%s3740_s5 + $0xb0] sm:$0xff] }
  0x3e   :  { %v2092_v55 = vld [vmem:[%s3741_s6 + $0xb0] sm:$0xff]  ;;  %v2087_v10 = vld [vmem:[%s3741_s6 + $0x88] sm:$0xff] }
  0x3f   :  { %607 = vperm.xlu1 %2143, %v553_v42   ;;  %v2078_v42 = vld [vmem:[%s3740_s5 + $0xc0] sm:$0xff] }
  0x40   :  { %1981 = vmatmul.mubr.msk.bf16.gmra.mxu0 %vm202_vm2, %v2655_v44 }
  0x41   :  { %602 = vperm.xlu0 %2142, %v552_v43   ;;  %1997 = vmatmul.mubr.msk.bf16.gmra.mxu1 %vm380_vm3, %v2159_v45  ;;  %v1413_v43 = vadd.f32 1.0, %v2079_v40  ;;  %v1412_v45 = vadd.f32 1.0, %v2078_v42  ;;  %v2172_v40 = vld [vmem:[%s3739_s4 + $0x70] ss:$8 sps:$4 sm:$0xff]  }
  0x42   :  { %279 = vmatprep.mubr.bf16.mxu0 %v3756_v2  ;;  %467 = vmatprep.mubr.bf16.mxu1 %v3756_v2 }
  0x43   :  { %735 = vperm.xlu1 %2143, %v681_v46   ;;  %v2095_v46 = vld [vmem:[%s3741_s6 + $0xc8] sm:$0xff] }
  0x45   :  { %730 = vperm.xlu0 %2142, %v680_v47   ;;  %v2077_v47 = vld [vmem:[%s3740_s5 + $0xb8] sm:$0xff] }
  0x47   :  { %597 = vperm.xlu1 %2143, %v551_v50   ;;  %v1411_v50 = vadd.f32 1.0, %v2077_v47 }
  0x48   :  { %1982 = vmatmul.mubr.msk.bf16.gmra.mxu0 %vm202_vm2, %v2680_v52 }
  0x49   :  { %592 = vperm.xlu0 %2142, %v550_v51   ;;  %1998 = vmatmul.mubr.msk.bf16.gmra.mxu1 %vm380_vm3, %v2161_v53  ;;  %v1410_v51 = vadd.f32 1.0, %v2076_v49  ;;  %v2093_v53 = vld [vmem:[%s3741_s6 + $0xb8] sm:$0xff] }
  0x4a   :  { %289 = vmatprep.mubr.bf16.mxu0 %v3756_v2  ;;  %477 = vmatprep.mubr.bf16.mxu1 %v3756_v2 }
  0x4b   :  { %725 = vperm.xlu1 %2143, %v679_v54   ;;  %v2075_v54 = vld [vmem:[%s3740_s5 + $0xa8] sm:$0xff] }
  0x4c   :  { %v1409_v57 = vadd.f32 1.0, %v2075_v54 }
  0x4d   :  { %720 = vperm.xlu0 %2142, %v678_v56   ;;  %v2074_v56 = vld [vmem:[%s3740_s5 + $0xa0] sm:$0xff] }
  0x4f   :  { %587 = vperm.xlu1 %2143, %v549_v58   ;;  %v1408_v58 = vadd.f32 1.0, %v2074_v56 }
  0x50   :  { %1983 = vmatmul.mubr.msk.bf16.gmra.mxu0 %vm202_vm2, %v2705_v60 }
  0x51   :  { %582 = vperm.xlu0 %2142, %v548_v59   ;;  %1999 = vmatmul.mubr.msk.bf16.gmra.mxu1 %vm380_vm3, %v2163_v61  ;;  %v2091_v59 = vld [vmem:[%s3741_s6 + $0xa8] sm:$0xff]  ;;  %v2073_v61 = vld [vmem:[%s3740_s5 + $0x98] sm:$0xff] }
  0x52   :  { %299 = vmatprep.mubr.bf16.mxu0 %v3756_v2  ;;  %487 = vmatprep.mubr.bf16.mxu1 %v3756_v2  ;;  %v1407_v0 = vadd.f32 1.0, %v2073_v61 }
  0x53   :  { %715 = vperm.xlu1 %2143, %v677_v62   ;;  %v2090_v62 = vld [vmem:[%s3741_s6 + $0xa0] sm:$0xff] }
  0x55   :  { %710 = vperm.xlu0 %2142, %v676_v63   ;;  %v2072_v63 = vld [vmem:[%s3740_s5 + $0x90] sm:$0xff] }
  0x56   :  { %v1406_v1 = vadd.f32 1.0, %v2072_v63 }
  0x57   :  { %577 = vperm.xlu1 %2143, %v547_v3   ;;  %v2089_v3 = vld [vmem:[%s3741_s6 + $0x98] sm:$0xff] }
  0x58   :  { %1984 = vmatmul.mubr.msk.bf16.gmra.mxu0 %vm202_vm2, %v2730_v5 }
  0x59   :  { %572 = vperm.xlu0 %2142, %v546_v4   ;;  %2000 = vmatmul.mubr.msk.bf16.gmra.mxu1 %vm380_vm3, %v2165_v6  ;;  %v2071_v4 = vld [vmem:[%s3740_s5 + $0x88] sm:$0xff]  ;;  %v2088_v6 = vld [vmem:[%s3741_s6 + $0x90] sm:$0xff] }
  0x5a   :  { %309 = vmatprep.mubr.bf16.mxu0 %v3756_v2  ;;  %497 = vmatprep.mubr.bf16.mxu1 %v3756_v2  ;;  %v1405_v8 = vadd.f32 1.0, %v2071_v4  ;;  %v2180_v4 = vld [vmem:[%s3739_s4 + $0x54] ss:$8 sps:$4 sm:$0xff]  }
  0x5b   :  { %705 = vperm.xlu1 %2143, %v675_v7   ;;  %v2070_v7 = vld [vmem:[%s3740_s5 + $0x80] sm:$0xff] }
  0x5d   :  { %700 = vperm.xlu0 %2142, %v674_v9   ;;  %v1404_v9 = vadd.f32 1.0, %v2070_v7 }
  0x5f   :  { %567 = vperm.xlu1 %2143, %v545_v11   ;;  %v2086_v11 = vld [vmem:[%s3741_s6 + $0x80] sm:$0xff] }
  0x60   :  { %1985 = vmatmul.mubr.msk.bf16.gmra.mxu0 %vm202_vm2, %v2755_v13 }
  0x61   :  { %562 = vperm.xlu0 %2142, %v544_v12   ;;  %2001 = vmatmul.mubr.msk.bf16.gmra.mxu1 %vm380_vm3, %v2167_v14 }
  0x62   :  { %319 = vmatprep.mubr.bf16.mxu0 %v3756_v2  ;;  %507 = vmatprep.mubr.bf16.mxu1 %v3756_v2 }
  0x63   :  { %695 = vperm.xlu1 %2143, %v673_v15  }
  0x65   :  { %690 = vperm.xlu0 %2142, %v672_v17  }
  0x67   :  { %1497 = vperm.xlu1 %2143, %v1419_v19  }
  0x68   :  { %1986 = vmatmul.mubr.msk.bf16.gmra.mxu0 %vm202_vm2, %v2780_v21 }
  0x69   :  { %1492 = vperm.xlu0 %2142, %v1418_v20   ;;  %2002 = vmatmul.mubr.msk.bf16.gmra.mxu1 %vm380_vm3, %v2169_v22 }
  0x6a   :  { %329 = vmatprep.mubr.bf16.mxu0 %v3756_v2  ;;  %517 = vmatprep.mubr.bf16.mxu1 %v3756_v2 }
  0x6b   :  { %1626 = vperm.xlu1 %2143, %v2101_v23  }
  0x6d   :  { %1621 = vperm.xlu0 %2142, %v2100_v26  }
  0x6f   :  { %1487 = vperm.xlu1 %2143, %v1417_v28  }
  0x70   :  { %1987 = vmatmul.mubr.msk.bf16.gmra.mxu0 %vm202_vm2, %v2805_v30 }
  0x71   :  { %1482 = vperm.xlu0 %2142, %v1416_v29   ;;  %2003 = vmatmul.mubr.msk.bf16.gmra.mxu1 %vm380_vm3, %v2171_v31 }
  0x72   :  { %1187 = vmatprep.mubr.bf16.mxu0 %v3756_v2  ;;  %1072 = vmatprep.mubr.bf16.mxu1 %v3756_v2 }
  0x73   :  { %1616 = vperm.xlu1 %2143, %v2099_v32  }
  0x75   :  { %1611 = vperm.xlu0 %2142, %v2098_v34  }
  0x77   :  { %1477 = vperm.xlu1 %2143, %v1415_v37  }
  0x79   :  { %1472 = vperm.xlu0 %2142, %v1414_v38  }
  0x7b   :  { %1606 = vperm.xlu1 %2143, %v2097_v39  }
  0x7d   :  { %1601 = vperm.xlu0 %2142, %v2096_v41   ;;  %v2174_v41 = vld [vmem:[%s3739_s4 + $0x74] ss:$8 sps:$4 sm:$0xff]  }
  0x7e   :  { %1163 = vmatprep.subr.bf16.mxu0 %v2174_v41  ;;  %v2181_v41 = vld [vmem:[%s3739_s4 + $0x40] ss:$8 sps:$4 sm:$0xff]  }
  0x7f   :  { %1467 = vperm.xlu1 %2143, %v1413_v43   ;;  %1164 = vmatpush1.bf16.msra.mxu0 %v2172_v40 }
  0x81   :  { %1462 = vperm.xlu0 %2142, %v1412_v45  }
  0x83   :  { %1596 = vperm.xlu1 %2143, %v2095_v46  }
  0x85   :  { %1591 = vperm.xlu0 %2142, %v2094_v48  }
  0x87   :  { %1457 = vperm.xlu1 %2143, %v1411_v50  }
  0x89   :  { %1452 = vperm.xlu0 %2142, %v1410_v51  }
  0x8b   :  { %1586 = vperm.xlu1 %2143, %v2093_v53   ;;  %v2177_v53 = vld [vmem:[%s3739_s4 + $0x64] ss:$8 sps:$4 sm:$0xff]  }
  0x8c   :  { %1165 = vmatprep.subr.bf16.mxu0 %v2177_v53 }
  0x8d   :  { %1581 = vperm.xlu0 %2142, %v2092_v55  }
  0x8f   :  { %1447 = vperm.xlu1 %2143, %v1409_v57   ;;  %v2175_v57 = vld [vmem:[%s3739_s4 + $0x60] ss:$8 sps:$4 sm:$0xff]  }
  0x90   :  { %1166 = vmatpush1.bf16.msra.mxu0 %v2175_v57 }
  0x91   :  { %1442 = vperm.xlu0 %2142, %v1408_v58   ;;  %1167 = vmatprep.subr.bf16.mxu0 %v2180_v4 }
  0x93   :  { %1576 = vperm.xlu1 %2143, %v2091_v59  }
  0x95   :  { %1571 = vperm.xlu0 %2142, %v2090_v62  }
  0x97   :  { %1437 = vperm.xlu1 %2143, %v1407_v0  }
  0x99   :  { %1432 = vperm.xlu0 %2142, %v1406_v1  }
  0x9b   :  { %1566 = vperm.xlu1 %2143, %v2089_v3   ;;  %v2178_v3 = vld [vmem:[%s3739_s4 + $0x50] ss:$8 sps:$4 sm:$0xff]  }
  0x9c   :  { %1168 = vmatpush1.bf16.msra.mxu0 %v2178_v3 }
  0x9d   :  { %1561 = vperm.xlu0 %2142, %v2088_v6  }
  0x9f   :  { %1427 = vperm.xlu1 %2143, %v1405_v8  }
  0xa1   :  { %1422 = vperm.xlu0 %2142, %v1404_v9  }
  0xa2   :  { %v2895_v14 = vpop.permute.xlu1 %760 }
  0xa3   :  { %1556 = vperm.xlu1 %2143, %v2087_v10  }
  0xa4   :  { %v2893_v12 = vpop.permute.xlu0 %632 }
  0xa5   :  { %1551 = vperm.xlu0 %2142, %v2086_v11  }
  0xa6   :  { %v2899_v16 = vpop.permute.xlu1 %765 }
  0xa7   :  { %3779 = vst [vmem:[#allocation12_spill] sm:$0xff] %v2899_v16 }
  0xa8   :  { %v2897_v15 = vpop.permute.xlu0 %637 }
  0xaa   :  { %v2903_v18 = vpop.permute.xlu1 %627 }
  0xac   :  { %v2901_v17 = vpop.permute.xlu0 %622 }
  0xae   :  { %v2907_v20 = vpop.permute.xlu1 %755 }
  0xb0   :  { %v2905_v19 = vpop.permute.xlu0 %750 }
  0xb2   :  { %v2911_v23 = vpop.permute.xlu1 %617 }
  0xb4   :  { %v2909_v22 = vpop.permute.xlu0 %612 }
  0xb6   :  { %v2915_v26 = vpop.permute.xlu1 %745 }
  0xb7   :  { %3780 = vst [vmem:[#allocation13_spill] sm:$0xff] %v2915_v26 }
  0xb8   :  { %v2913_v25 = vpop.permute.xlu0 %740 }
  0xba   :  { %v2919_v28 = vpop.permute.xlu1 %607 }
  0xbc   :  { %v2917_v27 = vpop.permute.xlu0 %602 }
  0xbe   :  { %v2923_v31 = vpop.permute.xlu1 %735 }
  0xbf   :  { %3782 = vst [vmem:[#allocation15_spill] sm:$0xff] %v2923_v31 }
  0xc0   :  { %v2921_v29 = vpop.permute.xlu0 %730 }
  0xc1   :  { %3781 = vst [vmem:[#allocation14_spill] sm:$0xff] %v2921_v29 }
  0xc2   :  { %v2927_v33 = vpop.permute.xlu1 %597 }
  0xc4   :  { %v2925_v32 = vpop.permute.xlu0 %592 }
  0xc5   :  { %3783 = vst [vmem:[#allocation16_spill] sm:$0xff] %v2925_v32 }
  0xc6   :  { %v2931_v35 = vpop.permute.xlu1 %725 }
  0xc7   :  { %3785 = vst [vmem:[#allocation18_spill] sm:$0xff] %v2931_v35 }
  0xc8   :  { %v2929_v34 = vpop.permute.xlu0 %720 }
  0xc9   :  { %3784 = vst [vmem:[#allocation17_spill] sm:$0xff] %v2929_v34 }
  0xca   :  { %v2935_v38 = vpop.permute.xlu1 %587 }
  0xcc   :  { %v2933_v37 = vpop.permute.xlu0 %582 }
  0xce   :  { %v2945_v42 = vpop.permute.xlu1 %715 }
  0xd0   :  { %v2937_v39 = vpop.permute.xlu0 %710 }
  0xd2   :  { %v578_v45 = vpop.permute.xlu1 %577 }
  0xd4   :  { %v2947_v43 = vpop.permute.xlu0 %572 }
  0xd6   :  { %v2954_v54 = vpop.permute.xlu1 %705 }
  0xd8   :  { %v2949_v46 = vpop.permute.xlu0 %700 }
  0xda   :  { %v568_v8 = vpop.permute.xlu1 %567 }
  0xdc   :  { %v563_v59 = vpop.permute.xlu0 %562 }
  0xf8   :  { %v261_v47 = vpop.f32.mrf.mxu0 }
  0xf9   :  { %v449_v48 = vpop.f32.mrf.mxu1 }
  0xfa   :  { %v450_v49 = vadd.f32 %v449_v48, %v261_v47  ;;  %v263_v50 = vpop.f32.mrf.mxu0  ;;  %v2183_v47 = vld [vmem:[%s3739_s4 + $0x44] ss:$8 sps:$4 sm:$0xff]   ;;  %v691_v48 = vpop.permute.xlu0 %690  ;;  %s3274_s4 = sld [smem:[#allocation2 + $0x1]] }
  0xfb   :  { %v451_v51 = vpop.f32.mrf.mxu1  ;;  %1169 = vmatprep.subr.bf16.mxu0 %v2183_v47 }
  0xfc   :  { %v452_v55 = vadd.f32 %v451_v51, %v263_v50  ;;  %v265_v56 = vpop.f32.mrf.mxu0  ;;  %v640_v6 = vmul.f32 %v563_v59, %v450_v49  ;;  %1170 = vmatpush1.bf16.msra.mxu0 %v2181_v41 }
  0xfd   :  { %v453_v58 = vpop.f32.mrf.mxu1 }
  0xfe   :  { %v454_v61 = vadd.f32 %v453_v58, %v265_v56  ;;  %v267_v62 = vpop.f32.mrf.mxu0  ;;  %v641_v10 = vmul.f32 %v563_v59, %v452_v55  ;;  %v2971_v49 = vadd.f32 %v691_v48, %v640_v6 }
  0xff   :  { %v455_v63 = vpop.f32.mrf.mxu1  ;;  %2054 = vmatmul.mubr.msk.bf16.vlgmr.msra.gmra.mxu0 %vm202_vm2, %v2630_v36 }
 0x100   :  { %v456_v0 = vadd.f32 %v455_v63, %v267_v62  ;;  %v271_v1 = vpop.f32.mrf.mxu0  ;;  %v642_v53 = vmul.f32 %v568_v8, %v454_v61  ;;  %v2974_v59 = vadd.f32 %v691_v48, %v641_v10  ;;  %v696_v63 = vpop.permute.xlu1 %695  ;;  %v2004_v6 = vmul.f32 -1.442695, %v2971_v49  ;;  %1197 = vmatprep.mubr.bf16.mxu0 %v3756_v2 }
 0x101   :  { %v459_v7 = vpop.f32.mrf.mxu1 }
 0x102   :  { %v273_v9 = vpop.f32.mrf.mxu0  ;;  %v460_v11 = vadd.f32 %v459_v7, %v271_v1  ;;  %v643_v1 = vmul.f32 %v568_v8, %v456_v0  ;;  %v2980_v61 = vadd.f32 %v696_v63, %v642_v53  ;;  %v2005_v0 = vmul.f32 -1.442695, %v2974_v59 }
 0x103   :  { %v461_v40 = vpop.f32.mrf.mxu1 }
 0x104   :  { %v462_v50 = vadd.f32 %v461_v40, %v273_v9  ;;  %v275_v51 = vpop.f32.mrf.mxu0  ;;  %v644_v8 = vmul.f32 %v2947_v43, %v460_v11 }
 0x105   :  { %v463_v56 = vpop.f32.mrf.mxu1 }
 0x106   :  { %v645_v55 = vmul.f32 %v2947_v43, %v462_v50  ;;  %v464_v57 = vadd.f32 %v463_v56, %v275_v51  ;;  %v277_v58 = vpop.f32.mrf.mxu0  ;;  %v2988_v51 = vadd.f32 %v696_v63, %v643_v1  ;;  %v2999_v11 = vadd.f32 %v2949_v46, %v644_v8 }
 0x107   :  { %v465_v62 = vpop.f32.mrf.mxu1  ;;  %2055 = vmatmul.mubr.msk.bf16.gmra.mxu0 %vm202_vm2, %v2655_v44 }
 0x108   :  { %v2977_v3 = vadd.f32 %v2949_v46, %v645_v55  ;;  %v466_v4 = vadd.f32 %v465_v62, %v277_v58  ;;  %v281_v7 = vpop.f32.mrf.mxu0  ;;  %v646_v9 = vmul.f32 %v578_v45, %v464_v57  ;;  %3786 = vst [vmem:[#allocation19_spill] sm:$0xff] %v2988_v51  ;;  %3787 = vst [vmem:[#allocation20_spill] sm:$0xff] %v2999_v11  ;;  %v2007_v62 = vmul.f32 -1.442695, %v2988_v51 }
 0x109   :  { %v469_v40 = vpop.f32.mrf.mxu1  ;;  %1207 = vmatprep.mubr.bf16.mxu0 %v3756_v2 }
 0x10a   :  { %v2009_v47 = vmul.f32 -1.442695, %v2977_v3  ;;  %v647_v50 = vmul.f32 %v578_v45, %v466_v4  ;;  %v470_v10 = vadd.f32 %v469_v40, %v281_v7  ;;  %v283_v48 = vpop.f32.mrf.mxu0  ;;  %v2006_v45 = vmul.f32 -1.442695, %v2980_v61 }
 0x10b   :  { %v471_v41 = vpop.f32.mrf.mxu1  ;;  %v2995_v55 = vadd.f32 %v2954_v54, %v646_v9  ;;  %v2008_v7 = vmul.f32 -1.442695, %v2999_v11 }
 0x10c   :  { %2184 = vpow2.f32 %v2009_v47  ;;  %v2991_v53 = vadd.f32 %v2954_v54, %v647_v50  ;;  %v285_v56 = vpop.f32.mrf.mxu0  ;;  %v648_v32 = vmul.f32 %v2933_v37, %v470_v10 }
 0x10d   :  { %2186 = vpow2.f32 %v2004_v6  ;;  %v473_v36 = vpop.f32.mrf.mxu1  ;;  %v2010_v1 = vmul.f32 -1.442695, %v2995_v55 }
 0x10e   :  { %v2011_v57 = vmul.f32 -1.442695, %v2991_v53  ;;  %v287_v43 = vpop.f32.mrf.mxu0  ;;  %2188 = vpow2.f32 %v2005_v0  ;;  %v474_v31 = vadd.f32 %v473_v36, %v285_v56  ;;  %v3049_v10 = vadd.f32 %v2937_v39, %v648_v32 }
 0x10f   :  { %v475_v58 = vpop.f32.mrf.mxu1  ;;  %2056 = vmatmul.mubr.msk.bf16.gmra.mxu0 %vm202_vm2, %v2680_v52 }
 0x110   :  { %2190 = vpow2.f32 %v2011_v57  ;;  %v3002_v63 = vpop.f32.mrf.mxu0  ;;  %1217 = vmatprep.mubr.bf16.mxu0 %v3756_v2  ;;  %v476_v52 = vadd.f32 %v475_v58, %v287_v43  ;;  %3788 = vst [vmem:[#allocation21_spill] sm:$0xff] %v3049_v10  ;;  %v650_v56 = vmul.f32 %v2935_v38, %v474_v31  ;;  %v3789_v58 = vmov 0  }
 0x111   :  { %2192 = vpow2.f32 %v2006_v45  ;;  %v3005_v4 = vpop.f32.mrf.mxu1  ;;  %v2012_v31 = vmul.f32 -1.442695, %v3049_v10 }
 0x112   :  { %v3007_v54 = vpop.f32.mrf.mxu0  ;;  %2194 = vpow2.f32 %v2007_v62  ;;  %v651_v43 = vmul.f32 %v2935_v38, %v476_v52 }
 0x113   :  { %v3012_v46 = vpop.f32.mrf.mxu1  ;;  %2196 = vpow2.f32 %v2010_v1 }
 0x114   :  { %v3015_v6 = vpop.f32.mrf.mxu0  ;;  %2198 = vpow2.f32 %v2008_v7  ;;  %v472_v7 = vadd.f32 %v471_v41, %v283_v48  ;;  %v3064_v52 = vadd.f32 %v2945_v42, %v651_v43 }
 0x115   :  { %v3017_v9 = vpop.f32.mrf.mxu1 }
 0x116   :  { %v3019_v40 = vpop.f32.mrf.mxu0  ;;  %v649_v48 = vmul.f32 %v2933_v37, %v472_v7 }
 0x117   :  { %v3021_v47 = vpop.f32.mrf.mxu1  ;;  %2057 = vmatmul.mubr.msk.bf16.gmra.mxu0 %vm202_vm2, %v2705_v60 }
 0x118   :  { %v3023_v50 = vpop.f32.mrf.mxu0  ;;  %1227 = vmatprep.mubr.bf16.mxu0 %v3789_v58 }
 0x119   :  { %v2185_v44 = vpop.eup %2184  ;;  %v3025_v0 = vpop.f32.mrf.mxu1 }
 0x11a   :  { %v2187_v8 = vpop.eup %2186  ;;  %v901_v45 = vadd.f32 1.0, %v2185_v44  ;;  %v3027_v57 = vpop.f32.mrf.mxu0 }
 0x11b   :  { %v3031_v62 = vpop.f32.mrf.mxu1  ;;  %v2189_v1 = vpop.eup %2188  ;;  %v896_v30 = vadd.f32 1.0, %v2187_v8 }
 0x11c   :  { %v3034_v24 = vpop.f32.mrf.mxu0  ;;  %2200 = vrcp.f32 %v901_v45  ;;  %v897_v2 = vadd.f32 1.0, %v2189_v1 }
 0x11d   :  { %v2191_v34 = vpop.eup %2190  ;;  %v3036_v35 = vpop.f32.mrf.mxu1 }
 0x11e   :  { %v2193_v29 = vpop.eup %2192  ;;  %v903_v44 = vadd.f32 1.0, %v2191_v34  ;;  %v3039_v11 = vpop.f32.mrf.mxu0 }
 0x11f   :  { %v3041_v21 = vpop.f32.mrf.mxu1  ;;  %v2195_v8 = vpop.eup %2194  ;;  %v898_v16 = vadd.f32 1.0, %v2193_v29  ;;  %v3057_v29 = vadd.f32 %v2937_v39, %v649_v48  ;;  %2058 = vmatmul.mubr.msk.bf16.gmra.mxu0 %vm202_vm2, %v2730_v5  ;;  %v3080_v5 = vadd.f32 %v3012_v46, %v3007_v54  ;;  %v494_v46 = vadd.f32 %v3036_v35, %v3034_v24 }
 0x120   :  { %2202 = vrcp.f32 %v903_v44  ;;  %v3044_v41 = vpop.f32.mrf.mxu0  ;;  %v2197_v34 = vpop.eup %2196  ;;  %v3061_v44 = vadd.f32 %v2945_v42, %v650_v56  ;;  %v2015_v56 = vmul.f32 -1.442695, %v3064_v52  ;;  %v486_v42 = vadd.f32 %v3021_v47, %v3019_v40  ;;  %1237 = vmatprep.mubr.bf16.mxu0 %v3789_v58 }
 0x121   :  { %2204 = vrcp.f32 %v896_v30  ;;  %v3046_v26 = vpop.f32.mrf.mxu1  ;;  %v2199_v45 = vpop.eup %2198  ;;  %v899_v30 = vadd.f32 1.0, %v2195_v8  ;;  %v902_v32 = vadd.f32 1.0, %v2197_v34 }
 0x122   :  { %v313_v36 = vpop.f32.mrf.mxu0  ;;  %2206 = vrcp.f32 %v897_v2  ;;  %3790 = vst [vmem:[#allocation22_spill] sm:$0xff] %v3061_v44  ;;  %v900_v38 = vadd.f32 1.0, %v2199_v45  ;;  %v2013_v2 = vmul.f32 -1.442695, %v3057_v29  ;;  %v3076_v45 = vadd.f32 %v3005_v4, %v3002_v63 }
 0x123   :  { %v501_v37 = vpop.f32.mrf.mxu1  ;;  %2208 = vrcp.f32 %v898_v16  ;;  %v2014_v16 = vmul.f32 -1.442695, %v3061_v44  ;;  %v3095_v54 = vmul.f32 %v2927_v33, %v486_v42 }
 0x124   :  { %v315_v1 = vpop.f32.mrf.mxu0  ;;  %2210 = vrcp.f32 %v899_v30 }
 0x125   :  { %v503_v7 = vpop.f32.mrf.mxu1  ;;  %2212 = vrcp.f32 %v902_v32 }
 0x126   :  { %v317_v60 = vpop.f32.mrf.mxu0  ;;  %2214 = vpow2.f32 %v2012_v31  ;;  %v492_v31 = vadd.f32 %v3031_v62, %v3027_v57 }
 0x127   :  { %v505_v51 = vpop.f32.mrf.mxu1  ;;  %2216 = vrcp.f32 %v900_v38  ;;  %v502_v38 = vadd.f32 %v501_v37, %v313_v36  ;;  %2059 = vmatmul.mubr.msk.bf16.gmra.mxu0 %vm202_vm2, %v2755_v13 }
 0x128   :  { %v321_v39 = vpop.f32.mrf.mxu0  ;;  %2218 = vpow2.f32 %v2013_v2  ;;  %v3086_v2 = vadd.f32 %v3017_v9, %v3015_v6  ;;  %v496_v6 = vadd.f32 %v3041_v21, %v3039_v11  ;;  %v3112_v24 = vmul.f32 %v2917_v27, %v492_v31  ;;  %1247 = vmatprep.mubr.bf16.mxu0 %v3789_v58 }
 0x129   :  { %v509_v48 = vpop.f32.mrf.mxu1  ;;  %v2201_v34 = vpop.eup %2200  ;;  %2220 = vpow2.f32 %v2014_v16  ;;  %v661_v35 = vmul.f32 %v2909_v22, %v502_v38 }
 0x12a   :  { %v323_v8 = vpop.f32.mrf.mxu0  ;;  %v3089_v4 = vmul.f32 %v2201_v34, %v2977_v3  ;;  %2222 = vpow2.f32 %v2015_v56  ;;  %v504_v34 = vadd.f32 %v503_v7, %v315_v1  ;;  %v506_v56 = vadd.f32 %v505_v51, %v317_v60 }
 0x12b   :  { %v511_v43 = vpop.f32.mrf.mxu1 }
 0x12c   :  { %v325_v30 = vpop.f32.mrf.mxu0  ;;  %v512_v10 = vadd.f32 %v511_v43, %v323_v8  ;;  %v3109_v8 = vadd.f32 %v3025_v0, %v3023_v50  ;;  %v3121_v50 = vmul.f32 %v2919_v28, %v494_v46  ;;  %v510_v0 = vadd.f32 %v509_v48, %v321_v39 }
 0x12d   :  { %v2203_v32 = vpop.eup %2202  ;;  %v513_v40 = vpop.f32.mrf.mxu1  ;;  %v3139_v39 = vadd.f32 %v2913_v25, %v661_v35 }
 0x12e   :  { %v2205_v47 = vpop.eup %2204  ;;  %v327_v63 = vpop.f32.mrf.mxu0  ;;  %v3092_v44 = vmul.f32 %v2203_v32, %v2991_v53  ;;  %v665_v57 = vmul.f32 %v2901_v17, %v512_v10  ;;  %v514_v9 = vadd.f32 %v513_v40, %v325_v30  ;;  %v500_v10 = vadd.f32 %v3046_v26, %v3044_v41 }
 0x12f   :  { %v515_v62 = vpop.f32.mrf.mxu1  ;;  %v2207_v37 = vpop.eup %2206  ;;  %v3105_v16 = vmul.f32 %v2205_v47, %v2971_v49  ;;  %v659_v26 = vmul.f32 %v2919_v28, %v496_v6  ;;  %v662_v40 = vmul.f32 %v2911_v23, %v504_v34  ;;  %v663_v47 = vmul.f32 %v2911_v23, %v506_v56 }
 0x130   :  { %v516_v36 = vadd.f32 %v515_v62, %v327_v63  ;;  %v331_v3 = vpop.f32.mrf.mxu0  ;;  %v1027_v53 = vpack.c.bf16 %v3092_v44, %v3089_v4  ;;  %v2209_v11 = vpop.eup %2208  ;;  %v3124_v43 = vadd.f32 %v2905_v19, %v665_v57  ;;  %v666_v51 = vmul.f32 %v2903_v18, %v514_v9  ;;  %v3309_v44 = vld [vmem:[%s3744_s9] sm:$0x3] }
 0x131   :  { %v519_v21 = vpop.f32.mrf.mxu1  ;;  %v3133_v13 = vmul.f32 %v2207_v37, %v2974_v59  ;;  %v2211_v7 = vpop.eup %2210  ;;  %v3136_v60 = vmul.f32 %v2209_v11, %v2980_v61  ;;  %v664_v61 = vmul.f32 %v2901_v17, %v510_v0 }
 0x132   :  { %v667_v42 = vmul.f32 %v2903_v18, %v516_v36  ;;  %v333_v49 = vpop.f32.mrf.mxu0  ;;  %v520_v30 = vadd.f32 %v519_v21, %v331_v3  ;;  %v2213_v38 = vpop.eup %2212  ;;  %v660_v18 = vmul.f32 %v2909_v22, %v500_v10  ;;  %v2029_v57 = vmul.f32 -1.442695, %v3124_v43 }
 0x133   :  { %v521_v32 = vpop.f32.mrf.mxu1  ;;  %v3145_v46 = vpop.eup %2214  ;;  %v3154_v22 = vadd.f32 %v2907_v20, %v666_v51  ;;  %v3161_v17 = vmul.f32 %v2213_v38, %v2995_v55  ;;  %v2025_v21 = vmul.f32 -1.442695, %v3139_v39  ;;  %v3794_v55 = vld [vmem:[#allocation10_spill] sm:$0xff]  ;;  %v3186_v51 = vadd.f32 %v2905_v19, %v664_v61 }
 0x134   :  { %v3130_v41 = vadd.f32 %v2907_v20, %v667_v42  ;;  %v335_v1 = vpop.f32.mrf.mxu0  ;;  %v668_v48 = vmul.f32 %v2893_v12, %v520_v30  ;;  %v522_v31 = vadd.f32 %v521_v32, %v333_v49  ;;  %v2217_v36 = vpop.eup %2216  ;;  %v3792_v20 = vld [vmem:[#allocation13_spill] sm:$0xff]  ;;  %v3793_v42 = vld [vmem:[#allocation12_spill] sm:$0xff]  ;;  %2060 = vmatmul.mubr.msk.bf16.gmra.mxu0 %vm202_vm2, %v3794_v55  ;;  %2224 = vpow2.f32 %v2029_v57 }
 0x135   :  { %v523_v28 = vpop.f32.mrf.mxu1  ;;  %v3158_v35 = vpop.eup %2218  ;;  %v3171_v34 = vadd.f32 %v3792_v20, %v663_v47  ;;  %1257 = vmatprep.mubr.bf16.mxu0 %v3789_v58  ;;  %v3796_v47 = vld [vmem:[#allocation15_spill] sm:$0xff]  ;;  %v656_v61 = vmul.f32 %v2917_v27, %v3109_v8  ;;  %v3213_v57 = vadd.f32 %v2913_v25, %v660_v18  ;;  %v3799_v8 = vld [vmem:[#allocation18_spill] sm:$0xff] }
 0x136   :  { %v524_v59 = vadd.f32 %v523_v28, %v335_v1  ;;  %v337_v63 = vpop.f32.mrf.mxu0  ;;  %v3150_v62 = vadd.f32 %v2895_v14, %v668_v48  ;;  %v669_v6 = vmul.f32 %v2893_v12, %v522_v31  ;;  %v2031_v23 = vmul.f32 -1.442695, %v3130_v41  ;;  %v3791_v12 = vld [vmem:[#allocation19_spill] sm:$0xff]  ;;  %v3180_v30 = vpop.eup %2220 }
 0x137   :  { %v525_v9 = vpop.f32.mrf.mxu1  ;;  %v3168_v10 = vmul.f32 %v2211_v7, %v3791_v12  ;;  %v3190_v7 = vpop.eup %2222  ;;  %v2030_v48 = vmul.f32 -1.442695, %v3154_v22  ;;  %v3227_v25 = vadd.f32 %v3796_v47, %v3121_v50  ;;  %v3801_v50 = vld [vmem:[#allocation17_spill] sm:$0xff]  ;;  %3805 = vst [vmem:[#allocation19_spill] sm:$0xff] %v3309_v44 }
 0x138   :  { %v670_v3 = vmul.f32 %v2897_v15, %v524_v59  ;;  %v526_v37 = vadd.f32 %v525_v9, %v337_v63  ;;  %v3165_v11 = vadd.f32 %v2895_v14, %v669_v6  ;;  %v2032_v56 = vmul.f32 -1.442695, %v3150_v62  ;;  %v3795_v14 = vld [vmem:[#allocation20_spill] sm:$0xff] }
 0x139   :  { %v3183_v32 = vmul.f32 %v2217_v36, %v3795_v14  ;;  %2226 = vpow2.f32 %v2031_v23  ;;  %v1025_v38 = vpack.c.bf16 %v3168_v10, %v3133_v13  ;;  %v3205_v59 = vadd.f32 %v3796_v47, %v659_v26  ;;  %v3797_v9 = vld [vmem:[#allocation16_spill] sm:$0xff]  ;;  %v3798_v26 = vld [vmem:[#allocation14_spill] sm:$0xff]  ;;  %v2442_v13 = vld [vmem:[%s3742_s7 + $0x10] sm:$0xff]  }
 0x13a   :  { %v3175_v49 = vadd.f32 %v3793_v42, %v670_v3  ;;  %v671_v0 = vmul.f32 %v2897_v15, %v526_v37  ;;  %v2033_v1 = vmul.f32 -1.442695, %v3165_v11  ;;  %v3193_v15 = vadd.f32 %v3792_v20, %v662_v40  ;;  %v2445_v10 = vld [vmem:[%s3742_s7 + $0x28] sm:$0xff]  }
 0x13b   :  { %2228 = vpow2.f32 %v2025_v21  ;;  %v1026_v28 = vpack.c.bf16 %v3161_v17, %v3183_v32  ;;  %v2027_v40 = vmul.f32 -1.442695, %v3171_v34  ;;  %v1024_v63 = vpack.c.bf16 %v3136_v60, %v3105_v16  ;;  %v3800_v21 = vld [vmem:[#allocation11_spill] sm:$0xff]  ;;  %v2441_v16 = vld [vmem:[%s3742_s7 + $0x8] sm:$0xff]   ;;  %v2443_v60 = vld [vmem:[%s3742_s7 + $0x18] sm:$0xff]  }
 0x13c   :  { %v3197_v31 = vadd.f32 %v3793_v42, %v671_v0  ;;  %v2034_v19 = vmul.f32 -1.442695, %v3175_v49  ;;  %2230 = vpow2.f32 %v2032_v56  ;;  %v2028_v6 = vmul.f32 -1.442695, %v3186_v51  ;;  %2061 = vmatmul.mubr.msk.bf16.gmra.mxu0 %vm202_vm2, %v3800_v21  ;;  %v2444_v17 = vld [vmem:[%s3742_s7 + $0x20] sm:$0xff]   ;;  %v2446_v32 = vld [vmem:[%s3742_s7 + $0x30] sm:$0xff]  }
 0x13d   :  { %2232 = vpow2.f32 %v2033_v1  ;;  %v653_v36 = vmul.f32 %v3797_v9, %v3080_v5  ;;  %v3220_v23 = vadd.f32 %v3798_v26, %v3112_v24  ;;  %v654_v37 = vmul.f32 %v2927_v33, %v3086_v2 }
 0x13e   :  { %2234 = vpow2.f32 %v2030_v48  ;;  %v2035_v3 = vmul.f32 -1.442695, %v3197_v31  ;;  %v2026_v27 = vmul.f32 -1.442695, %v3193_v15  ;;  %v652_v5 = vmul.f32 %v3797_v9, %v3076_v45 }
 0x13f   :  { %2236 = vpow2.f32 %v2034_v19  ;;  %v3234_v24 = vadd.f32 %v3799_v8, %v3095_v54  ;;  %v2023_v18 = vmul.f32 -1.442695, %v3205_v59  ;;  %v3240_v33 = vadd.f32 %v3798_v26, %v656_v61 }
 0x140   :  { %2238 = vpow2.f32 %v2027_v40  ;;  %v2024_v2 = vmul.f32 -1.442695, %v3213_v57  ;;  %v3244_v12 = vadd.f32 %v3801_v50, %v653_v36  ;;  %v2021_v45 = vmul.f32 -1.442695, %v3220_v23 }
 0x141   :  { %2240 = vpow2.f32 %v2028_v6  ;;  %v3248_v54 = vadd.f32 %v3799_v8, %v654_v37  ;;  %v2022_v20 = vmul.f32 -1.442695, %v3227_v25  ;;  %v3252_v56 = vadd.f32 %v3801_v50, %v652_v5  ;;  %v2225_v55 = vpop.eup %2224 }
 0x142   :  { %2242 = vpow2.f32 %v2035_v3  ;;  %v2019_v42 = vmul.f32 -1.442695, %v3234_v24  ;;  %v2020_v0 = vmul.f32 -1.442695, %v3240_v33  ;;  %v2017_v14 = vmul.f32 -1.442695, %v3244_v12 }
 0x143   :  { %2244 = vpow2.f32 %v2026_v27  ;;  %v2018_v48 = vmul.f32 -1.442695, %v3248_v54  ;;  %v2016_v47 = vmul.f32 -1.442695, %v3252_v56  ;;  %v921_v61 = vadd.f32 1.0, %v2225_v55 }
 0x144   :  { %2246 = vpow2.f32 %v2023_v18 }
 0x145   :  { %2248 = vpow2.f32 %v2024_v2 }
 0x146   :  { %2250 = vpow2.f32 %v2021_v45  ;;  %v2227_v1 = vpop.eup %2226 }
 0x147   :  { %2252 = vpow2.f32 %v2022_v20  ;;  %v923_v9 = vadd.f32 1.0, %v2227_v1 }
 0x148   :  { %v2229_v19 = vpop.eup %2228  ;;  %2254 = vpow2.f32 %v2019_v42 }
 0x149   :  { %v2231_v40 = vpop.eup %2230  ;;  %2256 = vpow2.f32 %v2020_v0  ;;  %v917_v55 = vadd.f32 1.0, %v2229_v19 }
 0x14a   :  { %v2233_v6 = vpop.eup %2232  ;;  %2258 = vpow2.f32 %v2017_v14  ;;  %v924_v27 = vadd.f32 1.0, %v2231_v40 }
 0x14b   :  { %v2235_v36 = vpop.eup %2234  ;;  %2260 = vpow2.f32 %v2018_v48  ;;  %v925_v3 = vadd.f32 1.0, %v2233_v6 }
 0x14c   :  { %v2237_v26 = vpop.eup %2236  ;;  %2262 = vpow2.f32 %v2016_v47  ;;  %v922_v21 = vadd.f32 1.0, %v2235_v36 }
 0x14d   :  { %v2239_v37 = vpop.eup %2238  ;;  %2264 = vrcp.f32 %v921_v61  ;;  %v926_v5 = vadd.f32 1.0, %v2237_v26 }
 0x14e   :  { %v2241_v8 = vpop.eup %2240  ;;  %2266 = vrcp.f32 %v923_v9  ;;  %v919_v50 = vadd.f32 1.0, %v2239_v37 }
 0x14f   :  { %v2243_v18 = vpop.eup %2242  ;;  %2268 = vrcp.f32 %v926_v5  ;;  %v920_v42 = vadd.f32 1.0, %v2241_v8 }
 0x150   :  { %v2245_v2 = vpop.eup %2244  ;;  %2270 = vrcp.f32 %v925_v3  ;;  %v927_v45 = vadd.f32 1.0, %v2243_v18 }
 0x151   :  { %v2247_v20 = vpop.eup %2246  ;;  %2272 = vrcp.f32 %v924_v27  ;;  %v918_v1 = vadd.f32 1.0, %v2245_v2 }
 0x152   :  { %v2249_v0 = vpop.eup %2248  ;;  %2274 = vrcp.f32 %v927_v45  ;;  %v915_v47 = vadd.f32 1.0, %v2247_v20 }
 0x153   :  { %v2251_v14 = vpop.eup %2250  ;;  %2276 = vrcp.f32 %v922_v21  ;;  %v916_v61 = vadd.f32 1.0, %v2249_v0  ;;  %v905_v0 = vadd.f32 1.0, %v3158_v35 }
 0x154   :  { %v2253_v48 = vpop.eup %2252  ;;  %2278 = vrcp.f32 %v919_v50  ;;  %v913_v9 = vadd.f32 1.0, %v2251_v14  ;;  %v907_v50 = vadd.f32 1.0, %v3190_v7  ;;  %v906_v14 = vadd.f32 1.0, %v3180_v30 }
 0x155   :  { %v2255_v40 = vpop.eup %2254  ;;  %2280 = vrcp.f32 %v920_v42  ;;  %v914_v26 = vadd.f32 1.0, %v2253_v48 }
 0x156   :  { %v2257_v6 = vpop.eup %2256  ;;  %2282 = vrcp.f32 %v917_v55  ;;  %v911_v37 = vadd.f32 1.0, %v2255_v40 }
 0x157   :  { %v2259_v36 = vpop.eup %2258  ;;  %2284 = vrcp.f32 %v918_v1  ;;  %v912_v27 = vadd.f32 1.0, %v2257_v6  ;;  %v904_v6 = vadd.f32 1.0, %v3145_v46 }
 0x158   :  { %v2261_v3 = vpop.eup %2260  ;;  %2286 = vrcp.f32 %v915_v47  ;;  %v909_v8 = vadd.f32 1.0, %v2259_v36 }
 0x159   :  { %v2263_v19 = vpop.eup %2262  ;;  %2288 = vrcp.f32 %v916_v61  ;;  %v910_v21 = vadd.f32 1.0, %v2261_v3 }
 0x15a   :  { %v2265_v5 = vpop.eup %2264  ;;  %2290 = vrcp.f32 %v913_v9  ;;  %v908_v20 = vadd.f32 1.0, %v2263_v19 }
 0x15b   :  { %v2267_v18 = vpop.eup %2266  ;;  %2292 = vrcp.f32 %v914_v26  ;;  %v1017_v36 = vmul.f32 %v2265_v5, %v3124_v43 }
 0x15c   :  { %v2269_v2 = vpop.eup %2268  ;;  %2294 = vrcp.f32 %v911_v37  ;;  %v1019_v40 = vmul.f32 %v2267_v18, %v3130_v41 }
 0x15d   :  { %v2271_v45 = vpop.eup %2270  ;;  %2296 = vrcp.f32 %v912_v27  ;;  %v1022_v1 = vmul.f32 %v2269_v2, %v3175_v49 }
 0x15e   :  { %v2273_v42 = vpop.eup %2272  ;;  %2298 = vrcp.f32 %v909_v8  ;;  %v1021_v47 = vmul.f32 %v2271_v45, %v3165_v11 }
 0x15f   :  { %v2275_v55 = vpop.eup %2274  ;;  %2300 = vrcp.f32 %v910_v21  ;;  %v1020_v35 = vmul.f32 %v2273_v42, %v3150_v62 }
 0x160   :  { %v2277_v48 = vpop.eup %2276  ;;  %2302 = vrcp.f32 %v907_v50  ;;  %v1023_v7 = vmul.f32 %v2275_v55, %v3197_v31  ;;  %v1037_v31 = vpack.c.bf16 %v1019_v40, %v1017_v36 }
 0x161   :  { %v2279_v61 = vpop.eup %2278  ;;  %2304 = vrcp.f32 %v908_v20  ;;  %v1018_v26 = vmul.f32 %v2277_v48, %v3154_v22  ;;  %v1038_v11 = vpack.c.bf16 %v1022_v1, %v1020_v35  ;;  %v1108_v48 = vstv %s3274_s4 }
 0x162   :  { %v2281_v9 = vpop.eup %2280  ;;  %2306 = vrcp.f32 %v905_v0  ;;  %v1039_v30 = vpack.c.bf16 %v1023_v7, %v1021_v47  ;;  %v1015_v41 = vmul.f32 %v2279_v61, %v3171_v34 }
 0x163   :  { %v2283_v49 = vpop.eup %2282  ;;  %2308 = vrcp.f32 %v906_v14  ;;  %v1016_v46 = vmul.f32 %v2281_v9, %v3186_v51 }
 0x164   :  { %v2285_v3 = vpop.eup %2284  ;;  %1040 = vmatprep.subr.bf16.mxu1 %v1039_v30  ;;  %2310 = vrcp.f32 %v904_v6  ;;  %v1013_v19 = vmul.f32 %v2283_v49, %v3139_v39  ;;  %v3802_v6 = vld [vmem:[#allocation22_spill] sm:$0xff]  ;;  %v3803_v30 = vld [vmem:[#allocation21_spill] sm:$0xff] }
 0x165   :  { %v2287_v37 = vpop.eup %2286  ;;  %1041 = vmatpush1.bf16.msra.mxu1 %v1038_v11  ;;  %v1014_v27 = vmul.f32 %v2285_v3, %v3193_v15  ;;  %v1036_v5 = vpack.c.bf16 %v1018_v26, %v1016_v46 }
 0x166   :  { %v2289_v62 = vpop.eup %2288  ;;  %1042 = vmatprep.subr.bf16.mxu1 %v1037_v31  ;;  %v1035_v8 = vpack.c.bf16 %v1015_v41, %v1013_v19  ;;  %v1011_v18 = vmul.f32 %v2287_v37, %v3205_v59 }
 0x167   :  { %v2291_v43 = vpop.eup %2290  ;;  %v1012_v21 = vmul.f32 %v2289_v62, %v3213_v57 }
 0x168   :  { %v2293_v22 = vpop.eup %2292  ;;  %v1009_v2 = vmul.f32 %v2291_v43, %v3220_v23 }
 0x169   :  { %v2295_v34 = vpop.eup %2294  ;;  %1043 = vmatpush1.bf16.msra.mxu1 %v1036_v5  ;;  %v1010_v39 = vmul.f32 %v2293_v22, %v3227_v25  ;;  %v1034_v15 = vpack.c.bf16 %v1014_v27, %v1012_v21  ;;  %v2036_v25 = vld [vmem:[%s3738_s3 + $0x8] sm:$0x77] }
 0x16a   :  { %v2297_v51 = vpop.eup %2296  ;;  %1044 = vmatprep.subr.bf16.mxu1 %v1035_v8  ;;  %v1033_v20 = vpack.c.bf16 %v1011_v18, %v1009_v2  ;;  %v1007_v42 = vmul.f32 %v2295_v34, %v3234_v24  ;;  %v1109_v61 = vmul.f32 %v2036_v25, %v1108_v48 }
 0x16b   :  { %v2299_v50 = vpop.eup %2298  ;;  %v1008_v59 = vmul.f32 %v2297_v51, %v3240_v33 }
 0x16c   :  { %v2301_v45 = vpop.eup %2300  ;;  %v1005_v57 = vmul.f32 %v2299_v50, %v3244_v12  ;;  %v1111_v49 = vcombine.high %v1109_v61, %v1109_v61 }
 0x16d   :  { %v2303_v0 = vpop.eup %2302  ;;  %1045 = vmatpush1.bf16.msra.mxu1 %v1034_v15  ;;  %v1006_v23 = vmul.f32 %v2301_v45, %v3248_v54  ;;  %v1032_v1 = vpack.c.bf16 %v1010_v39, %v1008_v59 }
 0x16e   :  { %v2305_v55 = vpop.eup %2304  ;;  %1046 = vmatprep.subr.bf16.mxu1 %v1033_v20  ;;  %v1031_v7 = vpack.c.bf16 %v1007_v42, %v1005_v57  ;;  %v1003_v24 = vmul.f32 %v2303_v0, %v3064_v52  ;;  %v1114_v52 = vpack.c.bf16 %v1111_v49, %v1111_v49 }
 0x16f   :  { %v2307_v14 = vpop.eup %2306  ;;  %v1004_v33 = vmul.f32 %v2305_v55, %v3252_v56  ;;  %v3804_v56 = vld [vmem:[#allocation9_spill] sm:$0xff] }
 0x170   :  { %v2309_v47 = vpop.eup %2308  ;;  %v1001_v12 = vmul.f32 %v2307_v14, %v3057_v29  ;;  %v1113_v29 = vpack.c.bf16 %v1109_v61, %v1109_v61  ;;  %v1272_v11 = vand.u32 %v1114_v52, %v3804_v56 }
 0x171   :  { %1047 = vmatpush1.bf16.msra.mxu1 %v1032_v1  ;;  %v2311_v40 = vpop.eup %2310  ;;  %v1002_v54 = vmul.f32 %v2309_v47, %v3802_v6  ;;  %v1030_v35 = vpack.c.bf16 %v1006_v23, %v1004_v33 }
 0x172   :  { %1048 = vmatprep.subr.bf16.mxu1 %v1031_v7  ;;  %v1029_v9 = vpack.c.bf16 %v1003_v24, %v1001_v12  ;;  %v1000_v36 = vmul.f32 %v2311_v40, %v3803_v30  ;;  %v1269_v4 = vand.u32 %v1113_v29, %v3804_v56  ;;  %v1082_v12 = vstv %s1081_s25 }
 0x174   :  { %v1028_v26 = vpack.c.bf16 %v1002_v54, %v1000_v36 }
 0x175   :  { %1049 = vmatpush1.bf16.msra.mxu1 %v1030_v35 }
 0x176   :  { %1050 = vmatprep.subr.bf16.mxu1 %v1029_v9  ;;  %v2448_v9 = vld [vmem:[%s3738_s3] sm:$0x77] }
 0x177   :  { %v1083_v30 = vmul.f32 %v2448_v9, %v1082_v12 }
 0x179   :  { %1051 = vmatpush1.bf16.msra.mxu1 %v1028_v26 }
 0x17a   :  { %1052 = vmatprep.subr.bf16.mxu1 %v1027_v53  ;;  %v2440_v53 = vld [vmem:[%s3742_s7] sm:$0xff]  }
 0x17d   :  { %1053 = vmatpush1.bf16.msra.mxu1 %v1026_v28  ;;  %v2447_v28 = vld [vmem:[%s3742_s7 + $0x38] sm:$0xff]   ;;  %s1084_s7 = sld [smem:[#allocation6]] }
 0x17e   :  { %1054 = vmatprep.subr.bf16.mxu1 %v1025_v38  ;;  %v3354_v38 = vpop.permute.xlu0 %1492 }
 0x181   :  { %1055 = vmatpush1.bf16.msra.mxu1 %v1024_v63  ;;  %v3356_v63 = vpop.permute.xlu1 %1497 }
 0x182   :  { %1288 = vmatprep.subr.bf16.mxu1 %v1272_v11  ;;  %3806 = vst [vmem:[#allocation13_spill] sm:$0xff] %v3356_v63  ;;  %v3358_v3 = vpop.permute.xlu0 %1621 }
 0x183   :  { %v1085_v40 = vstv %s1084_s7 }
 0x184   :  { %1073 = vmatmul.mubr.bf16.vlgmr.msra.gmra.mxu1 %v3309_v44 }
 0x185   :  { %1289 = vmatpush1.bf16.msra.mxu1 %v1269_v4  ;;  %1306 = vmatprep.mubr.bf16.mxu1 %v3789_v58  ;;  %v3360_v31 = vpop.permute.xlu1 %1626 }
 0x186   :  { %3807 = vst [vmem:[#allocation12_spill] sm:$0xff] %v3360_v31  ;;  %v3362_v41 = vpop.permute.xlu0 %1482 }
 0x189   :  { %v3364_v37 = vpop.permute.xlu1 %1487 }
 0x18a   :  { %v3366_v62 = vpop.permute.xlu0 %1611 }
 0x18c   :  { %2062 = vmatmul.mubr.msk.bf16.vlgmr.msra.gmra.mxu1 %vm380_vm3, %v2440_v53 }
 0x18d   :  { %1316 = vmatprep.mubr.bf16.mxu1 %v3789_v58  ;;  %v3368_v43 = vpop.permute.xlu1 %1616 }
 0x18e   :  { %v3370_v27 = vpop.permute.xlu0 %1472 }
 0x191   :  { %v3372_v5 = vpop.permute.xlu1 %1477 }
 0x192   :  { %v3376_v8 = vpop.permute.xlu0 %1601 }
 0x194   :  { %2063 = vmatmul.mubr.msk.bf16.gmra.mxu1 %vm380_vm3, %v2441_v16 }
 0x195   :  { %1326 = vmatprep.mubr.bf16.mxu1 %v3789_v58  ;;  %v3380_v34 = vpop.permute.xlu1 %1606 }
 0x196   :  { %3808 = vst [vmem:[#allocation10_spill] sm:$0xff] %v3380_v34  ;;  %v3382_v21 = vpop.permute.xlu0 %1462 }
 0x199   :  { %v3384_v2 = vpop.permute.xlu1 %1467 }
 0x19a   :  { %v3388_v39 = vpop.permute.xlu0 %1591 }
 0x19b   :  { %3809 = vst [vmem:[#allocation20_spill] sm:$0xff] %v3388_v39 }
 0x19c   :  { %2064 = vmatmul.mubr.msk.bf16.gmra.mxu1 %vm380_vm3, %v2442_v13 }
 0x19d   :  { %1336 = vmatprep.mubr.bf16.mxu1 %v3789_v58  ;;  %v3392_v45 = vpop.permute.xlu1 %1596 }
 0x19e   :  { %3810 = vst [vmem:[#allocation15_spill] sm:$0xff] %v3392_v45  ;;  %v3394_v20 = vpop.permute.xlu0 %1452 }
 0x19f   :  { %3811 = vst [vmem:[#allocation16_spill] sm:$0xff] %v3394_v20 }
 0x1a1   :  { %v3398_v0 = vpop.permute.xlu1 %1457 }
 0x1a2   :  { %v3402_v55 = vpop.permute.xlu0 %1581 }
 0x1a3   :  { %3812 = vst [vmem:[#allocation14_spill] sm:$0xff] %v3402_v55 }
 0x1a4   :  { %2065 = vmatmul.mubr.msk.bf16.gmra.mxu1 %vm380_vm3, %v2443_v60 }
 0x1a5   :  { %1346 = vmatprep.mubr.bf16.mxu1 %v3789_v58  ;;  %v3406_v14 = vpop.permute.xlu1 %1586 }
 0x1a6   :  { %3813 = vst [vmem:[#allocation18_spill] sm:$0xff] %v3406_v14  ;;  %v3408_v23 = vpop.permute.xlu0 %1442 }
 0x1a9   :  { %v3412_v25 = vpop.permute.xlu1 %1447 }
 0x1aa   :  { %v3416_v47 = vpop.permute.xlu0 %1571 }
 0x1ac   :  { %2066 = vmatmul.mubr.msk.bf16.gmra.mxu1 %vm380_vm3, %v2444_v17 }
 0x1ad   :  { %1356 = vmatprep.mubr.bf16.mxu1 %v3789_v58  ;;  %v3420_v24 = vpop.permute.xlu1 %1576 }
 0x1ae   :  { %v1433_v61 = vpop.permute.xlu0 %1432 }
 0x1b1   :  { %v1438_v26 = vpop.permute.xlu1 %1437 }
 0x1b2   :  { %v1562_v11 = vpop.permute.xlu0 %1561 }
 0x1b4   :  { %2067 = vmatmul.mubr.msk.bf16.gmra.mxu1 %vm380_vm3, %v2445_v10 }
 0x1b5   :  { %1366 = vmatprep.mubr.bf16.mxu1 %v3789_v58  ;;  %v1567_v17 = vpop.permute.xlu1 %1566 }
 0x1bc   :  { %2068 = vmatmul.mubr.msk.bf16.gmra.mxu1 %vm380_vm3, %v2446_v32 }
 0x1bd   :  { %1376 = vmatprep.mubr.bf16.mxu1 %v3789_v58 }
 0x1bf   :  { %v1189_v46 = vpop.f32.mrf.mxu0 }
 0x1c1   :  { %v1191_v19 = vpop.f32.mrf.mxu0 }
 0x1c4   :  { %2069 = vmatmul.mubr.msk.bf16.gmra.mxu1 %vm380_vm3, %v2447_v28 }
 0x1c5   :  { %1933 = vmatprep.mubr.bf16.mxu1 %v3789_v58  ;;  %v1193_v58 = vpop.f32.mrf.mxu0 }
 0x1c7   :  { %v3374_v22 = vpop.f32.mrf.mxu0 }
 0x1c9   :  { %v3378_v18 = vpop.f32.mrf.mxu0 }
 0x1cb   :  { %v1201_v51 = vpop.f32.mrf.mxu0 }
 0x1cd   :  { %v3386_v50 = vpop.f32.mrf.mxu0 }
 0x1cf   :  { %v3390_v15 = vpop.f32.mrf.mxu0 }
 0x1d1   :  { %v3396_v42 = vpop.f32.mrf.mxu0 }
 0x1d3   :  { %v3400_v59 = vpop.f32.mrf.mxu0 }
 0x1d5   :  { %v3404_v57 = vpop.f32.mrf.mxu0 }
 0x1d7   :  { %v3410_v1 = vpop.f32.mrf.mxu0 }
 0x1d9   :  { %v3414_v48 = vpop.f32.mrf.mxu0 }
 0x1db   :  { %v3418_v7 = vpop.f32.mrf.mxu0 }
 0x1dd   :  { %v3422_v54 = vpop.f32.mrf.mxu0 }
 0x1df   :  { %v3427_v56 = vpop.f32.mrf.mxu0 }
 0x1e1   :  { %v3429_v60 = vpop.f32.mrf.mxu0 }
 0x244   :  { %v1074_v33 = vpop.f32.mrf.mxu1 }
 0x245   :  { %v1086_v35 = vmul.f32 %v1085_v40, %v1074_v33  ;;  %v1423_v33 = vpop.permute.xlu0 %1422 }
 0x246   :  { %v1076_v6 = vpop.f32.mrf.mxu1 }
 0x247   :  { %v1087_v36 = vmul.f32 %v1085_v40, %v1076_v6  ;;  %v3434_v6 = vpop.f32.mrf.mxu0 }
 0x248   :  { %v1078_v49 = vpop.f32.mrf.mxu1 }
 0x249   :  { %v1090_v52 = vcombine.low %v1086_v35, %v1087_v36  ;;  %v1428_v36 = vpop.permute.xlu1 %1427 }
 0x24a   :  { %v1079_v29 = vpop.f32.mrf.mxu1 }
 0x24b   :  { %v1092_v4 = vadd.f32 %v1090_v52, %v1083_v30  ;;  %v3436_v29 = vpop.f32.mrf.mxu0 }
 0x24c   :  { %v1308_v53 = vpop.f32.mrf.mxu1 }
 0x24d   :  { %v1093_v16 = vmul.f32 0.5, %v1092_v4  ;;  %v1309_v32 = vadd.f32 %v1308_v53, %v1189_v46  ;;  %v1552_v4 = vpop.permute.xlu0 %1551 }
 0x24e   :  { %v1310_v13 = vpop.f32.mrf.mxu1 }
 0x24f   :  { %v1094_v10 = vadd.f32 0.5, %v1093_v16  ;;  %v1311_v40 = vadd.f32 %v1310_v13, %v1191_v19  ;;  %v1500_v35 = vmul.f32 %v1423_v33, %v1309_v32 }
 0x250   :  { %v1312_v28 = vpop.f32.mrf.mxu1 }
 0x251   :  { %1095 = vst [vmem:[%s3745_s10] sm:$0x77] %v1094_v10  ;;  %v1313_v9 = vadd.f32 %v1312_v28, %v1193_v58  ;;  %v1501_v49 = vmul.f32 %v1423_v33, %v1311_v40  ;;  %v3439_v16 = vadd.f32 %v1552_v4, %v1500_v35  ;;  %v3445_v28 = vpop.f32.mrf.mxu0  ;;  %v1557_v33 = vpop.permute.xlu1 %1556 }
 0x252   :  { %v1314_v12 = vpop.f32.mrf.mxu1 }
 0x253   :  { %v1315_v46 = vadd.f32 %v1314_v12, %v3374_v22  ;;  %v1502_v44 = vmul.f32 %v1428_v36, %v1313_v9  ;;  %v3442_v55 = vadd.f32 %v1552_v4, %v1501_v49  ;;  %v3455_v4 = vpop.f32.mrf.mxu0 }
 0x254   :  { %v1318_v30 = vpop.f32.mrf.mxu1 }
 0x255   :  { %v1319_v58 = vadd.f32 %v1318_v30, %v3378_v18  ;;  %v1503_v40 = vmul.f32 %v1428_v36, %v1315_v46  ;;  %v3451_v12 = vadd.f32 %v1557_v33, %v1502_v44  ;;  %v2103_v18 = vmul.f32 -1.442695, %v3442_v55 }
 0x256   :  { %v1320_v52 = vpop.f32.mrf.mxu1 }
 0x257   :  { %v1321_v53 = vadd.f32 %v1320_v52, %v1201_v51  ;;  %v2102_v51 = vmul.f32 -1.442695, %v3439_v16  ;;  %v1504_v30 = vmul.f32 %v1433_v61, %v1319_v58  ;;  %v3457_v36 = vadd.f32 %v1557_v33, %v1503_v40 }
 0x258   :  { %v1322_v10 = vpop.f32.mrf.mxu1  ;;  %v2104_v44 = vmul.f32 -1.442695, %v3451_v12 }
 0x259   :  { %v1505_v19 = vmul.f32 %v1433_v61, %v1321_v53  ;;  %v1323_v13 = vadd.f32 %v1322_v10, %v3386_v50  ;;  %3814 = vst [vmem:[#allocation11_spill] sm:$0xff] %v3457_v36 }
 0x25a   :  { %v1324_v32 = vpop.f32.mrf.mxu1 }
 0x25b   :  { %v3447_v14 = vadd.f32 %v1562_v11, %v1505_v19  ;;  %v1325_v22 = vadd.f32 %v1324_v32, %v3390_v15  ;;  %v1506_v35 = vmul.f32 %v1438_v26, %v1323_v13  ;;  %v3467_v19 = vpop.f32.mrf.mxu0  ;;  %v2105_v13 = vmul.f32 -1.442695, %v3457_v36 }
 0x25c   :  { %v1328_v9 = vpop.f32.mrf.mxu1 }
 0x25d   :  { %v2107_v50 = vmul.f32 -1.442695, %v3447_v14  ;;  %v1507_v49 = vmul.f32 %v1438_v26, %v1325_v22  ;;  %v3462_v15 = vadd.f32 %v1567_v17, %v1506_v35  ;;  %v3465_v26 = vadd.f32 %v1562_v11, %v1504_v30  ;;  %v3476_v40 = vpop.f32.mrf.mxu0 }
 0x25e   :  { %v1330_v52 = vpop.f32.mrf.mxu1  ;;  %v1329_v30 = vadd.f32 %v1328_v9, %v3396_v42 }
 0x25f   :  { %2312 = vpow2.f32 %v2107_v50  ;;  %v3459_v46 = vadd.f32 %v1567_v17, %v1507_v49  ;;  %3815 = vst [vmem:[#allocation17_spill] sm:$0xff] %v3462_v15  ;;  %3816 = vst [vmem:[#allocation22_spill] sm:$0xff] %v3465_v26  ;;  %v2108_v58 = vmul.f32 -1.442695, %v3462_v15  ;;  %v2106_v17 = vmul.f32 -1.442695, %v3465_v26 }
 0x260   :  { %2314 = vpow2.f32 %v2102_v51  ;;  %v1332_v53 = vpop.f32.mrf.mxu1  ;;  %v3480_v51 = vpop.f32.mrf.mxu0  ;;  %v1508_v31 = vmul.f32 %v3408_v23, %v1329_v30 }
 0x261   :  { %v2109_v10 = vmul.f32 -1.442695, %v3459_v46  ;;  %2316 = vpow2.f32 %v2103_v18  ;;  %v1333_v34 = vadd.f32 %v1332_v53, %v3404_v57 }
 0x262   :  { %v1334_v61 = vpop.f32.mrf.mxu1 }
 0x263   :  { %2318 = vpow2.f32 %v2109_v10  ;;  %v3485_v10 = vpop.f32.mrf.mxu0  ;;  %v1510_v30 = vmul.f32 %v3412_v25, %v1333_v34 }
 0x264   :  { %2320 = vpow2.f32 %v2104_v44  ;;  %v3471_v32 = vpop.f32.mrf.mxu1 }
 0x265   :  { %2322 = vpow2.f32 %v2105_v13  ;;  %v1331_v13 = vadd.f32 %v1330_v52, %v3400_v59  ;;  %v1251_v42 = vpop.f32.mrf.mxu0 }
 0x266   :  { %v3474_v33 = vpop.f32.mrf.mxu1  ;;  %2324 = vpow2.f32 %v2108_v58 }
 0x267   :  { %2326 = vpow2.f32 %v2106_v17  ;;  %v1509_v15 = vmul.f32 %v3408_v23, %v1331_v13 }
 0x268   :  { %v3478_v11 = vpop.f32.mrf.mxu1 }
 0x26a   :  { %v1344_v22 = vpop.f32.mrf.mxu1 }
 0x26c   :  { %v2313_v35 = vpop.eup %2312  ;;  %v3482_v50 = vpop.f32.mrf.mxu1 }
 0x26d   :  { %v2315_v49 = vpop.eup %2314  ;;  %v1762_v18 = vadd.f32 1.0, %v2313_v35  ;;  %v1335_v35 = vadd.f32 %v1334_v61, %v3410_v1  ;;  %v1253_v1 = vpop.f32.mrf.mxu0 }
 0x26e   :  { %v1350_v44 = vpop.f32.mrf.mxu1  ;;  %v2317_v39 = vpop.eup %2316  ;;  %v1757_v20 = vadd.f32 1.0, %v2315_v49 }
 0x26f   :  { %2328 = vrcp.f32 %v1762_v18  ;;  %v1758_v9 = vadd.f32 1.0, %v2317_v39  ;;  %v3493_v18 = vadd.f32 %v3416_v47, %v1508_v31  ;;  %v1511_v57 = vmul.f32 %v3412_v25, %v1335_v35 }
 0x270   :  { %v2319_v58 = vpop.eup %2318  ;;  %v1352_v45 = vpop.f32.mrf.mxu1  ;;  %v3502_v31 = vadd.f32 %v3420_v24, %v1510_v30 }
 0x271   :  { %v2321_v17 = vpop.eup %2320  ;;  %v1764_v26 = vadd.f32 1.0, %v2319_v58  ;;  %3817 = vst [vmem:[#allocation21_spill] sm:$0xff] %v3493_v18  ;;  %v2110_v13 = vmul.f32 -1.442695, %v3493_v18  ;;  %v3505_v34 = vadd.f32 %v3420_v24, %v1511_v57  ;;  %v3513_v24 = vadd.f32 %v3471_v32, %v3414_v48 }
 0x272   :  { %v1354_v36 = vpop.f32.mrf.mxu1  ;;  %v2323_v63 = vpop.eup %2322  ;;  %v1759_v59 = vadd.f32 1.0, %v2321_v17 }
 0x273   :  { %2330 = vrcp.f32 %v1764_v26  ;;  %v2325_v49 = vpop.eup %2324  ;;  %v1760_v39 = vadd.f32 1.0, %v2323_v63  ;;  %v3498_v26 = vadd.f32 %v3416_v47, %v1509_v15  ;;  %v1255_v17 = vpop.f32.mrf.mxu0  ;;  %v2112_v15 = vmul.f32 -1.442695, %v3502_v31 }
 0x274   :  { %2332 = vrcp.f32 %v1757_v20  ;;  %v1358_v52 = vpop.f32.mrf.mxu1  ;;  %v2327_v61 = vpop.eup %2326  ;;  %v1763_v20 = vadd.f32 1.0, %v2325_v49 }
 0x275   :  { %2334 = vrcp.f32 %v1758_v9  ;;  %v1761_v58 = vadd.f32 1.0, %v2327_v61  ;;  %v2111_v63 = vmul.f32 -1.442695, %v3498_v26  ;;  %v2113_v9 = vmul.f32 -1.442695, %v3505_v34  ;;  %v1259_v49 = vpop.f32.mrf.mxu0 }
 0x276   :  { %v1360_v53 = vpop.f32.mrf.mxu1  ;;  %2336 = vrcp.f32 %v1759_v59  ;;  %v1345_v59 = vadd.f32 %v1344_v22, %v3427_v56  ;;  %v3517_v61 = vadd.f32 %v3474_v33, %v3418_v7  ;;  %v3523_v56 = vadd.f32 %v3478_v11, %v3422_v54 }
 0x277   :  { %2338 = vrcp.f32 %v1760_v39  ;;  %v1351_v39 = vadd.f32 %v1350_v44, %v3434_v6  ;;  %v1353_v6 = vadd.f32 %v1352_v45, %v3436_v29  ;;  %v1261_v33 = vpop.f32.mrf.mxu0  ;;  %v1355_v44 = vadd.f32 %v1354_v36, %v3445_v28 }
 0x278   :  { %v1362_v23 = vpop.f32.mrf.mxu1  ;;  %2340 = vrcp.f32 %v1763_v20  ;;  %v1361_v20 = vadd.f32 %v1360_v53, %v3467_v19  ;;  %v3532_v7 = vmul.f32 %v3398_v0, %v1345_v59  ;;  %v3544_v53 = vadd.f32 %v3482_v50, %v3429_v60 }
 0x279   :  { %2342 = vpow2.f32 %v2110_v13  ;;  %v3547_v45 = vmul.f32 %v3382_v21, %v1351_v39  ;;  %v1359_v36 = vadd.f32 %v1358_v52, %v3455_v4  ;;  %v1519_v59 = vmul.f32 %v3384_v2, %v1355_v44 }
 0x27a   :  { %v1364_v25 = vpop.f32.mrf.mxu1  ;;  %2344 = vrcp.f32 %v1761_v58  ;;  %v1521_v29 = vmul.f32 %v3370_v27, %v1361_v20 }
 0x27b   :  { %2346 = vpow2.f32 %v2111_v63 }
 0x27c   :  { %v1368_v47 = vpop.f32.mrf.mxu1  ;;  %v2329_v35 = vpop.eup %2328  ;;  %2348 = vpow2.f32 %v2112_v15 }
 0x27d   :  { %v3526_v48 = vmul.f32 %v2329_v35, %v3447_v14  ;;  %2350 = vpow2.f32 %v2113_v9  ;;  %v1369_v60 = vadd.f32 %v1368_v47, %v3485_v10  ;;  %v1263_v15 = vpop.f32.mrf.mxu0  ;;  %v3573_v10 = vadd.f32 %v3376_v8, %v1521_v29 }
 0x27e   :  { %v1370_v30 = vpop.f32.mrf.mxu1 }
 0x27f   :  { %v1371_v13 = vadd.f32 %v1370_v30, %v1251_v42  ;;  %v2123_v29 = vmul.f32 -1.442695, %v3573_v10 }
 0x280   :  { %v2331_v57 = vpop.eup %2330  ;;  %v1372_v58 = vpop.f32.mrf.mxu1 }
 0x281   :  { %v2333_v18 = vpop.eup %2332  ;;  %v3529_v32 = vmul.f32 %v2331_v57, %v3459_v46  ;;  %v1525_v19 = vmul.f32 %v3362_v41, %v1371_v13  ;;  %v1373_v54 = vadd.f32 %v1372_v58, %v1253_v1  ;;  %v1363_v1 = vadd.f32 %v1362_v23, %v3476_v40  ;;  %v1265_v13 = vpop.f32.mrf.mxu0 }
 0x282   :  { %v1374_v22 = vpop.f32.mrf.mxu1  ;;  %v2335_v42 = vpop.eup %2334  ;;  %v3540_v46 = vmul.f32 %v2333_v18, %v3439_v16  ;;  %v3555_v18 = vmul.f32 %v3384_v2, %v1353_v6 }
 0x283   :  { %v1375_v11 = vadd.f32 %v1374_v22, %v1255_v17  ;;  %v1888_v14 = vpack.c.bf16 %v3529_v32, %v3526_v48  ;;  %v2337_v28 = vpop.eup %2336  ;;  %v1365_v17 = vadd.f32 %v1364_v25, %v3480_v51  ;;  %v3559_v50 = vadd.f32 %v3366_v62, %v1525_v19  ;;  %v3818_v22 = vld [vmem:[#allocation13_spill] sm:$0xff] }
 0x284   :  { %v1378_v63 = vpop.f32.mrf.mxu1  ;;  %v1526_v4 = vmul.f32 %v3364_v37, %v1373_v54  ;;  %v3567_v51 = vmul.f32 %v2335_v42, %v3442_v55  ;;  %v2339_v52 = vpop.eup %2338  ;;  %v3570_v23 = vmul.f32 %v2337_v28, %v3451_v12  ;;  %v1522_v30 = vmul.f32 %v3372_v5, %v1363_v1 }
 0x285   :  { %v1527_v16 = vmul.f32 %v3364_v37, %v1375_v11  ;;  %v1379_v35 = vadd.f32 %v1378_v63, %v1259_v49  ;;  %v2341_v2 = vpop.eup %2340  ;;  %v1520_v37 = vmul.f32 %v3370_v27, %v1359_v36  ;;  %v1523_v57 = vmul.f32 %v3372_v5, %v1365_v17  ;;  %v3822_v17 = vld [vmem:[#allocation12_spill] sm:$0xff] }
 0x286   :  { %v1380_v9 = vpop.f32.mrf.mxu1  ;;  %v3579_v39 = vpop.eup %2342  ;;  %v1524_v12 = vmul.f32 %v3362_v41, %v1369_v60  ;;  %v2127_v20 = vmul.f32 -1.442695, %v3559_v50  ;;  %v3588_v27 = vadd.f32 %v3368_v43, %v1526_v4  ;;  %v3819_v41 = vld [vmem:[#allocation17_spill] sm:$0xff]  ;;  %v1943_v48 = vstv %s2134_s11 }
 0x287   :  { %v3564_v40 = vadd.f32 %v3368_v43, %v1527_v16  ;;  %v1528_v25 = vmul.f32 %v3354_v38, %v1379_v35  ;;  %v1381_v47 = vadd.f32 %v1380_v9, %v1261_v33  ;;  %v2345_v33 = vpop.eup %2344  ;;  %v3595_v42 = vmul.f32 %v2341_v2, %v3819_v41  ;;  %v3821_v43 = vld [vmem:[#allocation10_spill] sm:$0xff] }
 0x288   :  { %v1382_v49 = vpop.f32.mrf.mxu1  ;;  %v3592_v11 = vpop.eup %2346  ;;  %v3605_v36 = vadd.f32 %v3821_v43, %v1523_v57  ;;  %v3823_v35 = vld [vmem:[#allocation22_spill] sm:$0xff]  ;;  %2352 = vpow2.f32 %v2127_v20  ;;  %v1885_v20 = vpack.c.bf16 %v3570_v23, %v3540_v46 }
 0x289   :  { %v1383_v55 = vadd.f32 %v1382_v49, %v1263_v15  ;;  %v3584_v58 = vadd.f32 %v3358_v3, %v1528_v25  ;;  %v1529_v6 = vmul.f32 %v3354_v38, %v1381_v47  ;;  %v2129_v5 = vmul.f32 -1.442695, %v3564_v40  ;;  %v3820_v38 = vld [vmem:[#allocation11_spill] sm:$0xff]  ;;  %v3612_v15 = vpop.eup %2348 }
 0x28a   :  { %v1384_v19 = vpop.f32.mrf.mxu1  ;;  %v3602_v28 = vmul.f32 %v2339_v52, %v3820_v38  ;;  %v3615_v9 = vmul.f32 %v2345_v33, %v3823_v35  ;;  %v3621_v52 = vpop.eup %2350  ;;  %v3624_v25 = vadd.f32 %v3821_v43, %v1522_v30  ;;  %v2128_v47 = vmul.f32 -1.442695, %v3588_v27  ;;  %v3825_v33 = vld [vmem:[#allocation16_spill] sm:$0xff] }
 0x28b   :  { %v1530_v44 = vmul.f32 %v3818_v22, %v1383_v55  ;;  %v1385_v54 = vadd.f32 %v1384_v19, %v1265_v13  ;;  %v3599_v63 = vadd.f32 %v3358_v3, %v1529_v6  ;;  %v2130_v1 = vmul.f32 -1.442695, %v3584_v58  ;;  %v3824_v55 = vld [vmem:[#allocation15_spill] sm:$0xff] }
 0x28c   :  { %v3618_v3 = vadd.f32 %v3366_v62, %v1524_v12  ;;  %2354 = vpow2.f32 %v2129_v5  ;;  %v1887_v62 = vpack.c.bf16 %v3595_v42, %v3615_v9  ;;  %v1886_v57 = vpack.c.bf16 %v3602_v28, %v3567_v51  ;;  %v2449_v42 = vld [vmem:[%s3738_s3 + $0x8] sm:$0x77] }
 0x28d   :  { %v3609_v16 = vadd.f32 %v3822_v17, %v1530_v44  ;;  %v1531_v60 = vmul.f32 %v3818_v22, %v1385_v54  ;;  %v2131_v4 = vmul.f32 -1.442695, %v3599_v63  ;;  %2356 = vpow2.f32 %v2123_v29 }
 0x28e   :  { %v3636_v12 = vadd.f32 %v3824_v55, %v1519_v59  ;;  %v2125_v30 = vmul.f32 -1.442695, %v3605_v36  ;;  %2358 = vpow2.f32 %v2130_v1  ;;  %v1516_v13 = vmul.f32 %v3382_v21, %v3544_v53  ;;  %v3826_v59 = vld [vmem:[#allocation20_spill] sm:$0xff]  ;;  %v3827_v53 = vld [vmem:[#allocation18_spill] sm:$0xff] }
 0x28f   :  { %v3628_v49 = vadd.f32 %v3822_v17, %v1531_v60  ;;  %v2132_v2 = vmul.f32 -1.442695, %v3609_v16  ;;  %v3644_v6 = vadd.f32 %v3376_v8, %v1520_v37  ;;  %v2126_v19 = vmul.f32 -1.442695, %v3618_v3 }
 0x290   :  { %2360 = vpow2.f32 %v2131_v4  ;;  %v1513_v5 = vmul.f32 %v3825_v33, %v3517_v61  ;;  %v3651_v22 = vadd.f32 %v3826_v59, %v3547_v45  ;;  %v1514_v54 = vmul.f32 %v3398_v0, %v3523_v56  ;;  %v3828_v56 = vld [vmem:[#allocation14_spill] sm:$0xff] }
 0x291   :  { %2362 = vpow2.f32 %v2128_v47  ;;  %v2133_v44 = vmul.f32 -1.442695, %v3628_v49  ;;  %v3658_v8 = vadd.f32 %v3824_v55, %v3555_v18  ;;  %v2124_v21 = vmul.f32 -1.442695, %v3624_v25 }
 0x292   :  { %2364 = vpow2.f32 %v2132_v2  ;;  %v1512_v61 = vmul.f32 %v3825_v33, %v3513_v24  ;;  %v3665_v45 = vadd.f32 %v3827_v53, %v3532_v7  ;;  %v2121_v37 = vmul.f32 -1.442695, %v3636_v12 }
 0x293   :  { %2366 = vpow2.f32 %v2125_v30  ;;  %v3669_v41 = vadd.f32 %v3826_v59, %v1516_v13  ;;  %v2122_v0 = vmul.f32 -1.442695, %v3644_v6  ;;  %v3673_v18 = vadd.f32 %v3828_v56, %v1513_v5 }
 0x294   :  { %2368 = vpow2.f32 %v2126_v19  ;;  %v2119_v29 = vmul.f32 -1.442695, %v3651_v22  ;;  %v3677_v24 = vadd.f32 %v3827_v53, %v1514_v54  ;;  %v2120_v7 = vmul.f32 -1.442695, %v3658_v8 }
 0x295   :  { %2370 = vpow2.f32 %v2133_v44  ;;  %v3681_v38 = vadd.f32 %v3828_v56, %v1512_v61  ;;  %v2117_v43 = vmul.f32 -1.442695, %v3665_v45  ;;  %v2118_v1 = vmul.f32 -1.442695, %v3669_v41  ;;  %v2353_v17 = vpop.eup %2352 }
 0x296   :  { %2372 = vpow2.f32 %v2124_v21  ;;  %v2115_v60 = vmul.f32 -1.442695, %v3673_v18  ;;  %v2116_v4 = vmul.f32 -1.442695, %v3677_v24  ;;  %v1782_v30 = vadd.f32 1.0, %v2353_v17 }
 0x297   :  { %2374 = vpow2.f32 %v2121_v37  ;;  %v2114_v2 = vmul.f32 -1.442695, %v3681_v38  ;;  %v1944_v9 = vmul.f32 %v2449_v42, %v1943_v48 }
 0x298   :  { %2376 = vpow2.f32 %v2122_v0 }
 0x299   :  { %2378 = vpow2.f32 %v2119_v29  ;;  %v2355_v35 = vpop.eup %2354 }
 0x29a   :  { %2380 = vpow2.f32 %v2120_v7  ;;  %v2357_v47 = vpop.eup %2356  ;;  %v1784_v19 = vadd.f32 1.0, %v2355_v35 }
 0x29b   :  { %2382 = vpow2.f32 %v2117_v43  ;;  %v2359_v55 = vpop.eup %2358  ;;  %v1778_v17 = vadd.f32 1.0, %v2357_v47 }
 0x29c   :  { %2384 = vpow2.f32 %v2118_v1  ;;  %v1785_v54 = vadd.f32 1.0, %v2359_v55 }
 0x29d   :  { %v2361_v13 = vpop.eup %2360  ;;  %2386 = vpow2.f32 %v2115_v60 }
 0x29e   :  { %v2363_v33 = vpop.eup %2362  ;;  %2388 = vpow2.f32 %v2116_v4  ;;  %v1786_v59 = vadd.f32 1.0, %v2361_v13 }
 0x29f   :  { %v2365_v5 = vpop.eup %2364  ;;  %2390 = vpow2.f32 %v2114_v2  ;;  %v1783_v37 = vadd.f32 1.0, %v2363_v33 }
 0x2a0   :  { %v2367_v44 = vpop.eup %2366  ;;  %2392 = vrcp.f32 %v1782_v30  ;;  %v1787_v21 = vadd.f32 1.0, %v2365_v5 }
 0x2a1   :  { %v2369_v61 = vpop.eup %2368  ;;  %2394 = vrcp.f32 %v1784_v19  ;;  %v1780_v56 = vadd.f32 1.0, %v2367_v44 }
 0x2a2   :  { %v2371_v53 = vpop.eup %2370  ;;  %2396 = vrcp.f32 %v1787_v21  ;;  %v1781_v43 = vadd.f32 1.0, %v2369_v61 }
 0x2a3   :  { %v2373_v0 = vpop.eup %2372  ;;  %2398 = vrcp.f32 %v1786_v59  ;;  %v1788_v29 = vadd.f32 1.0, %v2371_v53 }
 0x2a4   :  { %v2375_v7 = vpop.eup %2374  ;;  %2400 = vrcp.f32 %v1785_v54  ;;  %v1779_v35 = vadd.f32 1.0, %v2373_v0 }
 0x2a5   :  { %v2377_v1 = vpop.eup %2376  ;;  %2402 = vrcp.f32 %v1788_v29  ;;  %v1776_v2 = vadd.f32 1.0, %v2375_v7 }
 0x2a6   :  { %v2379_v60 = vpop.eup %2378  ;;  %2404 = vrcp.f32 %v1783_v37  ;;  %v1777_v30 = vadd.f32 1.0, %v2377_v1  ;;  %v1766_v1 = vadd.f32 1.0, %v3592_v11 }
 0x2a7   :  { %v2381_v4 = vpop.eup %2380  ;;  %2406 = vrcp.f32 %v1780_v56  ;;  %v1774_v19 = vadd.f32 1.0, %v2379_v60  ;;  %v1768_v56 = vadd.f32 1.0, %v3621_v52  ;;  %v1767_v60 = vadd.f32 1.0, %v3612_v15 }
 0x2a8   :  { %v2383_v55 = vpop.eup %2382  ;;  %2408 = vrcp.f32 %v1781_v43  ;;  %v1775_v5 = vadd.f32 1.0, %v2381_v4 }
 0x2a9   :  { %v2385_v13 = vpop.eup %2384  ;;  %2410 = vrcp.f32 %v1778_v17  ;;  %v1772_v44 = vadd.f32 1.0, %v2383_v55 }
 0x2aa   :  { %v2387_v33 = vpop.eup %2386  ;;  %2412 = vrcp.f32 %v1779_v35  ;;  %v1773_v54 = vadd.f32 1.0, %v2385_v13  ;;  %v1765_v13 = vadd.f32 1.0, %v3579_v39 }
 0x2ab   :  { %v2389_v59 = vpop.eup %2388  ;;  %2414 = vrcp.f32 %v1776_v2  ;;  %v1770_v61 = vadd.f32 1.0, %v2387_v33 }
 0x2ac   :  { %v2391_v47 = vpop.eup %2390  ;;  %2416 = vrcp.f32 %v1777_v30  ;;  %v1771_v37 = vadd.f32 1.0, %v2389_v59 }
 0x2ad   :  { %v2393_v21 = vpop.eup %2392  ;;  %2418 = vrcp.f32 %v1774_v19  ;;  %v1769_v7 = vadd.f32 1.0, %v2391_v47 }
 0x2ae   :  { %v2395_v53 = vpop.eup %2394  ;;  %2420 = vrcp.f32 %v1775_v5  ;;  %v1878_v33 = vmul.f32 %v2393_v21, %v3559_v50 }
 0x2af   :  { %v2397_v0 = vpop.eup %2396  ;;  %2422 = vrcp.f32 %v1772_v44  ;;  %v1880_v55 = vmul.f32 %v2395_v53, %v3564_v40 }
 0x2b0   :  { %v2399_v29 = vpop.eup %2398  ;;  %2424 = vrcp.f32 %v1773_v54  ;;  %v1883_v35 = vmul.f32 %v2397_v0, %v3609_v16 }
 0x2b1   :  { %v2401_v43 = vpop.eup %2400  ;;  %2426 = vrcp.f32 %v1770_v61  ;;  %v1882_v2 = vmul.f32 %v2399_v29, %v3599_v63 }
 0x2b2   :  { %v2403_v17 = vpop.eup %2402  ;;  %2428 = vrcp.f32 %v1771_v37  ;;  %v1881_v11 = vmul.f32 %v2401_v43, %v3584_v58 }
 0x2b3   :  { %v2405_v4 = vpop.eup %2404  ;;  %2430 = vrcp.f32 %v1768_v56  ;;  %v1884_v52 = vmul.f32 %v2403_v17, %v3628_v49  ;;  %v1898_v49 = vpack.c.bf16 %v1880_v55, %v1878_v33 }
 0x2b4   :  { %v2407_v30 = vpop.eup %2406  ;;  %2432 = vrcp.f32 %v1769_v7  ;;  %v1879_v5 = vmul.f32 %v2405_v4, %v3588_v27  ;;  %v1899_v63 = vpack.c.bf16 %v1883_v35, %v1881_v11 }
 0x2b5   :  { %v2409_v19 = vpop.eup %2408  ;;  %2434 = vrcp.f32 %v1766_v1  ;;  %v1900_v15 = vpack.c.bf16 %v1884_v52, %v1882_v2  ;;  %v1876_v40 = vmul.f32 %v2407_v30, %v3605_v36 }
 0x2b6   :  { %v2411_v16 = vpop.eup %2410  ;;  %2436 = vrcp.f32 %v1767_v60  ;;  %v1877_v39 = vmul.f32 %v2409_v19, %v3618_v3 }
 0x2b7   :  { %v2413_v59 = vpop.eup %2412  ;;  %1901 = vmatprep.subr.bf16.mxu1 %v1900_v15  ;;  %2438 = vrcp.f32 %v1765_v13  ;;  %v1874_v47 = vmul.f32 %v2411_v16, %v3573_v10 }
 0x2b8   :  { %v2415_v44 = vpop.eup %2414  ;;  %1902 = vmatpush1.bf16.msra.mxu1 %v1899_v63  ;;  %v1875_v54 = vmul.f32 %v2413_v59, %v3624_v25  ;;  %v1897_v21 = vpack.c.bf16 %v1879_v5, %v1877_v39 }
 0x2b9   :  { %v2417_v58 = vpop.eup %2416  ;;  %1903 = vmatprep.subr.bf16.mxu1 %v1898_v49  ;;  %v1896_v61 = vpack.c.bf16 %v1876_v40, %v1874_v47  ;;  %v1872_v53 = vmul.f32 %v2415_v44, %v3636_v12 }
 0x2ba   :  { %v2419_v50 = vpop.eup %2418  ;;  %v1873_v36 = vmul.f32 %v2417_v58, %v3644_v6 }
 0x2bb   :  { %v2421_v27 = vpop.eup %2420  ;;  %v1870_v3 = vmul.f32 %v2419_v50, %v3651_v22 }
 0x2bc   :  { %v2423_v37 = vpop.eup %2422  ;;  %1904 = vmatpush1.bf16.msra.mxu1 %v1897_v21  ;;  %v1871_v29 = vmul.f32 %v2421_v27, %v3658_v8  ;;  %v1895_v10 = vpack.c.bf16 %v1875_v54, %v1873_v36 }
 0x2bd   :  { %v2425_v0 = vpop.eup %2424  ;;  %1905 = vmatprep.subr.bf16.mxu1 %v1896_v61  ;;  %v1894_v43 = vpack.c.bf16 %v1872_v53, %v1870_v3  ;;  %v1868_v25 = vmul.f32 %v2423_v37, %v3665_v45 }
 0x2be   :  { %v2427_v56 = vpop.eup %2426  ;;  %v1869_v17 = vmul.f32 %v2425_v0, %v3669_v41 }
 0x2bf   :  { %v2429_v7 = vpop.eup %2428  ;;  %v1866_v6 = vmul.f32 %v2427_v56, %v3673_v18  ;;  %v3829_v18 = vld [vmem:[#allocation21_spill] sm:$0xff] }
 0x2c0   :  { %v2431_v1 = vpop.eup %2430  ;;  %1906 = vmatpush1.bf16.msra.mxu1 %v1895_v10  ;;  %v1867_v35 = vmul.f32 %v2429_v7, %v3677_v24  ;;  %v1893_v22 = vpack.c.bf16 %v1871_v29, %v1869_v17 }
 0x2c1   :  { %v2433_v12 = vpop.eup %2432  ;;  %1907 = vmatprep.subr.bf16.mxu1 %v1894_v43  ;;  %v1892_v2 = vpack.c.bf16 %v1868_v25, %v1866_v6  ;;  %v1864_v8 = vmul.f32 %v2431_v1, %v3505_v34  ;;  %v1946_v34 = vstv %s2135_s30 }
 0x2c2   :  { %v2435_v60 = vpop.eup %2434  ;;  %v1865_v52 = vmul.f32 %v2433_v12, %v3681_v38 }
 0x2c3   :  { %v2437_v4 = vpop.eup %2436  ;;  %v1862_v41 = vmul.f32 %v2435_v60, %v3498_v26  ;;  %v3830_v26 = vld [vmem:[#allocation19_spill] sm:$0xff] }
 0x2c4   :  { %1908 = vmatpush1.bf16.msra.mxu1 %v1893_v22  ;;  %v2439_v45 = vpop.eup %2438  ;;  %v1863_v55 = vmul.f32 %v2437_v4, %v3502_v31  ;;  %v1891_v30 = vpack.c.bf16 %v1867_v35, %v1865_v52 }
 0x2c5   :  { %1909 = vmatprep.subr.bf16.mxu1 %v1892_v2  ;;  %v1890_v13 = vpack.c.bf16 %v1864_v8, %v1862_v41  ;;  %v1861_v11 = vmul.f32 %v2439_v45, %v3829_v18 }
 0x2c7   :  { %v1889_v24 = vpack.c.bf16 %v1863_v55, %v1861_v11 }
 0x2c8   :  { %1910 = vmatpush1.bf16.msra.mxu1 %v1891_v30 }
 0x2c9   :  { %1911 = vmatprep.subr.bf16.mxu1 %v1890_v13 }
 0x2cc   :  { %1912 = vmatpush1.bf16.msra.mxu1 %v1889_v24 }
 0x2cd   :  { %1913 = vmatprep.subr.bf16.mxu1 %v1888_v14 }
 0x2d0   :  { %1914 = vmatpush1.bf16.msra.mxu1 %v1887_v62 }
 0x2d1   :  { %1915 = vmatprep.subr.bf16.mxu1 %v1886_v57 }
 0x2d4   :  { %1916 = vmatpush1.bf16.msra.mxu1 %v1885_v20 }
 0x2d7   :  { %1934 = vmatmul.mubr.bf16.vlgmr.msra.gmra.mxu1 %v3830_v26 }
 0x397   :  { %v1935_v31 = vpop.f32.mrf.mxu1 }
 0x398   :  { %v1947_v14 = vmul.f32 %v1946_v34, %v1935_v31 }
 0x399   :  { %v1937_v32 = vpop.f32.mrf.mxu1 }
 0x39a   :  { %v1948_v51 = vmul.f32 %v1946_v34, %v1937_v32 }
 0x39b   :  { %v1939_v28 = vpop.f32.mrf.mxu1 }
 0x39c   :  { %v1951_v62 = vcombine.low %v1947_v14, %v1948_v51 }
 0x39d   :  { %v1940_v57 = vpop.f32.mrf.mxu1 }
 0x39e   :  { %v1953_v46 = vadd.f32 %v1951_v62, %v1944_v9 }
 0x3a0   :  { %v1954_v23 = vmul.f32 0.5, %v1953_v46 }
 0x3a2   :  { %v1955_v20 = vadd.f32 0.5, %v1954_v23 }
 0x3a4   :  { %2136 = vst [vmem:[%s3745_s10 + $0x8] sm:$0x77] %v1955_v20 }
 0x3a5   :  { %1962 = vsyncpa [#allocation3], 1 }
 0x3a6   :  { %1963 = vsyncpa [#allocation5], 1 }

</bundles_post_ra>
